<compile_context>
chip_gen: v7x
topology: tpu7x:2x2x1
jax: 0.10.0
libtpu: 0.0.40
codegen_flags: <defaults>
</compile_context>

<pallas_src>
import functools

import jax
import jax.numpy as jnp
from jax.experimental import pallas as pl
from jax.experimental.pallas import tpu as pltpu


# ------------------------------ helpers ------------------------------------

def _round_up(x, m):
    return (x + m - 1) // m * m


def _pick_tm(m, cap=512):
    """Row-tile size: large enough to amortize per-step overhead, small enough that the
    streamed (TM,K) patch tile plus resident weights/activations fit VMEM."""
    if m >= cap:
        return cap
    return max(8, _round_up(m, 8))


def _vmem_limit_bytes(est_bytes):
    """Scoped-VMEM request: cover the estimated working set but always leave ~20%
    physical headroom (v7x has only 64 MiB per TensorCore)."""
    try:
        cap = int(pltpu.get_tpu_info().vmem_capacity_bytes)
    except Exception:   # conservative fallback = v7x per-TC physical VMEM
        cap = 64 << 20
    ceiling = int(cap * 0.8)
    return int(min(max(est_bytes, 16 << 20), ceiling))


# ----------------------------- Pallas kernels ------------------------------

def _conv_bn_lrelu_kernel(p_ref, w_ref, b_ref, g_ref, beta_ref, o_ref, conv_sc,
                          *, m_true, m_pad, tm, eps, neg_slope):
    """Fused conv(im2col matmul) + bias + BatchNorm(batch stats) + LeakyReLU.

    Every grid step: (TM,K)@(K,Cout) on the MXU (bf16 in, f32 acc) into the
    VMEM-resident f32 scratch.  Last grid step: exact centered batch stats over the
    true rows, fold BN into scale/shift, apply LeakyReLU, store bf16 output.
    """
    i = pl.program_id(0)

    acc = jnp.dot(p_ref[...], w_ref[...], preferred_element_type=jnp.float32)
    acc = acc + b_ref[...]
    row0 = pl.multiple_of(i * tm, tm)
    conv_sc[pl.ds(row0, tm), :] = acc

    @pl.when(i == pl.num_programs(0) - 1)
    def _():
        x = conv_sc[...]                                      # (m_pad, Cout) f32
        if m_pad != m_true:
            rows = jax.lax.broadcasted_iota(jnp.int32, (m_pad, 1), 0)
            valid = rows < m_true
            xs = jnp.where(valid, x, 0.0)
        else:
            valid = None
            xs = x
        inv_m = 1.0 / m_true
        mean = jnp.sum(xs, axis=0, keepdims=True) * inv_m     # (1, Cout)
        d = x - mean
        d2 = d * d
        if valid is not None:
            d2 = jnp.where(valid, d2, 0.0)
        var = jnp.sum(d2, axis=0, keepdims=True) * inv_m      # biased, centered
        scale = g_ref[...] * jax.lax.rsqrt(var + eps)
        shift = beta_ref[...] - mean * scale
        y = x * scale + shift
        o_ref[...] = jnp.maximum(y, neg_slope * y).astype(o_ref.dtype)


def _matmul_bias_kernel(p_ref, w_ref, b_ref, o_ref):
    o_ref[...] = (jnp.dot(p_ref[...], w_ref[...], preferred_element_type=jnp.float32)
                  + b_ref[...]).astype(o_ref.dtype)


# ---------------------------- pallas_call wrappers --------------------------

def conv_bn_lrelu(patches, w_flat, b, gamma, beta, *, m_true, m_pad, tm):
    k = patches.shape[1]
    cout = w_flat.shape[1]
    grid_m = m_pad // tm
    kernel = functools.partial(_conv_bn_lrelu_kernel, m_true=m_true, m_pad=m_pad,
                               tm=tm, eps=1e-5, neg_slope=0.2)
    est = (2 * tm * k * 2            # streamed bf16 patch tiles (double-buffered)
           + 2 * k * cout * 2        # resident bf16 weights
           + 8 * cout * 4            # bias / gamma / beta
           + m_pad * cout * 4        # f32 conv scratch
           + 2 * m_pad * cout * 2    # bf16 output buffer
           + (4 << 20))
    return pl.pallas_call(
        kernel,
        out_shape=jax.ShapeDtypeStruct((m_pad, cout), jnp.bfloat16),
        grid=(grid_m,),
        in_specs=[pl.BlockSpec((tm, k), lambda i: (i, 0)),        # streamed patches
                  pl.BlockSpec((k, cout), lambda i: (0, 0)),      # resident weights
                  pl.BlockSpec((1, cout), lambda i: (0, 0)),      # bias
                  pl.BlockSpec((1, cout), lambda i: (0, 0)),      # gamma
                  pl.BlockSpec((1, cout), lambda i: (0, 0))],     # beta
        out_specs=pl.BlockSpec((m_pad, cout), lambda i: (0, 0)),  # resident output
        scratch_shapes=[pltpu.VMEM((m_pad, cout), jnp.float32)],
        compiler_params=pltpu.CompilerParams(
            dimension_semantics=("arbitrary",),        # stats carried across M tiles
            vmem_limit_bytes=_vmem_limit_bytes(est)),
    )(patches, w_flat, b, gamma, beta)


def conv_bias(patches, w_flat, b, tm):
    """Final conv as tiled matmul + bias; Cout is lane-padded to a multiple of 128."""
    m_pad, k = patches.shape
    cout = w_flat.shape[1]
    grid_m = m_pad // tm
    est = 2 * tm * k * 2 + 2 * k * cout * 2 + cout * 4 + 2 * tm * cout * 4 + (2 << 20)
    return pl.pallas_call(
        _matmul_bias_kernel,
        out_shape=jax.ShapeDtypeStruct((m_pad, cout), jnp.float32),
        grid=(grid_m,),
        in_specs=[pl.BlockSpec((tm, k), lambda i: (i, 0)),
                  pl.BlockSpec((k, cout), lambda i: (0, 0)),
                  pl.BlockSpec((1, cout), lambda i: (0, 0))],
        out_specs=pl.BlockSpec((tm, cout), lambda i: (i, 0)),
        compiler_params=pltpu.CompilerParams(
            dimension_semantics=("parallel",),
            vmem_limit_bytes=_vmem_limit_bytes(est)),
    )(patches, w_flat, b)


# ------------------------------ JAX glue ----------------------------------

def im2col(x_nhwc, k, stride, pad):
    """Extract conv patches. Returns (N*Ho*Wo, k*k*C) with column order (kh, kw, c)."""
    n, h, w, c = x_nhwc.shape
    xp = x_nhwc if pad == 0 else jnp.pad(x_nhwc, ((0, 0), (pad, pad), (pad, pad), (0, 0)))
    ho = (h + 2 * pad - k) // stride + 1
    wo = (w + 2 * pad - k) // stride + 1
    cols = []
    for i in range(k):
        for j in range(k):
            cols.append(xp[:, i:i + stride * ho:stride, j:j + stride * wo:stride, :])
    patches = jnp.concatenate(cols, axis=-1)                  # (N, Ho, Wo, k*k*C)
    return patches.reshape(n * ho * wo, k * k * c), (n, ho, wo)
# TODO(synk): fuse patch extraction into the conv kernel (BlockSpec over padded NHWC rows
# or manual DMA) so the ~16x-inflated im2col buffer is never materialized in HBM.


def flatten_weight(w_oikk):
    """(Cout, Cin, KH, KW) -> (KH*KW*Cin, Cout), matching im2col column order."""
    cout = w_oikk.shape[0]
    return jnp.transpose(w_oikk, (2, 3, 1, 0)).reshape(-1, cout)


def init_params(key, grayscale='False'):
    cin = 1 if grayscale == 'True' else 3
    dims = [(cin, 64), (64, 128), (128, 256)]
    params = {'blocks': [], 'final': None}
    keys = jax.random.split(key, 8)
    ki = 0
    for (ci, co) in dims:
        w = 0.05 * jax.random.normal(keys[ki], (co, ci, 4, 4), jnp.float32); ki += 1
        b = 0.01 * jax.random.normal(keys[ki], (co,), jnp.float32); ki += 1
        gamma = jnp.ones((co,), jnp.float32)   # BatchNorm affine init
        beta = jnp.zeros((co,), jnp.float32)
        params['blocks'].append((w, b, gamma, beta))
    wf = 0.05 * jax.random.normal(keys[ki], (1, 256, 4, 4), jnp.float32); ki += 1
    bf = 0.01 * jax.random.normal(keys[ki], (1,), jnp.float32)
    params['final'] = (wf, bf)
    return params


def prepare_params(raw):
    """One-time weight preprocessing (hoisted out of the forward): flattened bf16 matmul
    weights, (1,C) f32 bias/gamma/beta, lane-padded final conv weights."""
    blocks = []
    for (w, b, gamma, beta) in raw['blocks']:
        blocks.append((flatten_weight(w).astype(jnp.bfloat16),
                       b.reshape(1, -1).astype(jnp.float32),
                       gamma.reshape(1, -1).astype(jnp.float32),
                       beta.reshape(1, -1).astype(jnp.float32)))
    wf, bf = raw['final']
    cout_true = wf.shape[0]                               # 1
    cout_pad = _round_up(cout_true, 128)                  # lane-dense output width
    wf_flat = jnp.pad(flatten_weight(wf), ((0, 0), (0, cout_pad - cout_true)))
    bf_pad = jnp.pad(bf.reshape(1, -1), ((0, 0), (0, cout_pad - cout_true)))
    return {'blocks': blocks,
            'final': (wf_flat.astype(jnp.bfloat16), bf_pad.astype(jnp.float32))}


def _conv_block(x_nhwc, layer):
    """conv(4,2,1) + BatchNorm(batch stats) + LeakyReLU(0.2), fully fused in one kernel."""
    w_flat, b, gamma, beta = layer
    cout = w_flat.shape[1]
    patches, (n, ho, wo) = im2col(x_nhwc, 4, 2, 1)        # bf16 patches
    m = patches.shape[0]
    tm = _pick_tm(m)
    m_pad = _round_up(m, tm)
    if m_pad != m:
        patches = jnp.pad(patches, ((0, m_pad - m), (0, 0)))
    y = conv_bn_lrelu(patches, w_flat, b, gamma, beta, m_true=m, m_pad=m_pad, tm=tm)
    return y[:m].reshape(n, ho, wo, cout)                 # bf16 activation


def ndiscriminator_forward(x_nchw, params):
    """Input NCHW (PyTorch convention); returns NCHW (N, 1, Hf, Wf) in f32."""
    x = jnp.transpose(x_nchw, (0, 2, 3, 1)).astype(jnp.bfloat16)  # NHWC, bf16 MXU feed
    for layer in params['blocks']:                                 # 3 fused conv blocks
        x = _conv_block(x, layer)
    # Final conv(4,1,0), no BN / activation, Cout lane-padded 1 -> 128
    wf_flat, bf_pad = params['final']
    patches, (n, ho, wo) = im2col(x, 4, 1, 0)
    m = patches.shape[0]
    tm = _pick_tm(m)
    m_pad = _round_up(m, tm)
    if m_pad != m:
        patches = jnp.pad(patches, ((0, m_pad - m), (0, 0)))
    out = conv_bias(patches, wf_flat, bf_pad, tm)                  # (m_pad, 128) f32
    out = out[:m, :1].reshape(n, ho, wo, 1)
    return jnp.transpose(out, (0, 3, 1, 2))                        # -> NCHW


if __name__ == "__main__":
    key = jax.random.PRNGKey(0)
    k_x, k_p = jax.random.split(key)
    # grayscale='False' -> 3 input channels; 32x32 spatial so the path is
    # 32 -> 16 -> 8 -> 4 -> (final 4x4/s1/p0) -> 1.
    x = jax.random.normal(k_x, (2, 3, 32, 32), jnp.float32)
    raw_params = init_params(k_p, grayscale='False')
    params = prepare_params(raw_params)      # weight flatten/cast done once, not per call

    fwd = jax.jit(ndiscriminator_forward)
    y = jax.block_until_ready(fwd(x, params))
    assert y.shape == (2, 1, 1, 1), y.shape
    assert bool(jnp.all(jnp.isfinite(y))), "non-finite output"
    print("KERNEL_OK")
</pallas_src>

<mosaic_0001>
module attributes {stable_mosaic.version = 11 : i64} {
  func.func @_conv_bn_lrelu_kernel(%arg0: i32, %arg1: memref<512x48xbf16, #tpu.memory_space<vmem>>, %arg2: memref<48x64xbf16, #tpu.memory_space<vmem>>, %arg3: memref<1x64xf32, #tpu.memory_space<vmem>>, %arg4: memref<1x64xf32, #tpu.memory_space<vmem>>, %arg5: memref<1x64xf32, #tpu.memory_space<vmem>>, %arg6: memref<512x64xbf16, #tpu.memory_space<vmem>>, %arg7: memref<512x64xf32, #tpu.memory_space<vmem>>) attributes {dimension_semantics = [#tpu.dimension_semantics<arbitrary>], iteration_bounds = array<i64: 1>, scalar_prefetch = 0 : i64, scratch_operands = 1 : i64, tpu.core_type = #tpu.core_type<tc>, window_params = [{transform_indices = @transform_0, window_bounds = array<i64: 512, 48>}, {pipeline_mode = #tpu.pipeline_mode<synchronous>, transform_indices = @transform_1, window_bounds = array<i64: 48, 64>}, {pipeline_mode = #tpu.pipeline_mode<synchronous>, transform_indices = @transform_2, window_bounds = array<i64: 1, 64>}, {pipeline_mode = #tpu.pipeline_mode<synchronous>, transform_indices = @transform_3, window_bounds = array<i64: 1, 64>}, {pipeline_mode = #tpu.pipeline_mode<synchronous>, transform_indices = @transform_4, window_bounds = array<i64: 1, 64>}, {pipeline_mode = #tpu.pipeline_mode<synchronous>, transform_indices = @transform_5, window_bounds = array<i64: 512, 64>}]} {
    %c0 = arith.constant 0 : index
    %c0_0 = arith.constant 0 : index
    %0 = vector.load %arg1[%c0, %c0_0] : memref<512x48xbf16, #tpu.memory_space<vmem>>, vector<512x48xbf16>
    %c0_1 = arith.constant 0 : index
    %c0_2 = arith.constant 0 : index
    %1 = vector.load %arg2[%c0_1, %c0_2] : memref<48x64xbf16, #tpu.memory_space<vmem>>, vector<48x64xbf16>
    %cst = arith.constant dense<0.000000e+00> : vector<512x64xf32>
    %2 = tpu.matmul %0, %1, %cst {dimension_numbers = #tpu.dot_dimension_numbers<[1], [0], [0], [1], [0, 0, 1, 1], [], []>} : vector<512x48xbf16>, vector<48x64xbf16>, vector<512x64xf32> -> vector<512x64xf32>
    %c0_3 = arith.constant 0 : index
    %c0_4 = arith.constant 0 : index
    %3 = vector.load %arg3[%c0_3, %c0_4] : memref<1x64xf32, #tpu.memory_space<vmem>>, vector<1x64xf32>
    %4 = vector.broadcast %3 : vector<1x64xf32> to vector<512x64xf32>
    %5 = arith.addf %2, %4 : vector<512x64xf32>
    %c512_i32 = arith.constant 512 : i32
    %6 = arith.muli %arg0, %c512_i32 : i32
    %7 = tpu.assume_multiple %6, 512 : i32
    %8 = arith.index_cast %7 : i32 to index
    %c0_5 = arith.constant 0 : index
    %9 = vector.load %arg7[%8, %c0_5] : memref<512x64xf32, #tpu.memory_space<vmem>>, vector<512x64xf32>
    tpu.vector_store %arg7[%8, %c0_5], %5 {strides = array<i32>} : memref<512x64xf32, #tpu.memory_space<vmem>>, vector<512x64xf32>,
    %c0_i32 = arith.constant 0 : i32
    %10 = arith.cmpi eq, %arg0, %c0_i32 : i32
    %11 = arith.extui %10 : i1 to i32
    %c0_i32_6 = arith.constant 0 : i32
    %12 = arith.cmpi ne, %11, %c0_i32_6 : i32
    scf.if %12 {
      %c0_7 = arith.constant 0 : index
      %c0_8 = arith.constant 0 : index
      %13 = vector.load %arg7[%c0_7, %c0_8] : memref<512x64xf32, #tpu.memory_space<vmem>>, vector<512x64xf32>
      %cst_9 = arith.constant dense<0.000000e+00> : vector<64xf32>
      %14 = vector.multi_reduction <add>, %13, %cst_9 [0] : vector<512x64xf32> to vector<64xf32>
      %15 = vector.shape_cast %14 : vector<64xf32> to vector<1x64xf32>
      %cst_10 = arith.constant 0.001953125 : f32
      %16 = vector.broadcast %cst_10 : f32 to vector<1x64xf32>
      %17 = arith.mulf %15, %16 : vector<1x64xf32>
      %18 = vector.broadcast %17 : vector<1x64xf32> to vector<512x64xf32>
      %19 = arith.subf %13, %18 : vector<512x64xf32>
      %20 = arith.mulf %19, %19 : vector<512x64xf32>
      %cst_11 = arith.constant dense<0.000000e+00> : vector<64xf32>
      %21 = vector.multi_reduction <add>, %20, %cst_11 [0] : vector<512x64xf32> to vector<64xf32>
      %22 = vector.shape_cast %21 : vector<64xf32> to vector<1x64xf32>
      %cst_12 = arith.constant 0.001953125 : f32
      %23 = vector.broadcast %cst_12 : f32 to vector<1x64xf32>
      %24 = arith.mulf %22, %23 : vector<1x64xf32>
      %c0_13 = arith.constant 0 : index
      %c0_14 = arith.constant 0 : index
      %25 = vector.load %arg4[%c0_13, %c0_14] : memref<1x64xf32, #tpu.memory_space<vmem>>, vector<1x64xf32>
      %cst_15 = arith.constant 9.99999974E-6 : f32
      %26 = vector.broadcast %cst_15 : f32 to vector<1x64xf32>
      %27 = arith.addf %24, %26 : vector<1x64xf32>
      %28 = math.rsqrt %27 : vector<1x64xf32>
      %29 = arith.mulf %25, %28 : vector<1x64xf32>
      %c0_16 = arith.constant 0 : index
      %c0_17 = arith.constant 0 : index
      %30 = vector.load %arg5[%c0_16, %c0_17] : memref<1x64xf32, #tpu.memory_space<vmem>>, vector<1x64xf32>
      %31 = arith.mulf %17, %29 : vector<1x64xf32>
      %32 = arith.subf %30, %31 : vector<1x64xf32>
      %33 = vector.broadcast %29 : vector<1x64xf32> to vector<512x64xf32>
      %34 = arith.mulf %13, %33 : vector<512x64xf32>
      %35 = vector.broadcast %32 : vector<1x64xf32> to vector<512x64xf32>
      %36 = arith.addf %34, %35 : vector<512x64xf32>
      %cst_18 = arith.constant 2.000000e-01 : f32
      %37 = vector.broadcast %cst_18 : f32 to vector<512x64xf32>
      %38 = arith.mulf %37, %36 : vector<512x64xf32>
      %39 = arith.maximumf %36, %38 : vector<512x64xf32>
      %40 = arith.truncf %39 : vector<512x64xf32> to vector<512x64xbf16>
      %c0_19 = arith.constant 0 : index
      %c0_20 = arith.constant 0 : index
      %41 = vector.load %arg6[%c0_19, %c0_20] : memref<512x64xbf16, #tpu.memory_space<vmem>>, vector<512x64xbf16>
      tpu.vector_store %arg6[%c0_19, %c0_20], %40 {strides = array<i32>} : memref<512x64xbf16, #tpu.memory_space<vmem>>, vector<512x64xbf16>,
    } else {
    }
    return
  }
  func.func @transform_0(%arg0: i32) -> (i32, i32) {
    %c0_i32 = arith.constant 0 : i32
    %c0_i32_0 = arith.constant 0 : i32
    return %arg0, %c0_i32 : i32, i32
  }
  func.func @transform_1(%arg0: i32) -> (i32, i32) {
    %c0_i32 = arith.constant 0 : i32
    %c0_i32_0 = arith.constant 0 : i32
    %c0_i32_1 = arith.constant 0 : i32
    return %c0_i32, %c0_i32_0 : i32, i32
  }
  func.func @transform_2(%arg0: i32) -> (i32, i32) {
    %c0_i32 = arith.constant 0 : i32
    %c0_i32_0 = arith.constant 0 : i32
    %c0_i32_1 = arith.constant 0 : i32
    return %c0_i32, %c0_i32_0 : i32, i32
  }
  func.func @transform_3(%arg0: i32) -> (i32, i32) {
    %c0_i32 = arith.constant 0 : i32
    %c0_i32_0 = arith.constant 0 : i32
    %c0_i32_1 = arith.constant 0 : i32
    return %c0_i32, %c0_i32_0 : i32, i32
  }
  func.func @transform_4(%arg0: i32) -> (i32, i32) {
    %c0_i32 = arith.constant 0 : i32
    %c0_i32_0 = arith.constant 0 : i32
    %c0_i32_1 = arith.constant 0 : i32
    return %c0_i32, %c0_i32_0 : i32, i32
  }
  func.func @transform_5(%arg0: i32) -> (i32, i32) {
    %c0_i32 = arith.constant 0 : i32
    %c0_i32_0 = arith.constant 0 : i32
    %c0_i32_1 = arith.constant 0 : i32
    return %c0_i32, %c0_i32_0 : i32, i32
  }
}

module attributes {stable_mosaic.version = 11 : i64} {
  func.func @_conv_bn_lrelu_kernel(%arg0: i32, %arg1: memref<128x1024xbf16, #tpu.memory_space<vmem>>, %arg2: memref<1024x128xbf16, #tpu.memory_space<vmem>>, %arg3: memref<1x128xf32, #tpu.memory_space<vmem>>, %arg4: memref<1x128xf32, #tpu.memory_space<vmem>>, %arg5: memref<1x128xf32, #tpu.memory_space<vmem>>, %arg6: memref<128x128xbf16, #tpu.memory_space<vmem>>, %arg7: memref<128x128xf32, #tpu.memory_space<vmem>>) attributes {dimension_semantics = [#tpu.dimension_semantics<arbitrary>], iteration_bounds = array<i64: 1>, scalar_prefetch = 0 : i64, scratch_operands = 1 : i64, tpu.core_type = #tpu.core_type<tc>, window_params = [{transform_indices = @transform_0, window_bounds = array<i64: 128, 1024>}, {pipeline_mode = #tpu.pipeline_mode<synchronous>, transform_indices = @transform_1, window_bounds = array<i64: 1024, 128>}, {pipeline_mode = #tpu.pipeline_mode<synchronous>, transform_indices = @transform_2, window_bounds = array<i64: 1, 128>}, {pipeline_mode = #tpu.pipeline_mode<synchronous>, transform_indices = @transform_3, window_bounds = array<i64: 1, 128>}, {pipeline_mode = #tpu.pipeline_mode<synchronous>, transform_indices = @transform_4, window_bounds = array<i64: 1, 128>}, {pipeline_mode = #tpu.pipeline_mode<synchronous>, transform_indices = @transform_5, window_bounds = array<i64: 128, 128>}]} {
    %c0 = arith.constant 0 : index
    %c0_0 = arith.constant 0 : index
    %0 = vector.load %arg1[%c0, %c0_0] : memref<128x1024xbf16, #tpu.memory_space<vmem>>, vector<128x1024xbf16>
    %c0_1 = arith.constant 0 : index
    %c0_2 = arith.constant 0 : index
    %1 = vector.load %arg2[%c0_1, %c0_2] : memref<1024x128xbf16, #tpu.memory_space<vmem>>, vector<1024x128xbf16>
    %cst = arith.constant dense<0.000000e+00> : vector<128x128xf32>
    %2 = tpu.matmul %0, %1, %cst {dimension_numbers = #tpu.dot_dimension_numbers<[1], [0], [0], [1], [0, 0, 1, 1], [], []>} : vector<128x1024xbf16>, vector<1024x128xbf16>, vector<128x128xf32> -> vector<128x128xf32>
    %c0_3 = arith.constant 0 : index
    %c0_4 = arith.constant 0 : index
    %3 = vector.load %arg3[%c0_3, %c0_4] : memref<1x128xf32, #tpu.memory_space<vmem>>, vector<1x128xf32>
    %4 = vector.broadcast %3 : vector<1x128xf32> to vector<128x128xf32>
    %5 = arith.addf %2, %4 : vector<128x128xf32>
    %c128_i32 = arith.constant 128 : i32
    %6 = arith.muli %arg0, %c128_i32 : i32
    %7 = tpu.assume_multiple %6, 128 : i32
    %8 = arith.index_cast %7 : i32 to index
    %c0_5 = arith.constant 0 : index
    %9 = vector.load %arg7[%8, %c0_5] : memref<128x128xf32, #tpu.memory_space<vmem>>, vector<128x128xf32>
    tpu.vector_store %arg7[%8, %c0_5], %5 {strides = array<i32>} : memref<128x128xf32, #tpu.memory_space<vmem>>, vector<128x128xf32>,
    %c0_i32 = arith.constant 0 : i32
    %10 = arith.cmpi eq, %arg0, %c0_i32 : i32
    %11 = arith.extui %10 : i1 to i32
    %c0_i32_6 = arith.constant 0 : i32
    %12 = arith.cmpi ne, %11, %c0_i32_6 : i32
    scf.if %12 {
      %c0_7 = arith.constant 0 : index
      %c0_8 = arith.constant 0 : index
      %13 = vector.load %arg7[%c0_7, %c0_8] : memref<128x128xf32, #tpu.memory_space<vmem>>, vector<128x128xf32>
      %cst_9 = arith.constant dense<0.000000e+00> : vector<128xf32>
      %14 = vector.multi_reduction <add>, %13, %cst_9 [0] : vector<128x128xf32> to vector<128xf32>
      %15 = vector.shape_cast %14 : vector<128xf32> to vector<1x128xf32>
      %cst_10 = arith.constant 7.812500e-03 : f32
      %16 = vector.broadcast %cst_10 : f32 to vector<1x128xf32>
      %17 = arith.mulf %15, %16 : vector<1x128xf32>
      %18 = vector.broadcast %17 : vector<1x128xf32> to vector<128x128xf32>
      %19 = arith.subf %13, %18 : vector<128x128xf32>
      %20 = arith.mulf %19, %19 : vector<128x128xf32>
      %cst_11 = arith.constant dense<0.000000e+00> : vector<128xf32>
      %21 = vector.multi_reduction <add>, %20, %cst_11 [0] : vector<128x128xf32> to vector<128xf32>
      %22 = vector.shape_cast %21 : vector<128xf32> to vector<1x128xf32>
      %cst_12 = arith.constant 7.812500e-03 : f32
      %23 = vector.broadcast %cst_12 : f32 to vector<1x128xf32>
      %24 = arith.mulf %22, %23 : vector<1x128xf32>
      %c0_13 = arith.constant 0 : index
      %c0_14 = arith.constant 0 : index
      %25 = vector.load %arg4[%c0_13, %c0_14] : memref<1x128xf32, #tpu.memory_space<vmem>>, vector<1x128xf32>
      %cst_15 = arith.constant 9.99999974E-6 : f32
      %26 = vector.broadcast %cst_15 : f32 to vector<1x128xf32>
      %27 = arith.addf %24, %26 : vector<1x128xf32>
      %28 = math.rsqrt %27 : vector<1x128xf32>
      %29 = arith.mulf %25, %28 : vector<1x128xf32>
      %c0_16 = arith.constant 0 : index
      %c0_17 = arith.constant 0 : index
      %30 = vector.load %arg5[%c0_16, %c0_17] : memref<1x128xf32, #tpu.memory_space<vmem>>, vector<1x128xf32>
      %31 = arith.mulf %17, %29 : vector<1x128xf32>
      %32 = arith.subf %30, %31 : vector<1x128xf32>
      %33 = vector.broadcast %29 : vector<1x128xf32> to vector<128x128xf32>
      %34 = arith.mulf %13, %33 : vector<128x128xf32>
      %35 = vector.broadcast %32 : vector<1x128xf32> to vector<128x128xf32>
      %36 = arith.addf %34, %35 : vector<128x128xf32>
      %cst_18 = arith.constant 2.000000e-01 : f32
      %37 = vector.broadcast %cst_18 : f32 to vector<128x128xf32>
      %38 = arith.mulf %37, %36 : vector<128x128xf32>
      %39 = arith.maximumf %36, %38 : vector<128x128xf32>
      %40 = arith.truncf %39 : vector<128x128xf32> to vector<128x128xbf16>
      %c0_19 = arith.constant 0 : index
      %c0_20 = arith.constant 0 : index
      %41 = vector.load %arg6[%c0_19, %c0_20] : memref<128x128xbf16, #tpu.memory_space<vmem>>, vector<128x128xbf16>
      tpu.vector_store %arg6[%c0_19, %c0_20], %40 {strides = array<i32>} : memref<128x128xbf16, #tpu.memory_space<vmem>>, vector<128x128xbf16>,
    } else {
    }
    return
  }
  func.func @transform_0(%arg0: i32) -> (i32, i32) {
    %c0_i32 = arith.constant 0 : i32
    %c0_i32_0 = arith.constant 0 : i32
    return %arg0, %c0_i32 : i32, i32
  }
  func.func @transform_1(%arg0: i32) -> (i32, i32) {
    %c0_i32 = arith.constant 0 : i32
    %c0_i32_0 = arith.constant 0 : i32
    %c0_i32_1 = arith.constant 0 : i32
    return %c0_i32, %c0_i32_0 : i32, i32
  }
  func.func @transform_2(%arg0: i32) -> (i32, i32) {
    %c0_i32 = arith.constant 0 : i32
    %c0_i32_0 = arith.constant 0 : i32
    %c0_i32_1 = arith.constant 0 : i32
    return %c0_i32, %c0_i32_0 : i32, i32
  }
  func.func @transform_3(%arg0: i32) -> (i32, i32) {
    %c0_i32 = arith.constant 0 : i32
    %c0_i32_0 = arith.constant 0 : i32
    %c0_i32_1 = arith.constant 0 : i32
    return %c0_i32, %c0_i32_0 : i32, i32
  }
  func.func @transform_4(%arg0: i32) -> (i32, i32) {
    %c0_i32 = arith.constant 0 : i32
    %c0_i32_0 = arith.constant 0 : i32
    %c0_i32_1 = arith.constant 0 : i32
    return %c0_i32, %c0_i32_0 : i32, i32
  }
  func.func @transform_5(%arg0: i32) -> (i32, i32) {
    %c0_i32 = arith.constant 0 : i32
    %c0_i32_0 = arith.constant 0 : i32
    %c0_i32_1 = arith.constant 0 : i32
    return %c0_i32, %c0_i32_0 : i32, i32
  }
}

module attributes {stable_mosaic.version = 11 : i64} {
  func.func @_conv_bn_lrelu_kernel(%arg0: i32, %arg1: memref<32x2048xbf16, #tpu.memory_space<vmem>>, %arg2: memref<2048x256xbf16, #tpu.memory_space<vmem>>, %arg3: memref<1x256xf32, #tpu.memory_space<vmem>>, %arg4: memref<1x256xf32, #tpu.memory_space<vmem>>, %arg5: memref<1x256xf32, #tpu.memory_space<vmem>>, %arg6: memref<32x256xbf16, #tpu.memory_space<vmem>>, %arg7: memref<32x256xf32, #tpu.memory_space<vmem>>) attributes {dimension_semantics = [#tpu.dimension_semantics<arbitrary>], iteration_bounds = array<i64: 1>, scalar_prefetch = 0 : i64, scratch_operands = 1 : i64, tpu.core_type = #tpu.core_type<tc>, window_params = [{transform_indices = @transform_0, window_bounds = array<i64: 32, 2048>}, {pipeline_mode = #tpu.pipeline_mode<synchronous>, transform_indices = @transform_1, window_bounds = array<i64: 2048, 256>}, {pipeline_mode = #tpu.pipeline_mode<synchronous>, transform_indices = @transform_2, window_bounds = array<i64: 1, 256>}, {pipeline_mode = #tpu.pipeline_mode<synchronous>, transform_indices = @transform_3, window_bounds = array<i64: 1, 256>}, {pipeline_mode = #tpu.pipeline_mode<synchronous>, transform_indices = @transform_4, window_bounds = array<i64: 1, 256>}, {pipeline_mode = #tpu.pipeline_mode<synchronous>, transform_indices = @transform_5, window_bounds = array<i64: 32, 256>}]} {
    %c0 = arith.constant 0 : index
    %c0_0 = arith.constant 0 : index
    %0 = vector.load %arg1[%c0, %c0_0] : memref<32x2048xbf16, #tpu.memory_space<vmem>>, vector<32x2048xbf16>
    %c0_1 = arith.constant 0 : index
    %c0_2 = arith.constant 0 : index
    %1 = vector.load %arg2[%c0_1, %c0_2] : memref<2048x256xbf16, #tpu.memory_space<vmem>>, vector<2048x256xbf16>
    %cst = arith.constant dense<0.000000e+00> : vector<32x256xf32>
    %2 = tpu.matmul %0, %1, %cst {dimension_numbers = #tpu.dot_dimension_numbers<[1], [0], [0], [1], [0, 0, 1, 1], [], []>} : vector<32x2048xbf16>, vector<2048x256xbf16>, vector<32x256xf32> -> vector<32x256xf32>
    %c0_3 = arith.constant 0 : index
    %c0_4 = arith.constant 0 : index
    %3 = vector.load %arg3[%c0_3, %c0_4] : memref<1x256xf32, #tpu.memory_space<vmem>>, vector<1x256xf32>
    %4 = vector.broadcast %3 : vector<1x256xf32> to vector<32x256xf32>
    %5 = arith.addf %2, %4 : vector<32x256xf32>
    %c32_i32 = arith.constant 32 : i32
    %6 = arith.muli %arg0, %c32_i32 : i32
    %7 = tpu.assume_multiple %6, 32 : i32
    %8 = arith.index_cast %7 : i32 to index
    %c0_5 = arith.constant 0 : index
    %9 = vector.load %arg7[%8, %c0_5] : memref<32x256xf32, #tpu.memory_space<vmem>>, vector<32x256xf32>
    tpu.vector_store %arg7[%8, %c0_5], %5 {strides = array<i32>} : memref<32x256xf32, #tpu.memory_space<vmem>>, vector<32x256xf32>,
    %c0_i32 = arith.constant 0 : i32
    %10 = arith.cmpi eq, %arg0, %c0_i32 : i32
    %11 = arith.extui %10 : i1 to i32
    %c0_i32_6 = arith.constant 0 : i32
    %12 = arith.cmpi ne, %11, %c0_i32_6 : i32
    scf.if %12 {
      %c0_7 = arith.constant 0 : index
      %c0_8 = arith.constant 0 : index
      %13 = vector.load %arg7[%c0_7, %c0_8] : memref<32x256xf32, #tpu.memory_space<vmem>>, vector<32x256xf32>
      %cst_9 = arith.constant dense<0.000000e+00> : vector<256xf32>
      %14 = vector.multi_reduction <add>, %13, %cst_9 [0] : vector<32x256xf32> to vector<256xf32>
      %15 = vector.shape_cast %14 : vector<256xf32> to vector<1x256xf32>
      %cst_10 = arith.constant 3.125000e-02 : f32
      %16 = vector.broadcast %cst_10 : f32 to vector<1x256xf32>
      %17 = arith.mulf %15, %16 : vector<1x256xf32>
      %18 = vector.broadcast %17 : vector<1x256xf32> to vector<32x256xf32>
      %19 = arith.subf %13, %18 : vector<32x256xf32>
      %20 = arith.mulf %19, %19 : vector<32x256xf32>
      %cst_11 = arith.constant dense<0.000000e+00> : vector<256xf32>
      %21 = vector.multi_reduction <add>, %20, %cst_11 [0] : vector<32x256xf32> to vector<256xf32>
      %22 = vector.shape_cast %21 : vector<256xf32> to vector<1x256xf32>
      %cst_12 = arith.constant 3.125000e-02 : f32
      %23 = vector.broadcast %cst_12 : f32 to vector<1x256xf32>
      %24 = arith.mulf %22, %23 : vector<1x256xf32>
      %c0_13 = arith.constant 0 : index
      %c0_14 = arith.constant 0 : index
      %25 = vector.load %arg4[%c0_13, %c0_14] : memref<1x256xf32, #tpu.memory_space<vmem>>, vector<1x256xf32>
      %cst_15 = arith.constant 9.99999974E-6 : f32
      %26 = vector.broadcast %cst_15 : f32 to vector<1x256xf32>
      %27 = arith.addf %24, %26 : vector<1x256xf32>
      %28 = math.rsqrt %27 : vector<1x256xf32>
      %29 = arith.mulf %25, %28 : vector<1x256xf32>
      %c0_16 = arith.constant 0 : index
      %c0_17 = arith.constant 0 : index
      %30 = vector.load %arg5[%c0_16, %c0_17] : memref<1x256xf32, #tpu.memory_space<vmem>>, vector<1x256xf32>
      %31 = arith.mulf %17, %29 : vector<1x256xf32>
      %32 = arith.subf %30, %31 : vector<1x256xf32>
      %33 = vector.broadcast %29 : vector<1x256xf32> to vector<32x256xf32>
      %34 = arith.mulf %13, %33 : vector<32x256xf32>
      %35 = vector.broadcast %32 : vector<1x256xf32> to vector<32x256xf32>
      %36 = arith.addf %34, %35 : vector<32x256xf32>
      %cst_18 = arith.constant 2.000000e-01 : f32
      %37 = vector.broadcast %cst_18 : f32 to vector<32x256xf32>
      %38 = arith.mulf %37, %36 : vector<32x256xf32>
      %39 = arith.maximumf %36, %38 : vector<32x256xf32>
      %40 = arith.truncf %39 : vector<32x256xf32> to vector<32x256xbf16>
      %c0_19 = arith.constant 0 : index
      %c0_20 = arith.constant 0 : index
      %41 = vector.load %arg6[%c0_19, %c0_20] : memref<32x256xbf16, #tpu.memory_space<vmem>>, vector<32x256xbf16>
      tpu.vector_store %arg6[%c0_19, %c0_20], %40 {strides = array<i32>} : memref<32x256xbf16, #tpu.memory_space<vmem>>, vector<32x256xbf16>,
    } else {
    }
    return
  }
  func.func @transform_0(%arg0: i32) -> (i32, i32) {
    %c0_i32 = arith.constant 0 : i32
    %c0_i32_0 = arith.constant 0 : i32
    return %arg0, %c0_i32 : i32, i32
  }
  func.func @transform_1(%arg0: i32) -> (i32, i32) {
    %c0_i32 = arith.constant 0 : i32
    %c0_i32_0 = arith.constant 0 : i32
    %c0_i32_1 = arith.constant 0 : i32
    return %c0_i32, %c0_i32_0 : i32, i32
  }
  func.func @transform_2(%arg0: i32) -> (i32, i32) {
    %c0_i32 = arith.constant 0 : i32
    %c0_i32_0 = arith.constant 0 : i32
    %c0_i32_1 = arith.constant 0 : i32
    return %c0_i32, %c0_i32_0 : i32, i32
  }
  func.func @transform_3(%arg0: i32) -> (i32, i32) {
    %c0_i32 = arith.constant 0 : i32
    %c0_i32_0 = arith.constant 0 : i32
    %c0_i32_1 = arith.constant 0 : i32
    return %c0_i32, %c0_i32_0 : i32, i32
  }
  func.func @transform_4(%arg0: i32) -> (i32, i32) {
    %c0_i32 = arith.constant 0 : i32
    %c0_i32_0 = arith.constant 0 : i32
    %c0_i32_1 = arith.constant 0 : i32
    return %c0_i32, %c0_i32_0 : i32, i32
  }
  func.func @transform_5(%arg0: i32) -> (i32, i32) {
    %c0_i32 = arith.constant 0 : i32
    %c0_i32_0 = arith.constant 0 : i32
    %c0_i32_1 = arith.constant 0 : i32
    return %c0_i32, %c0_i32_0 : i32, i32
  }
}

module attributes {stable_mosaic.version = 11 : i64} {
  func.func @_matmul_bias_kernel(%arg0: i32, %arg1: memref<8x4096xbf16, #tpu.memory_space<vmem>>, %arg2: memref<4096x128xbf16, #tpu.memory_space<vmem>>, %arg3: memref<1x128xf32, #tpu.memory_space<vmem>>, %arg4: memref<8x128xf32, #tpu.memory_space<vmem>>) attributes {dimension_semantics = [#tpu.dimension_semantics<parallel>], iteration_bounds = array<i64: 1>, scalar_prefetch = 0 : i64, scratch_operands = 0 : i64, tpu.core_type = #tpu.core_type<tc>, window_params = [{transform_indices = @transform_0, window_bounds = array<i64: 8, 4096>}, {pipeline_mode = #tpu.pipeline_mode<synchronous>, transform_indices = @transform_1, window_bounds = array<i64: 4096, 128>}, {pipeline_mode = #tpu.pipeline_mode<synchronous>, transform_indices = @transform_2, window_bounds = array<i64: 1, 128>}, {transform_indices = @transform_3, window_bounds = array<i64: 8, 128>}]} {
    %c0 = arith.constant 0 : index
    %c0_0 = arith.constant 0 : index
    %0 = vector.load %arg1[%c0, %c0_0] : memref<8x4096xbf16, #tpu.memory_space<vmem>>, vector<8x4096xbf16>
    %c0_1 = arith.constant 0 : index
    %c0_2 = arith.constant 0 : index
    %1 = vector.load %arg2[%c0_1, %c0_2] : memref<4096x128xbf16, #tpu.memory_space<vmem>>, vector<4096x128xbf16>
    %cst = arith.constant dense<0.000000e+00> : vector<8x128xf32>
    %2 = tpu.matmul %0, %1, %cst {dimension_numbers = #tpu.dot_dimension_numbers<[1], [0], [0], [1], [0, 0, 1, 1], [], []>} : vector<8x4096xbf16>, vector<4096x128xbf16>, vector<8x128xf32> -> vector<8x128xf32>
    %c0_3 = arith.constant 0 : index
    %c0_4 = arith.constant 0 : index
    %3 = vector.load %arg3[%c0_3, %c0_4] : memref<1x128xf32, #tpu.memory_space<vmem>>, vector<1x128xf32>
    %4 = vector.broadcast %3 : vector<1x128xf32> to vector<8x128xf32>
    %5 = arith.addf %2, %4 : vector<8x128xf32>
    %c0_5 = arith.constant 0 : index
    %c0_6 = arith.constant 0 : index
    %6 = vector.load %arg4[%c0_5, %c0_6] : memref<8x128xf32, #tpu.memory_space<vmem>>, vector<8x128xf32>
    tpu.vector_store %arg4[%c0_5, %c0_6], %5 {strides = array<i32>} : memref<8x128xf32, #tpu.memory_space<vmem>>, vector<8x128xf32>,
    return
  }
  func.func @transform_0(%arg0: i32) -> (i32, i32) {
    %c0_i32 = arith.constant 0 : i32
    %c0_i32_0 = arith.constant 0 : i32
    return %arg0, %c0_i32 : i32, i32
  }
  func.func @transform_1(%arg0: i32) -> (i32, i32) {
    %c0_i32 = arith.constant 0 : i32
    %c0_i32_0 = arith.constant 0 : i32
    %c0_i32_1 = arith.constant 0 : i32
    return %c0_i32, %c0_i32_0 : i32, i32
  }
  func.func @transform_2(%arg0: i32) -> (i32, i32) {
    %c0_i32 = arith.constant 0 : i32
    %c0_i32_0 = arith.constant 0 : i32
    %c0_i32_1 = arith.constant 0 : i32
    return %c0_i32, %c0_i32_0 : i32, i32
  }
  func.func @transform_3(%arg0: i32) -> (i32, i32) {
    %c0_i32 = arith.constant 0 : i32
    %c0_i32_0 = arith.constant 0 : i32
    return %arg0, %c0_i32 : i32, i32
  }
}

</mosaic_0001>

<bundles_post_ra>
// kernel: ndiscriminator_forward.4
= control target key start
LH: loop header
LB: loop body
LE: loop exit
PB: predicated region body
PF: predicated region fallthrough
CT: control target
= control target key end

     0   :  { %vm276_vm0 = vcmask 392192   ;;  %vm664_vm1 = vcmask 523264   ;;  %vm1724_vm2 = vcmask 519168   ;;  %s4066_s1 = inlined_call_operand.vmem [shape: bf16[48,64], index: 1, kind: input, shape index: {}]   ;;  %s4067_s0 = inlined_call_operand.vmem [shape: bf16[512,48], index: 0, kind: input, shape index: {}]   ;;  %s4068_s2 = inlined_call_operand.vmem [shape: f32[1,64], index: 2, kind: input, shape index: {}]   ;;  %s4069_s3 = inlined_call_operand.vmem [shape: f32[1,64], index: 3, kind: input, shape index: {}]   ;;  %s4070_s4 = inlined_call_operand.vmem [shape: f32[1,64], index: 4, kind: input, shape index: {}]   ;;  %s4071_s5 = inlined_call_operand.vmem [shape: bf16[512,64], index: 5, kind: output, shape index: {}]  }
   0x1   :  { %v2100_v0 = vld [vmem:[%s4066_s1] sm:$0xff]   ;;  %v2101_v1 = vld [vmem:[%s4066_s1 + $0x8] sm:$0xff]   ;;  %v2102_v3 = vld [vmem:[%s4066_s1 + $0x10] sm:$0xff]  }
   0x2   :  { %2024 = vmatprep.subr.bf16.mxu0 %v2100_v0  ;;  %2094 = vmatprep.subr.bf16.mxu1 %v2100_v0  ;;  %v2103_v2 = vld [vmem:[%s4067_s0] sm:$0xff]   ;;  %v2104_v4 = vld [vmem:[%s4067_s0 + $0x8] sm:$0xff]   ;;  %v2105_v5 = vld [vmem:[%s4067_s0 + $0x10] sm:$0xff]  }
   0x3   :  { %2025 = vmatpush3.bf16.msra.mxu0 %v2100_v0  ;;  %2097 = vmatpush3.bf16.msra.mxu1 %v2100_v0  ;;  %v2106_v6 = vld [vmem:[%s4067_s0 + $0x18] sm:$0xff]   ;;  %v2107_v7 = vld [vmem:[%s4067_s0 + $0x20] sm:$0xff]   ;;  %v2120_v9 = vld [vmem:[%s4067_s0 + $0x88] sm:$0xff]  }
   0x4   :  { %2026 = vmatprep.subr.bf16.mxu0 %v2101_v1  ;;  %2095 = vmatprep.subr.bf16.mxu1 %v2101_v1  ;;  %v2119_v8 = vld [vmem:[%s4067_s0 + $0x80] sm:$0xff]   ;;  %v2121_v10 = vld [vmem:[%s4067_s0 + $0x90] sm:$0xff]   ;;  %v2108_v11 = vld [vmem:[%s4067_s0 + $0x28] sm:$0xff]  }
   0x5   :  { %2030 = vmatprep.mubr.msk.bf16.mxu0 %vm276_vm0, %v2103_v2  ;;  %2062 = vmatprep.mubr.msk.bf16.mxu1 %vm276_vm0, %v2119_v8  ;;  %v2109_v12 = vld [vmem:[%s4067_s0 + $0x30] sm:$0xff]   ;;  %v2122_v13 = vld [vmem:[%s4067_s0 + $0x98] sm:$0xff]   ;;  %v2123_v14 = vld [vmem:[%s4067_s0 + $0xa0] sm:$0xff]  }
   0x6   :  { %v2110_v15 = vld [vmem:[%s4067_s0 + $0x38] sm:$0xff]   ;;  %v2124_v16 = vld [vmem:[%s4067_s0 + $0xa8] sm:$0xff]   ;;  %v2111_v17 = vld [vmem:[%s4067_s0 + $0x40] sm:$0xff]  }
   0x7   :  { %2027 = vmatpush3.bf16.msra.mxu0 %v2101_v1  ;;  %2098 = vmatpush3.bf16.msra.mxu1 %v2101_v1  ;;  %v2125_v18 = vld [vmem:[%s4067_s0 + $0xb0] sm:$0xff]   ;;  %v2112_v19 = vld [vmem:[%s4067_s0 + $0x48] sm:$0xff]   ;;  %v2126_v20 = vld [vmem:[%s4067_s0 + $0xb8] sm:$0xff]  }
   0x8   :  { %2028 = vmatprep.subr.bf16.mxu0 %v2102_v3  ;;  %2096 = vmatprep.subr.bf16.mxu1 %v2102_v3  ;;  %v2113_v21 = vld [vmem:[%s4067_s0 + $0x50] sm:$0xff]   ;;  %v2127_v22 = vld [vmem:[%s4067_s0 + $0xc0] sm:$0xff]   ;;  %v2114_v23 = vld [vmem:[%s4067_s0 + $0x58] sm:$0xff]  }
   0x9   :  { %v2128_v24 = vld [vmem:[%s4067_s0 + $0xc8] sm:$0xff]   ;;  %v2115_v25 = vld [vmem:[%s4067_s0 + $0x60] sm:$0xff]   ;;  %v2129_v26 = vld [vmem:[%s4067_s0 + $0xd0] sm:$0xff]  }
   0xa   :  { %v2116_v27 = vld [vmem:[%s4067_s0 + $0x68] sm:$0xff]   ;;  %v2130_v28 = vld [vmem:[%s4067_s0 + $0xd8] sm:$0xff]   ;;  %v2117_v29 = vld [vmem:[%s4067_s0 + $0x70] sm:$0xff]  }
   0xb   :  { %2029 = vmatpush3.bf16.msra.mxu0 %v2102_v3  ;;  %2099 = vmatpush3.bf16.msra.mxu1 %v2102_v3  ;;  %v2131_v30 = vld [vmem:[%s4067_s0 + $0xe0] sm:$0xff]   ;;  %v2118_v31 = vld [vmem:[%s4067_s0 + $0x78] sm:$0xff]   ;;  %v2132_v32 = vld [vmem:[%s4067_s0 + $0xe8] sm:$0xff]  }
   0xc   :  { %v2133_v33 = vld [vmem:[%s4067_s0 + $0xf0] sm:$0xff]   ;;  %v2134_v34 = vld [vmem:[%s4067_s0 + $0xf8] sm:$0xff]   ;;  %v2324_v35 = vld [vmem:[%s4068_s2] ss:$0 sm:$0xff] }
   0xe   :  { %2031 = vmatmul.mubr.msk.bf16.vlgmr.msra.gmra.mrb[0].mxu0 %vm276_vm0, %v2104_v4  ;;  %2063 = vmatmul.mubr.msk.bf16.vlgmr.msra.gmra.mrb[0].mxu1 %vm276_vm0, %v2120_v9 }
   0xf   :  { %2034 = vmatprep.mubr.msk.bf16.mxu0 %vm276_vm0, %v2105_v5  ;;  %2066 = vmatprep.mubr.msk.bf16.mxu1 %vm276_vm0, %v2121_v10 }
  0x16   :  { %2035 = vmatmul.mubr.msk.bf16.gmra.mrb[4].mxu0 %vm276_vm0, %v2106_v6  ;;  %2067 = vmatmul.mubr.msk.bf16.gmra.mrb[4].mxu1 %vm276_vm0, %v2122_v13 }
  0x17   :  { %2038 = vmatprep.mubr.msk.bf16.mxu0 %vm276_vm0, %v2107_v7  ;;  %2070 = vmatprep.mubr.msk.bf16.mxu1 %vm276_vm0, %v2123_v14 }
  0x1e   :  { %2039 = vmatmul.mubr.msk.bf16.gmra.mrb[8].mxu0 %vm276_vm0, %v2108_v11  ;;  %2071 = vmatmul.mubr.msk.bf16.gmra.mrb[8].mxu1 %vm276_vm0, %v2124_v16 }
  0x1f   :  { %2042 = vmatprep.mubr.msk.bf16.mxu0 %vm276_vm0, %v2109_v12  ;;  %2074 = vmatprep.mubr.msk.bf16.mxu1 %vm276_vm0, %v2125_v18 }
  0x26   :  { %2043 = vmatmul.mubr.msk.bf16.gmra.mrb[12].mxu0 %vm276_vm0, %v2110_v15  ;;  %2075 = vmatmul.mubr.msk.bf16.gmra.mrb[12].mxu1 %vm276_vm0, %v2126_v20 }
  0x27   :  { %2046 = vmatprep.mubr.msk.bf16.mxu0 %vm276_vm0, %v2111_v17  ;;  %2078 = vmatprep.mubr.msk.bf16.mxu1 %vm276_vm0, %v2127_v22 }
  0x2e   :  { %2047 = vmatmul.mubr.msk.bf16.gmra.mrb[16].mxu0 %vm276_vm0, %v2112_v19  ;;  %2079 = vmatmul.mubr.msk.bf16.gmra.mrb[16].mxu1 %vm276_vm0, %v2128_v24 }
  0x2f   :  { %2050 = vmatprep.mubr.msk.bf16.mxu0 %vm276_vm0, %v2113_v21  ;;  %2082 = vmatprep.mubr.msk.bf16.mxu1 %vm276_vm0, %v2129_v26 }
  0x36   :  { %2051 = vmatmul.mubr.msk.bf16.gmra.mrb[20].mxu0 %vm276_vm0, %v2114_v23  ;;  %2083 = vmatmul.mubr.msk.bf16.gmra.mrb[20].mxu1 %vm276_vm0, %v2130_v28 }
  0x37   :  { %2054 = vmatprep.mubr.msk.bf16.mxu0 %vm276_vm0, %v2115_v25  ;;  %2086 = vmatprep.mubr.msk.bf16.mxu1 %vm276_vm0, %v2131_v30 }
  0x3e   :  { %2055 = vmatmul.mubr.msk.bf16.gmra.mrb[24].mxu0 %vm276_vm0, %v2116_v27  ;;  %2087 = vmatmul.mubr.msk.bf16.gmra.mrb[24].mxu1 %vm276_vm0, %v2132_v32 }
  0x3f   :  { %2058 = vmatprep.mubr.msk.bf16.mxu0 %vm276_vm0, %v2117_v29  ;;  %2090 = vmatprep.mubr.msk.bf16.mxu1 %vm276_vm0, %v2133_v33 }
  0x46   :  { %2059 = vmatmul.mubr.msk.bf16.gmra.mrb[28].mxu0 %vm276_vm0, %v2118_v31  ;;  %2091 = vmatmul.mubr.msk.bf16.gmra.mrb[28].mxu1 %vm276_vm0, %v2134_v34 }
  0xe1   :  { %v2032_v36 = vpop.f32.mrb[0].mxu0  ;;  %v2064_v45 = vpop.f32.mrb[0].mxu1 }
  0xe2   :  { %v416_v37 = vadd.f32 %v2032_v36, %v2324_v35  ;;  %v407_v38 = vpop.f32.mrb[1].mxu0  ;;  %v544_v48 = vadd.f32 %v2064_v45, %v2324_v35  ;;  %v535_v49 = vpop.f32.mrb[1].mxu1 }
  0xe3   :  { %v408_v39 = vadd.f32 %v2324_v35, %v407_v38  ;;  %v2033_v40 = vpop.f32.mrb[2].mxu0  ;;  %v536_v52 = vadd.f32 %v2324_v35, %v535_v49  ;;  %v2065_v53 = vpop.f32.mrb[2].mxu1 }
  0xe4   :  { %667 = vst.msk [vmem:[#allocation2 + $0x10] sm:$0xff] %vm664_vm1, %v416_v37  ;;  %v419_v41 = vadd.f32 %v2033_v40, %v2324_v35  ;;  %v410_v42 = vpop.f32.mrb[3].mxu0  ;;  %699 = vst.msk [vmem:[#allocation2 + $0x110] sm:$0xff] %vm664_vm1, %v544_v48  ;;  %v547_v57 = vadd.f32 %v2065_v53, %v2324_v35  ;;  %v538_v58 = vpop.f32.mrb[3].mxu1 }
  0xe5   :  { %665 = vst.msk [vmem:[#allocation2] sm:$0xff] %vm664_vm1, %v408_v39  ;;  %v411_v43 = vadd.f32 %v2324_v35, %v410_v42  ;;  %697 = vst.msk [vmem:[#allocation2 + $0x100] sm:$0xff] %vm664_vm1, %v536_v52  ;;  %v539_v60 = vadd.f32 %v2324_v35, %v538_v58 }
  0xe6   :  { %668 = vst.msk [vmem:[#allocation2 + $0x18] sm:$0xff] %vm664_vm1, %v419_v41  ;;  %700 = vst.msk [vmem:[#allocation2 + $0x118] sm:$0xff] %vm664_vm1, %v547_v57 }
  0xe7   :  { %666 = vst.msk [vmem:[#allocation2 + $0x8] sm:$0xff] %vm664_vm1, %v411_v43  ;;  %698 = vst.msk [vmem:[#allocation2 + $0x108] sm:$0xff] %vm664_vm1, %v539_v60 }
  0xe9   :  { %v2036_v44 = vpop.f32.mrb[4].mxu0  ;;  %v2068_v5 = vpop.f32.mrb[4].mxu1 }
  0xea   :  { %v432_v46 = vadd.f32 %v2036_v44, %v2324_v35  ;;  %v423_v47 = vpop.f32.mrb[5].mxu0  ;;  %v560_v9 = vadd.f32 %v2068_v5, %v2324_v35  ;;  %v551_v10 = vpop.f32.mrb[5].mxu1 }
  0xeb   :  { %v424_v50 = vadd.f32 %v2324_v35, %v423_v47  ;;  %v2037_v51 = vpop.f32.mrb[6].mxu0  ;;  %v2348_v61 = vld [vmem:[#allocation2 + $0x10] sm:$0xff]  ;;  %v552_v14 = vadd.f32 %v2324_v35, %v551_v10  ;;  %v2069_v15 = vpop.f32.mrb[6].mxu1 }
  0xec   :  { %v2338_v54 = vld [vmem:[#allocation2] sm:$0xff]  ;;  %671 = vst.msk [vmem:[#allocation2 + $0x30] sm:$0xff] %vm664_vm1, %v432_v46  ;;  %v435_v55 = vadd.f32 %v2037_v51, %v2324_v35  ;;  %v426_v56 = vpop.f32.mrb[7].mxu0  ;;  %v800_v3 = vsel %vm664_vm1, %v2348_v61, 0.0  ;;  %703 = vst.msk [vmem:[#allocation2 + $0x130] sm:$0xff] %vm664_vm1, %v560_v9  ;;  %v554_v20 = vpop.f32.mrb[7].mxu1  ;;  %v563_v23 = vadd.f32 %v2069_v15, %v2324_v35 }
  0xed   :  { %669 = vst.msk [vmem:[#allocation2 + $0x20] sm:$0xff] %vm664_vm1, %v424_v50  ;;  %v427_v59 = vadd.f32 %v2324_v35, %v426_v56  ;;  %v797_v63 = vsel %vm664_vm1, %v2338_v54, 0.0  ;;  %v2360_v1 = vld [vmem:[#allocation2 + $0x18] sm:$0xff]  ;;  %701 = vst.msk [vmem:[#allocation2 + $0x120] sm:$0xff] %vm664_vm1, %v552_v14  ;;  %v555_v27 = vadd.f32 %v2324_v35, %v554_v20 }
  0xee   :  { %v2350_v62 = vld [vmem:[#allocation2 + $0x8] sm:$0xff]  ;;  %672 = vst.msk [vmem:[#allocation2 + $0x38] sm:$0xff] %vm664_vm1, %v435_v55  ;;  %v802_v11 = vsel %vm664_vm1, %v2360_v1, 0.0  ;;  %704 = vst.msk [vmem:[#allocation2 + $0x138] sm:$0xff] %vm664_vm1, %v563_v23 }
  0xef   :  { %v798_v0 = vsel %vm664_vm1, %v2350_v62, 0.0  ;;  %670 = vst.msk [vmem:[#allocation2 + $0x28] sm:$0xff] %vm664_vm1, %v427_v59  ;;  %702 = vst.msk [vmem:[#allocation2 + $0x128] sm:$0xff] %vm664_vm1, %v555_v27 }
  0xf0   :  { %v799_v2 = vadd.f32 %v798_v0, %v797_v63 }
  0xf1   :  { %v2040_v4 = vpop.f32.mrb[8].mxu0  ;;  %v2072_v33 = vpop.f32.mrb[8].mxu1 }
  0xf2   :  { %v801_v6 = vadd.f32 %v800_v3, %v799_v2  ;;  %v448_v7 = vadd.f32 %v2040_v4, %v2324_v35  ;;  %v439_v8 = vpop.f32.mrb[9].mxu0  ;;  %v576_v38 = vadd.f32 %v2072_v33, %v2324_v35  ;;  %v567_v39 = vpop.f32.mrb[9].mxu1 }
  0xf3   :  { %v440_v12 = vadd.f32 %v2324_v35, %v439_v8  ;;  %v2041_v13 = vpop.f32.mrb[10].mxu0  ;;  %v2381_v24 = vld [vmem:[#allocation2 + $0x30] sm:$0xff]  ;;  %v568_v43 = vadd.f32 %v2324_v35, %v567_v39  ;;  %v2073_v44 = vpop.f32.mrb[10].mxu1 }
  0xf4   :  { %v2370_v16 = vld [vmem:[#allocation2 + $0x20] sm:$0xff]  ;;  %v803_v17 = vadd.f32 %v802_v11, %v801_v6  ;;  %675 = vst.msk [vmem:[#allocation2 + $0x50] sm:$0xff] %vm664_vm1, %v448_v7  ;;  %v451_v18 = vadd.f32 %v2041_v13, %v2324_v35  ;;  %v442_v19 = vpop.f32.mrb[11].mxu0  ;;  %v808_v31 = vsel %vm664_vm1, %v2381_v24, 0.0  ;;  %707 = vst.msk [vmem:[#allocation2 + $0x150] sm:$0xff] %vm664_vm1, %v576_v38  ;;  %v570_v49 = vpop.f32.mrb[11].mxu1  ;;  %v579_v52 = vadd.f32 %v2073_v44, %v2324_v35 }
  0xf5   :  { %v804_v21 = vsel %vm664_vm1, %v2370_v16, 0.0  ;;  %673 = vst.msk [vmem:[#allocation2 + $0x40] sm:$0xff] %vm664_vm1, %v440_v12  ;;  %v443_v22 = vadd.f32 %v2324_v35, %v442_v19  ;;  %v2391_v29 = vld [vmem:[#allocation2 + $0x38] sm:$0xff]  ;;  %705 = vst.msk [vmem:[#allocation2 + $0x140] sm:$0xff] %vm664_vm1, %v568_v43  ;;  %v571_v57 = vadd.f32 %v2324_v35, %v570_v49 }
  0xf6   :  { %v805_v25 = vadd.f32 %v804_v21, %v803_v17  ;;  %v2383_v26 = vld [vmem:[#allocation2 + $0x28] sm:$0xff]  ;;  %676 = vst.msk [vmem:[#allocation2 + $0x58] sm:$0xff] %vm664_vm1, %v451_v18  ;;  %v810_v40 = vsel %vm664_vm1, %v2391_v29, 0.0  ;;  %708 = vst.msk [vmem:[#allocation2 + $0x158] sm:$0xff] %vm664_vm1, %v579_v52 }
  0xf7   :  { %v806_v28 = vsel %vm664_vm1, %v2383_v26, 0.0  ;;  %674 = vst.msk [vmem:[#allocation2 + $0x48] sm:$0xff] %vm664_vm1, %v443_v22  ;;  %706 = vst.msk [vmem:[#allocation2 + $0x148] sm:$0xff] %vm664_vm1, %v571_v57 }
  0xf8   :  { %v807_v30 = vadd.f32 %v806_v28, %v805_v25 }
  0xf9   :  { %v2044_v32 = vpop.f32.mrb[12].mxu0  ;;  %v2076_v2 = vpop.f32.mrb[12].mxu1 }
  0xfa   :  { %v809_v34 = vadd.f32 %v808_v31, %v807_v30  ;;  %v464_v36 = vadd.f32 %v2044_v32, %v2324_v35  ;;  %v455_v37 = vpop.f32.mrb[13].mxu0  ;;  %v592_v6 = vadd.f32 %v2076_v2, %v2324_v35  ;;  %v583_v7 = vpop.f32.mrb[13].mxu1 }
  0xfb   :  { %v456_v41 = vadd.f32 %v2324_v35, %v455_v37  ;;  %v2045_v42 = vpop.f32.mrb[14].mxu0  ;;  %v2413_v53 = vld [vmem:[#allocation2 + $0x50] sm:$0xff]  ;;  %v584_v11 = vadd.f32 %v2324_v35, %v583_v7  ;;  %v2077_v12 = vpop.f32.mrb[14].mxu1 }
  0xfc   :  { %v2402_v45 = vld [vmem:[#allocation2 + $0x40] sm:$0xff]  ;;  %v811_v46 = vadd.f32 %v810_v40, %v809_v34  ;;  %679 = vst.msk [vmem:[#allocation2 + $0x70] sm:$0xff] %vm664_vm1, %v464_v36  ;;  %v467_v47 = vadd.f32 %v2045_v42, %v2324_v35  ;;  %v458_v48 = vpop.f32.mrb[15].mxu0  ;;  %v816_v63 = vsel %vm664_vm1, %v2413_v53, 0.0  ;;  %711 = vst.msk [vmem:[#allocation2 + $0x170] sm:$0xff] %vm664_vm1, %v592_v6  ;;  %v586_v18 = vpop.f32.mrb[15].mxu1  ;;  %v595_v21 = vadd.f32 %v2077_v12, %v2324_v35 }
  0xfd   :  { %v812_v50 = vsel %vm664_vm1, %v2402_v45, 0.0  ;;  %677 = vst.msk [vmem:[#allocation2 + $0x60] sm:$0xff] %vm664_vm1, %v456_v41  ;;  %v459_v51 = vadd.f32 %v2324_v35, %v458_v48  ;;  %v2423_v59 = vld [vmem:[#allocation2 + $0x58] sm:$0xff]  ;;  %709 = vst.msk [vmem:[#allocation2 + $0x160] sm:$0xff] %vm664_vm1, %v584_v11  ;;  %v587_v27 = vadd.f32 %v2324_v35, %v586_v18 }
  0xfe   :  { %v813_v55 = vadd.f32 %v812_v50, %v811_v46  ;;  %v2415_v56 = vld [vmem:[#allocation2 + $0x48] sm:$0xff]  ;;  %680 = vst.msk [vmem:[#allocation2 + $0x78] sm:$0xff] %vm664_vm1, %v467_v47  ;;  %v818_v8 = vsel %vm664_vm1, %v2423_v59, 0.0  ;;  %712 = vst.msk [vmem:[#allocation2 + $0x178] sm:$0xff] %vm664_vm1, %v595_v21 }
  0xff   :  { %v814_v58 = vsel %vm664_vm1, %v2415_v56, 0.0  ;;  %678 = vst.msk [vmem:[#allocation2 + $0x68] sm:$0xff] %vm664_vm1, %v459_v51  ;;  %710 = vst.msk [vmem:[#allocation2 + $0x168] sm:$0xff] %vm664_vm1, %v587_v27 }
 0x100   :  { %v815_v60 = vadd.f32 %v814_v58, %v813_v55 }
 0x101   :  { %v2048_v0 = vpop.f32.mrb[16].mxu0  ;;  %v2080_v34 = vpop.f32.mrb[16].mxu1 }
 0x102   :  { %v817_v3 = vadd.f32 %v816_v63, %v815_v60  ;;  %v480_v4 = vadd.f32 %v2048_v0, %v2324_v35  ;;  %v471_v5 = vpop.f32.mrb[17].mxu0  ;;  %v608_v39 = vadd.f32 %v2080_v34, %v2324_v35  ;;  %v599_v40 = vpop.f32.mrb[17].mxu1 }
 0x103   :  { %v472_v9 = vadd.f32 %v2324_v35, %v471_v5  ;;  %v2049_v10 = vpop.f32.mrb[18].mxu0  ;;  %v2445_v22 = vld [vmem:[#allocation2 + $0x70] sm:$0xff]  ;;  %v600_v44 = vadd.f32 %v2324_v35, %v599_v40  ;;  %v2081_v46 = vpop.f32.mrb[18].mxu1 }
 0x104   :  { %v2434_v13 = vld [vmem:[#allocation2 + $0x60] sm:$0xff]  ;;  %v819_v14 = vadd.f32 %v818_v8, %v817_v3  ;;  %683 = vst.msk [vmem:[#allocation2 + $0x90] sm:$0xff] %vm664_vm1, %v480_v4  ;;  %v483_v15 = vadd.f32 %v2049_v10, %v2324_v35  ;;  %v474_v17 = vpop.f32.mrb[19].mxu0  ;;  %v824_v32 = vsel %vm664_vm1, %v2445_v22, 0.0  ;;  %715 = vst.msk [vmem:[#allocation2 + $0x190] sm:$0xff] %vm664_vm1, %v608_v39  ;;  %v602_v51 = vpop.f32.mrb[19].mxu1  ;;  %v611_v57 = vadd.f32 %v2081_v46, %v2324_v35 }
 0x105   :  { %v820_v19 = vsel %vm664_vm1, %v2434_v13, 0.0  ;;  %681 = vst.msk [vmem:[#allocation2 + $0x80] sm:$0xff] %vm664_vm1, %v472_v9  ;;  %v475_v20 = vadd.f32 %v2324_v35, %v474_v17  ;;  %v2455_v30 = vld [vmem:[#allocation2 + $0x78] sm:$0xff]  ;;  %713 = vst.msk [vmem:[#allocation2 + $0x180] sm:$0xff] %vm664_vm1, %v600_v44  ;;  %v603_v0 = vadd.f32 %v2324_v35, %v602_v51 }
 0x106   :  { %v821_v23 = vadd.f32 %v820_v19, %v819_v14  ;;  %v2447_v25 = vld [vmem:[#allocation2 + $0x68] sm:$0xff]  ;;  %684 = vst.msk [vmem:[#allocation2 + $0x98] sm:$0xff] %vm664_vm1, %v483_v15  ;;  %v826_v41 = vsel %vm664_vm1, %v2455_v30, 0.0  ;;  %716 = vst.msk [vmem:[#allocation2 + $0x198] sm:$0xff] %vm664_vm1, %v611_v57 }
 0x107   :  { %v822_v28 = vsel %vm664_vm1, %v2447_v25, 0.0  ;;  %682 = vst.msk [vmem:[#allocation2 + $0x88] sm:$0xff] %vm664_vm1, %v475_v20  ;;  %714 = vst.msk [vmem:[#allocation2 + $0x188] sm:$0xff] %vm664_vm1, %v603_v0 }
 0x108   :  { %v823_v31 = vadd.f32 %v822_v28, %v821_v23 }
 0x109   :  { %v2052_v33 = vpop.f32.mrb[20].mxu0  ;;  %v2084_v7 = vpop.f32.mrb[20].mxu1 }
 0x10a   :  { %v825_v36 = vadd.f32 %v824_v32, %v823_v31  ;;  %v496_v37 = vadd.f32 %v2052_v33, %v2324_v35  ;;  %v487_v38 = vpop.f32.mrb[21].mxu0  ;;  %v624_v11 = vadd.f32 %v2084_v7, %v2324_v35  ;;  %v615_v12 = vpop.f32.mrb[21].mxu1 }
 0x10b   :  { %v488_v42 = vadd.f32 %v2324_v35, %v487_v38  ;;  %v2053_v43 = vpop.f32.mrb[22].mxu0  ;;  %v2477_v58 = vld [vmem:[#allocation2 + $0x90] sm:$0xff]  ;;  %v616_v18 = vadd.f32 %v2324_v35, %v615_v12  ;;  %v2085_v19 = vpop.f32.mrb[22].mxu1 }
 0x10c   :  { %v2466_v47 = vld [vmem:[#allocation2 + $0x80] sm:$0xff]  ;;  %v827_v48 = vadd.f32 %v826_v41, %v825_v36  ;;  %687 = vst.msk [vmem:[#allocation2 + $0xb0] sm:$0xff] %vm664_vm1, %v496_v37  ;;  %v499_v49 = vadd.f32 %v2053_v43, %v2324_v35  ;;  %v490_v50 = vpop.f32.mrb[23].mxu0  ;;  %v832_v5 = vsel %vm664_vm1, %v2477_v58, 0.0  ;;  %719 = vst.msk [vmem:[#allocation2 + $0x1b0] sm:$0xff] %vm664_vm1, %v624_v11  ;;  %v618_v28 = vpop.f32.mrb[23].mxu1  ;;  %v627_v33 = vadd.f32 %v2085_v19, %v2324_v35 }
 0x10d   :  { %v828_v52 = vsel %vm664_vm1, %v2466_v47, 0.0  ;;  %685 = vst.msk [vmem:[#allocation2 + $0xa0] sm:$0xff] %vm664_vm1, %v488_v42  ;;  %v491_v55 = vadd.f32 %v2324_v35, %v490_v50  ;;  %v2487_v3 = vld [vmem:[#allocation2 + $0x98] sm:$0xff]  ;;  %717 = vst.msk [vmem:[#allocation2 + $0x1a0] sm:$0xff] %vm664_vm1, %v616_v18  ;;  %v619_v38 = vadd.f32 %v2324_v35, %v618_v28 }
 0x10e   :  { %v829_v60 = vadd.f32 %v828_v52, %v827_v48  ;;  %v2479_v63 = vld [vmem:[#allocation2 + $0x88] sm:$0xff]  ;;  %688 = vst.msk [vmem:[#allocation2 + $0xb8] sm:$0xff] %vm664_vm1, %v499_v49  ;;  %v834_v14 = vsel %vm664_vm1, %v2487_v3, 0.0  ;;  %720 = vst.msk [vmem:[#allocation2 + $0x1b8] sm:$0xff] %vm664_vm1, %v627_v33 }
 0x10f   :  { %v830_v2 = vsel %vm664_vm1, %v2479_v63, 0.0  ;;  %686 = vst.msk [vmem:[#allocation2 + $0xa8] sm:$0xff] %vm664_vm1, %v491_v55  ;;  %718 = vst.msk [vmem:[#allocation2 + $0x1a8] sm:$0xff] %vm664_vm1, %v619_v38 }
 0x110   :  { %v831_v4 = vadd.f32 %v830_v2, %v829_v60 }
 0x111   :  { %v2056_v6 = vpop.f32.mrb[24].mxu0  ;;  %v2088_v44 = vpop.f32.mrb[24].mxu1 }
 0x112   :  { %v833_v8 = vadd.f32 %v832_v5, %v831_v4  ;;  %v512_v9 = vadd.f32 %v2056_v6, %v2324_v35  ;;  %v503_v10 = vpop.f32.mrb[25].mxu0  ;;  %v640_v50 = vadd.f32 %v2088_v44, %v2324_v35  ;;  %v631_v51 = vpop.f32.mrb[25].mxu1 }
 0x113   :  { %v504_v15 = vadd.f32 %v2324_v35, %v503_v10  ;;  %v2057_v17 = vpop.f32.mrb[26].mxu0  ;;  %v2509_v34 = vld [vmem:[#allocation2 + $0xb0] sm:$0xff]  ;;  %v632_v60 = vadd.f32 %v2324_v35, %v631_v51  ;;  %v2089_v0 = vpop.f32.mrb[26].mxu1 }
 0x114   :  { %v2498_v20 = vld [vmem:[#allocation2 + $0xa0] sm:$0xff]  ;;  %v835_v21 = vadd.f32 %v834_v14, %v833_v8  ;;  %691 = vst.msk [vmem:[#allocation2 + $0xd0] sm:$0xff] %vm664_vm1, %v512_v9  ;;  %v515_v23 = vadd.f32 %v2057_v17, %v2324_v35  ;;  %v506_v27 = vpop.f32.mrb[27].mxu0  ;;  %v840_v42 = vsel %vm664_vm1, %v2509_v34, 0.0  ;;  %723 = vst.msk [vmem:[#allocation2 + $0x1d0] sm:$0xff] %vm664_vm1, %v640_v50  ;;  %v634_v7 = vpop.f32.mrb[27].mxu1  ;;  %v643_v10 = vadd.f32 %v2089_v0, %v2324_v35 }
 0x115   :  { %v836_v31 = vsel %vm664_vm1, %v2498_v20, 0.0  ;;  %689 = vst.msk [vmem:[#allocation2 + $0xc0] sm:$0xff] %vm664_vm1, %v504_v15  ;;  %v507_v32 = vadd.f32 %v2324_v35, %v506_v27  ;;  %v2519_v40 = vld [vmem:[#allocation2 + $0xb8] sm:$0xff]  ;;  %721 = vst.msk [vmem:[#allocation2 + $0x1c0] sm:$0xff] %vm664_vm1, %v632_v60  ;;  %v635_v15 = vadd.f32 %v2324_v35, %v634_v7 }
 0x116   :  { %v837_v36 = vadd.f32 %v836_v31, %v835_v21  ;;  %v2511_v37 = vld [vmem:[#allocation2 + $0xa8] sm:$0xff]  ;;  %692 = vst.msk [vmem:[#allocation2 + $0xd8] sm:$0xff] %vm664_vm1, %v515_v23  ;;  %v842_v52 = vsel %vm664_vm1, %v2519_v40, 0.0  ;;  %724 = vst.msk [vmem:[#allocation2 + $0x1d8] sm:$0xff] %vm664_vm1, %v643_v10 }
 0x117   :  { %v838_v39 = vsel %vm664_vm1, %v2511_v37, 0.0  ;;  %690 = vst.msk [vmem:[#allocation2 + $0xc8] sm:$0xff] %vm664_vm1, %v507_v32  ;;  %722 = vst.msk [vmem:[#allocation2 + $0x1c8] sm:$0xff] %vm664_vm1, %v635_v15 }
 0x118   :  { %v839_v41 = vadd.f32 %v838_v39, %v837_v36 }
 0x119   :  { %v2060_v43 = vpop.f32.mrb[28].mxu0  ;;  %v2092_v23 = vpop.f32.mrb[28].mxu1 }
 0x11a   :  { %v841_v46 = vadd.f32 %v840_v42, %v839_v41  ;;  %v528_v48 = vadd.f32 %v2060_v43, %v2324_v35  ;;  %v519_v49 = vpop.f32.mrb[29].mxu0  ;;  %v656_v28 = vadd.f32 %v2092_v23, %v2324_v35  ;;  %v647_v31 = vpop.f32.mrb[29].mxu1 }
 0x11b   :  { %v520_v55 = vadd.f32 %v2324_v35, %v519_v49  ;;  %v2061_v57 = vpop.f32.mrb[30].mxu0  ;;  %v2541_v11 = vld [vmem:[#allocation2 + $0xd0] sm:$0xff]  ;;  %v648_v33 = vadd.f32 %v2324_v35, %v647_v31  ;;  %v2093_v36 = vpop.f32.mrb[30].mxu1 }
 0x11c   :  { %v2530_v2 = vld [vmem:[#allocation2 + $0xc0] sm:$0xff]  ;;  %v843_v4 = vadd.f32 %v842_v52, %v841_v46  ;;  %695 = vst.msk [vmem:[#allocation2 + $0xf0] sm:$0xff] %vm664_vm1, %v528_v48  ;;  %v531_v5 = vadd.f32 %v2061_v57, %v2324_v35  ;;  %v522_v6 = vpop.f32.mrb[31].mxu0  ;;  %v848_v21 = vsel %vm664_vm1, %v2541_v11, 0.0  ;;  %727 = vst.msk [vmem:[#allocation2 + $0x1f0] sm:$0xff] %vm664_vm1, %v656_v28  ;;  %v659_v41 = vadd.f32 %v2093_v36, %v2324_v35  ;;  %v650_v42 = vpop.f32.mrb[31].mxu1 }
 0x11d   :  { %v844_v8 = vsel %vm664_vm1, %v2530_v2, 0.0  ;;  %693 = vst.msk [vmem:[#allocation2 + $0xe0] sm:$0xff] %vm664_vm1, %v520_v55  ;;  %v523_v9 = vadd.f32 %v2324_v35, %v522_v6  ;;  %v2551_v18 = vld [vmem:[#allocation2 + $0xd8] sm:$0xff]  ;;  %725 = vst.msk [vmem:[#allocation2 + $0x1e0] sm:$0xff] %vm664_vm1, %v648_v33  ;;  %v651_v44 = vadd.f32 %v2324_v35, %v650_v42  ;;  %v2578_v55 = vld [vmem:[#allocation2 + $0x100] sm:$0xff] }
 0x11e   :  { %v845_v12 = vadd.f32 %v844_v8, %v843_v4  ;;  %v2543_v14 = vld [vmem:[#allocation2 + $0xc8] sm:$0xff]  ;;  %696 = vst.msk [vmem:[#allocation2 + $0xf8] sm:$0xff] %vm664_vm1, %v531_v5  ;;  %v850_v32 = vsel %vm664_vm1, %v2551_v18, 0.0  ;;  %728 = vst.msk [vmem:[#allocation2 + $0x1f8] sm:$0xff] %vm664_vm1, %v659_v41  ;;  %v860_v0 = vsel %vm664_vm1, %v2578_v55, 0.0  ;;  %v2588_v6 = vld [vmem:[#allocation2 + $0x110] sm:$0xff] }
 0x11f   :  { %v846_v17 = vsel %vm664_vm1, %v2543_v14, 0.0  ;;  %694 = vst.msk [vmem:[#allocation2 + $0xe8] sm:$0xff] %vm664_vm1, %v523_v9  ;;  %726 = vst.msk [vmem:[#allocation2 + $0x1e8] sm:$0xff] %vm664_vm1, %v651_v44  ;;  %v2586_v5 = vld [vmem:[#allocation2 + $0x108] sm:$0xff]  ;;  %v2592_v9 = vld [vmem:[#allocation2 + $0x118] sm:$0xff]  ;;  %v864_v15 = vsel %vm664_vm1, %v2588_v6, 0.0 }
 0x120   :  { %v847_v19 = vadd.f32 %v846_v17, %v845_v12  ;;  %v862_v8 = vsel %vm664_vm1, %v2586_v5, 0.0  ;;  %v2594_v12 = vld [vmem:[#allocation2 + $0x120] sm:$0xff]  ;;  %v2604_v28 = vld [vmem:[#allocation2 + $0x130] sm:$0xff]  ;;  %v2608_v33 = vld [vmem:[#allocation2 + $0x138] sm:$0xff] }
 0x121   :  { %v872_v41 = vsel %vm664_vm1, %v2604_v28, 0.0 }
 0x122   :  { %v849_v27 = vadd.f32 %v848_v21, %v847_v19  ;;  %v866_v19 = vsel %vm664_vm1, %v2592_v9, 0.0  ;;  %v868_v21 = vsel %vm664_vm1, %v2594_v12, 0.0 }
 0x123   :  { %v2568_v46 = vld [vmem:[#allocation2 + $0xf0] sm:$0xff] }
 0x124   :  { %v2560_v38 = vld [vmem:[#allocation2 + $0xe0] sm:$0xff]  ;;  %v851_v39 = vadd.f32 %v850_v32, %v849_v27  ;;  %v856_v35 = vsel %vm664_vm1, %v2568_v46, 0.0  ;;  %v2602_v27 = vld [vmem:[#allocation2 + $0x128] sm:$0xff] }
 0x125   :  { %v852_v43 = vsel %vm664_vm1, %v2560_v38, 0.0  ;;  %v2576_v51 = vld [vmem:[#allocation2 + $0xf8] sm:$0xff]  ;;  %v870_v32 = vsel %vm664_vm1, %v2602_v27, 0.0 }
 0x126   :  { %v853_v48 = vadd.f32 %v852_v43, %v851_v39  ;;  %v2570_v49 = vld [vmem:[#allocation2 + $0xe8] sm:$0xff]  ;;  %v858_v60 = vsel %vm664_vm1, %v2576_v51, 0.0  ;;  %v2610_v39 = vld [vmem:[#allocation2 + $0x140] sm:$0xff]  ;;  %v874_v43 = vsel %vm664_vm1, %v2608_v33, 0.0 }
 0x127   :  { %v854_v50 = vsel %vm664_vm1, %v2570_v49, 0.0  ;;  %v876_v44 = vsel %vm664_vm1, %v2610_v39, 0.0 }
 0x128   :  { %v855_v52 = vadd.f32 %v854_v50, %v853_v48  ;;  %v2618_v50 = vld [vmem:[#allocation2 + $0x148] sm:$0xff] }
 0x12a   :  { %v857_v57 = vadd.f32 %v856_v35, %v855_v52  ;;  %v2620_v52 = vld [vmem:[#allocation2 + $0x150] sm:$0xff] }
 0x12c   :  { %v859_v4 = vadd.f32 %v858_v60, %v857_v57  ;;  %v878_v57 = vsel %vm664_vm1, %v2618_v50, 0.0  ;;  %v2624_v60 = vld [vmem:[#allocation2 + $0x158] sm:$0xff] }
 0x12e   :  { %v861_v7 = vadd.f32 %v860_v0, %v859_v4  ;;  %v2626_v4 = vld [vmem:[#allocation2 + $0x160] sm:$0xff] }
 0x130   :  { %v863_v10 = vadd.f32 %v862_v8, %v861_v7  ;;  %v880_v7 = vsel %vm664_vm1, %v2620_v52, 0.0 }
 0x132   :  { %v865_v17 = vadd.f32 %v864_v15, %v863_v10  ;;  %v882_v10 = vsel %vm664_vm1, %v2624_v60, 0.0  ;;  %v884_v15 = vsel %vm664_vm1, %v2626_v4, 0.0 }
 0x134   :  { %v867_v23 = vadd.f32 %v866_v19, %v865_v17  ;;  %v2634_v19 = vld [vmem:[#allocation2 + $0x168] sm:$0xff] }
 0x136   :  { %v869_v31 = vadd.f32 %v868_v21, %v867_v23  ;;  %v2636_v21 = vld [vmem:[#allocation2 + $0x170] sm:$0xff] }
 0x138   :  { %v871_v36 = vadd.f32 %v870_v32, %v869_v31  ;;  %v886_v31 = vsel %vm664_vm1, %v2634_v19, 0.0  ;;  %v2640_v32 = vld [vmem:[#allocation2 + $0x178] sm:$0xff] }
 0x13a   :  { %v873_v42 = vadd.f32 %v872_v41, %v871_v36  ;;  %v2642_v41 = vld [vmem:[#allocation2 + $0x180] sm:$0xff] }
 0x13b   :  { %4145 = vst [vmem:[#allocation3_spill] sm:$0xff] %v2642_v41 }
 0x13c   :  { %v875_v48 = vadd.f32 %v874_v43, %v873_v42  ;;  %v888_v42 = vsel %vm664_vm1, %v2636_v21, 0.0 }
 0x13e   :  { %v877_v35 = vadd.f32 %v876_v44, %v875_v48  ;;  %v890_v44 = vsel %vm664_vm1, %v2640_v32, 0.0  ;;  %v892_v48 = vsel %vm664_vm1, %v2642_v41, 0.0 }
 0x140   :  { %v879_v0 = vadd.f32 %v878_v57, %v877_v35  ;;  %v2650_v57 = vld [vmem:[#allocation2 + $0x188] sm:$0xff] }
 0x141   :  { %4146 = vst [vmem:[#allocation4_spill] sm:$0xff] %v2650_v57 }
 0x142   :  { %v881_v8 = vadd.f32 %v880_v7, %v879_v0  ;;  %v2652_v0 = vld [vmem:[#allocation2 + $0x190] sm:$0xff] }
 0x143   :  { %4147 = vst [vmem:[#allocation5_spill] sm:$0xff] %v2652_v0 }
 0x144   :  { %v883_v17 = vadd.f32 %v882_v10, %v881_v8  ;;  %v894_v8 = vsel %vm664_vm1, %v2650_v57, 0.0  ;;  %v2656_v10 = vld [vmem:[#allocation2 + $0x198] sm:$0xff] }
 0x145   :  { %4148 = vst [vmem:[#allocation6_spill] sm:$0xff] %v2656_v10 }
 0x146   :  { %v885_v23 = vadd.f32 %v884_v15, %v883_v17  ;;  %v2658_v17 = vld [vmem:[#allocation2 + $0x1a0] sm:$0xff] }
 0x147   :  { %4149 = vst [vmem:[#allocation7_spill] sm:$0xff] %v2658_v17 }
 0x148   :  { %v887_v36 = vadd.f32 %v886_v31, %v885_v23  ;;  %v896_v23 = vsel %vm664_vm1, %v2652_v0, 0.0  ;;  %v2674_v0 = vld [vmem:[#allocation2 + $0x1c0] sm:$0xff] }
 0x149   :  { %4153 = vst [vmem:[#allocation11_spill] sm:$0xff] %v2674_v0 }
 0x14a   :  { %v889_v43 = vadd.f32 %v888_v42, %v887_v36  ;;  %v898_v36 = vsel %vm664_vm1, %v2656_v10, 0.0  ;;  %v900_v42 = vsel %vm664_vm1, %v2658_v17, 0.0 }
 0x14c   :  { %v891_v35 = vadd.f32 %v890_v44, %v889_v43  ;;  %v2666_v44 = vld [vmem:[#allocation2 + $0x1a8] sm:$0xff] }
 0x14d   :  { %4150 = vst [vmem:[#allocation8_spill] sm:$0xff] %v2666_v44 }
 0x14e   :  { %v893_v7 = vadd.f32 %v892_v48, %v891_v35  ;;  %v2668_v48 = vld [vmem:[#allocation2 + $0x1b0] sm:$0xff] }
 0x14f   :  { %4151 = vst [vmem:[#allocation9_spill] sm:$0xff] %v2668_v48 }
 0x150   :  { %v895_v15 = vadd.f32 %v894_v8, %v893_v7  ;;  %v902_v7 = vsel %vm664_vm1, %v2666_v44, 0.0  ;;  %v2672_v8 = vld [vmem:[#allocation2 + $0x1b8] sm:$0xff] }
 0x151   :  { %4152 = vst [vmem:[#allocation10_spill] sm:$0xff] %v2672_v8 }
 0x152   :  { %v897_v31 = vadd.f32 %v896_v23, %v895_v15  ;;  %v904_v15 = vsel %vm664_vm1, %v2668_v48, 0.0 }
 0x154   :  { %v899_v43 = vadd.f32 %v898_v36, %v897_v31  ;;  %v906_v31 = vsel %vm664_vm1, %v2672_v8, 0.0  ;;  %v908_v36 = vsel %vm664_vm1, %v2674_v0, 0.0  ;;  %v2692_v8 = vld [vmem:[#allocation2 + $0x1e0] sm:$0xff] }
 0x155   :  { %4157 = vst [vmem:[#allocation15_spill] sm:$0xff] %v2692_v8  ;;  %v916_v0 = vsel %vm664_vm1, %v2692_v8, 0.0 }
 0x156   :  { %v901_v35 = vadd.f32 %v900_v42, %v899_v43  ;;  %v2682_v42 = vld [vmem:[#allocation2 + $0x1c8] sm:$0xff]  ;;  %v2684_v43 = vld [vmem:[#allocation2 + $0x1d0] sm:$0xff] }
 0x157   :  { %4154 = vst [vmem:[#allocation12_spill] sm:$0xff] %v2682_v42  ;;  %4155 = vst [vmem:[#allocation13_spill] sm:$0xff] %v2684_v43 }
 0x158   :  { %v903_v57 = vadd.f32 %v902_v7, %v901_v35  ;;  %v910_v35 = vsel %vm664_vm1, %v2682_v42, 0.0  ;;  %v2688_v7 = vld [vmem:[#allocation2 + $0x1d8] sm:$0xff] }
 0x159   :  { %4156 = vst [vmem:[#allocation14_spill] sm:$0xff] %v2688_v7 }
 0x15a   :  { %v905_v23 = vadd.f32 %v904_v15, %v903_v57  ;;  %v912_v57 = vsel %vm664_vm1, %v2684_v43, 0.0 }
 0x15c   :  { %v907_v17 = vadd.f32 %v906_v31, %v905_v23  ;;  %v914_v23 = vsel %vm664_vm1, %v2688_v7, 0.0 }
 0x15e   :  { %v909_v44 = vadd.f32 %v908_v36, %v907_v17  ;;  %v2698_v36 = vld [vmem:[#allocation2 + $0x1e8] sm:$0xff] }
 0x15f   :  { %4158 = vst [vmem:[#allocation16_spill] sm:$0xff] %v2698_v36  ;;  %v918_v42 = vsel %vm664_vm1, %v2698_v36, 0.0 }
 0x160   :  { %v911_v10 = vadd.f32 %v910_v35, %v909_v44  ;;  %v2702_v44 = vld [vmem:[#allocation2 + $0x1f0] sm:$0xff] }
 0x161   :  { %4159 = vst [vmem:[#allocation17_spill] sm:$0xff] %v2702_v44 }
 0x162   :  { %v913_v15 = vadd.f32 %v912_v57, %v911_v10  ;;  %v920_v10 = vsel %vm664_vm1, %v2702_v44, 0.0  ;;  %v2706_v57 = vld [vmem:[#allocation2 + $0x1f8] sm:$0xff] }
 0x163   :  { %4160 = vst [vmem:[#allocation18_spill] sm:$0xff] %v2706_v57 }
 0x164   :  { %v915_v31 = vadd.f32 %v914_v23, %v913_v15  ;;  %v922_v15 = vsel %vm664_vm1, %v2706_v57, 0.0 }
 0x166   :  { %v917_v17 = vadd.f32 %v916_v0, %v915_v31 }
 0x168   :  { %v919_v35 = vadd.f32 %v918_v42, %v917_v17 }
 0x16a   :  { %v921_v43 = vadd.f32 %v920_v10, %v919_v35 }
 0x16c   :  { %v923_v23 = vadd.f32 %v922_v15, %v921_v43 }
 0x16e   :  { %v924_v8 = vrot.slane %v923_v23, 4 }
 0x170   :  { %v925_v0 = vadd.f32 %v924_v8, %v923_v23 }
 0x172   :  { %v926_v31 = vrot.slane %v925_v0, 2 }
 0x174   :  { %v927_v7 = vadd.f32 %v926_v31, %v925_v0 }
 0x176   :  { %v928_v48 = vrot.slane %v927_v7, 1 }
 0x178   :  { %v929_v41 = vadd.f32 %v928_v48, %v927_v7 }
 0x17a   :  { %v2710_v36 = vmul.f32 0.001953125, %v929_v41 }
 0x17c   :  { %v931_v42 = vsub.f32 %v2338_v54, %v2710_v36  ;;  %v932_v17 = vsub.f32 %v2350_v62, %v2710_v36  ;;  %v933_v35 = vsub.f32 %v2348_v61, %v2710_v36  ;;  %v934_v43 = vsub.f32 %v2360_v1, %v2710_v36 }
 0x17d   :  { %v935_v15 = vsub.f32 %v2370_v16, %v2710_v36  ;;  %v936_v41 = vsub.f32 %v2383_v26, %v2710_v36  ;;  %v937_v61 = vsub.f32 %v2381_v24, %v2710_v36  ;;  %v938_v16 = vsub.f32 %v2391_v29, %v2710_v36 }
 0x17e   :  { %v995_v10 = vmul.f32 %v931_v42, %v931_v42  ;;  %v996_v8 = vmul.f32 %v932_v17, %v932_v17  ;;  %v997_v48 = vmul.f32 %v933_v35, %v933_v35  ;;  %v998_v7 = vmul.f32 %v934_v43, %v934_v43 }
 0x17f   :  { %v999_v0 = vmul.f32 %v935_v15, %v935_v15  ;;  %v1000_v42 = vmul.f32 %v936_v41, %v936_v41  ;;  %v939_v35 = vsub.f32 %v2402_v45, %v2710_v36  ;;  %v1001_v43 = vmul.f32 %v937_v61, %v937_v61 }
 0x180   :  { %v1059_v54 = vsel %vm664_vm1, %v995_v10, 0.0  ;;  %v1060_v62 = vsel %vm664_vm1, %v996_v8, 0.0  ;;  %v1062_v1 = vsel %vm664_vm1, %v997_v48, 0.0  ;;  %v1064_v17 = vsel %vm664_vm1, %v998_v7, 0.0 }
 0x181   :  { %v1061_v23 = vadd.f32 %v1060_v62, %v1059_v54  ;;  %v1066_v10 = vsel %vm664_vm1, %v999_v0, 0.0  ;;  %v940_v24 = vsub.f32 %v2415_v56, %v2710_v36  ;;  %v1002_v15 = vmul.f32 %v938_v16, %v938_v16 }
 0x182   :  { %v1068_v48 = vsel %vm664_vm1, %v1000_v42, 0.0  ;;  %v941_v29 = vsub.f32 %v2413_v53, %v2710_v36  ;;  %v1003_v41 = vmul.f32 %v939_v35, %v939_v35  ;;  %v1070_v7 = vsel %vm664_vm1, %v1001_v43, 0.0 }
 0x183   :  { %v1063_v31 = vadd.f32 %v1062_v1, %v1061_v23  ;;  %v942_v45 = vsub.f32 %v2423_v59, %v2710_v36  ;;  %v1004_v23 = vmul.f32 %v940_v24, %v940_v24  ;;  %v1072_v61 = vsel %vm664_vm1, %v1002_v15, 0.0 }
 0x184   :  { %v943_v56 = vsub.f32 %v2434_v13, %v2710_v36  ;;  %v1005_v1 = vmul.f32 %v941_v29, %v941_v29  ;;  %v944_v53 = vsub.f32 %v2447_v25, %v2710_v36  ;;  %v945_v59 = vsub.f32 %v2445_v22, %v2710_v36 }
 0x185   :  { %v1065_v26 = vadd.f32 %v1064_v17, %v1063_v31  ;;  %v1074_v31 = vsel %vm664_vm1, %v1003_v41, 0.0  ;;  %v1006_v42 = vmul.f32 %v942_v45, %v942_v45  ;;  %v1076_v17 = vsel %vm664_vm1, %v1004_v23, 0.0 }
 0x186   :  { %v1007_v35 = vmul.f32 %v943_v56, %v943_v56  ;;  %v1078_v43 = vsel %vm664_vm1, %v1005_v1, 0.0  ;;  %v946_v13 = vsub.f32 %v2455_v30, %v2710_v36  ;;  %v947_v25 = vsub.f32 %v2466_v47, %v2710_v36 }
 0x187   :  { %v1067_v8 = vadd.f32 %v1066_v10, %v1065_v26  ;;  %v1080_v24 = vsel %vm664_vm1, %v1006_v42, 0.0  ;;  %v948_v22 = vsub.f32 %v2479_v63, %v2710_v36  ;;  %v949_v30 = vsub.f32 %v2477_v58, %v2710_v36 }
 0x188   :  { %v1010_v41 = vmul.f32 %v946_v13, %v946_v13  ;;  %v1011_v45 = vmul.f32 %v947_v25, %v947_v25  ;;  %v950_v47 = vsub.f32 %v2487_v3, %v2710_v36 }
 0x189   :  { %v1069_v54 = vadd.f32 %v1068_v48, %v1067_v8  ;;  %v1008_v8 = vmul.f32 %v944_v53, %v944_v53  ;;  %v1009_v48 = vmul.f32 %v945_v59, %v945_v59 }
 0x18a   :  { %v1088_v56 = vsel %vm664_vm1, %v1010_v41, 0.0  ;;  %v1090_v53 = vsel %vm664_vm1, %v1011_v45, 0.0 }
 0x18b   :  { %v1071_v62 = vadd.f32 %v1070_v7, %v1069_v54  ;;  %v1082_v54 = vsel %vm664_vm1, %v1007_v35, 0.0  ;;  %v1084_v7 = vsel %vm664_vm1, %v1008_v8, 0.0  ;;  %v1086_v23 = vsel %vm664_vm1, %v1009_v48, 0.0 }
 0x18d   :  { %v1073_v0 = vadd.f32 %v1072_v61, %v1071_v62 }
 0x18f   :  { %v1075_v16 = vadd.f32 %v1074_v31, %v1073_v0  ;;  %v1012_v0 = vmul.f32 %v948_v22, %v948_v22  ;;  %v951_v31 = vsub.f32 %v2498_v20, %v2710_v36 }
 0x191   :  { %v1077_v26 = vadd.f32 %v1076_v17, %v1075_v16  ;;  %v1013_v16 = vmul.f32 %v949_v30, %v949_v30  ;;  %v952_v17 = vsub.f32 %v2511_v37, %v2710_v36  ;;  %v1092_v59 = vsel %vm664_vm1, %v1012_v0, 0.0 }
 0x193   :  { %v1079_v10 = vadd.f32 %v1078_v43, %v1077_v26  ;;  %v1014_v26 = vmul.f32 %v950_v47, %v950_v47  ;;  %v953_v43 = vsub.f32 %v2509_v34, %v2710_v36  ;;  %v1094_v13 = vsel %vm664_vm1, %v1013_v16, 0.0 }
 0x195   :  { %v1081_v15 = vadd.f32 %v1080_v24, %v1079_v10  ;;  %v1015_v10 = vmul.f32 %v951_v31, %v951_v31  ;;  %v954_v24 = vsub.f32 %v2519_v40, %v2710_v36  ;;  %v1096_v25 = vsel %vm664_vm1, %v1014_v26, 0.0 }
 0x197   :  { %v1083_v29 = vadd.f32 %v1082_v54, %v1081_v15  ;;  %v1016_v15 = vmul.f32 %v952_v17, %v952_v17  ;;  %v955_v54 = vsub.f32 %v2530_v2, %v2710_v36  ;;  %v1098_v22 = vsel %vm664_vm1, %v1015_v10, 0.0 }
 0x199   :  { %v1085_v62 = vadd.f32 %v1084_v7, %v1083_v29  ;;  %v1017_v29 = vmul.f32 %v953_v43, %v953_v43  ;;  %v956_v7 = vsub.f32 %v2543_v14, %v2710_v36  ;;  %v1100_v30 = vsel %vm664_vm1, %v1016_v15, 0.0 }
 0x19b   :  { %v1087_v61 = vadd.f32 %v1086_v23, %v1085_v62  ;;  %v1018_v62 = vmul.f32 %v954_v24, %v954_v24  ;;  %v957_v23 = vsub.f32 %v2541_v11, %v2710_v36  ;;  %v1102_v47 = vsel %vm664_vm1, %v1017_v29, 0.0 }
 0x19d   :  { %v1089_v1 = vadd.f32 %v1088_v56, %v1087_v61  ;;  %v1019_v61 = vmul.f32 %v955_v54, %v955_v54  ;;  %v958_v56 = vsub.f32 %v2551_v18, %v2710_v36  ;;  %v1104_v31 = vsel %vm664_vm1, %v1018_v62, 0.0 }
 0x19f   :  { %v1091_v42 = vadd.f32 %v1090_v53, %v1089_v1  ;;  %v1020_v1 = vmul.f32 %v956_v7, %v956_v7  ;;  %v959_v53 = vsub.f32 %v2560_v38, %v2710_v36  ;;  %v1106_v17 = vsel %vm664_vm1, %v1019_v61, 0.0 }
 0x1a1   :  { %v1093_v35 = vadd.f32 %v1092_v59, %v1091_v42  ;;  %v1021_v42 = vmul.f32 %v957_v23, %v957_v23  ;;  %v960_v59 = vsub.f32 %v2570_v49, %v2710_v36  ;;  %v1108_v43 = vsel %vm664_vm1, %v1020_v1, 0.0 }
 0x1a3   :  { %v1095_v8 = vadd.f32 %v1094_v13, %v1093_v35  ;;  %v1022_v35 = vmul.f32 %v958_v56, %v958_v56  ;;  %v961_v13 = vsub.f32 %v2568_v46, %v2710_v36  ;;  %v1110_v24 = vsel %vm664_vm1, %v1021_v42, 0.0 }
 0x1a5   :  { %v1097_v48 = vadd.f32 %v1096_v25, %v1095_v8  ;;  %v1023_v8 = vmul.f32 %v959_v53, %v959_v53  ;;  %v962_v25 = vsub.f32 %v2576_v51, %v2710_v36  ;;  %v1112_v54 = vsel %vm664_vm1, %v1022_v35, 0.0 }
 0x1a7   :  { %v1099_v41 = vadd.f32 %v1098_v22, %v1097_v48  ;;  %v1024_v48 = vmul.f32 %v960_v59, %v960_v59  ;;  %v963_v22 = vsub.f32 %v2578_v55, %v2710_v36  ;;  %v1114_v7 = vsel %vm664_vm1, %v1023_v8, 0.0 }
 0x1a9   :  { %v1101_v45 = vadd.f32 %v1100_v30, %v1099_v41  ;;  %v1025_v41 = vmul.f32 %v961_v13, %v961_v13  ;;  %v964_v30 = vsub.f32 %v2586_v5, %v2710_v36  ;;  %v1116_v23 = vsel %vm664_vm1, %v1024_v48, 0.0 }
 0x1ab   :  { %v1103_v0 = vadd.f32 %v1102_v47, %v1101_v45  ;;  %v1026_v45 = vmul.f32 %v962_v25, %v962_v25  ;;  %v965_v47 = vsub.f32 %v2588_v6, %v2710_v36  ;;  %v1118_v56 = vsel %vm664_vm1, %v1025_v41, 0.0 }
 0x1ad   :  { %v1105_v16 = vadd.f32 %v1104_v31, %v1103_v0  ;;  %v1027_v0 = vmul.f32 %v963_v22, %v963_v22  ;;  %v966_v31 = vsub.f32 %v2592_v9, %v2710_v36  ;;  %v1120_v53 = vsel %vm664_vm1, %v1026_v45, 0.0 }
 0x1af   :  { %v1107_v26 = vadd.f32 %v1106_v17, %v1105_v16  ;;  %v1028_v16 = vmul.f32 %v964_v30, %v964_v30  ;;  %v967_v17 = vsub.f32 %v2594_v12, %v2710_v36  ;;  %v1122_v59 = vsel %vm664_vm1, %v1027_v0, 0.0 }
 0x1b1   :  { %v1109_v10 = vadd.f32 %v1108_v43, %v1107_v26  ;;  %v1029_v26 = vmul.f32 %v965_v47, %v965_v47  ;;  %v968_v43 = vsub.f32 %v2602_v27, %v2710_v36  ;;  %v1124_v13 = vsel %vm664_vm1, %v1028_v16, 0.0 }
 0x1b3   :  { %v1111_v15 = vadd.f32 %v1110_v24, %v1109_v10  ;;  %v1030_v10 = vmul.f32 %v966_v31, %v966_v31  ;;  %v969_v24 = vsub.f32 %v2604_v28, %v2710_v36  ;;  %v1126_v25 = vsel %vm664_vm1, %v1029_v26, 0.0 }
 0x1b5   :  { %v1113_v29 = vadd.f32 %v1112_v54, %v1111_v15  ;;  %v1031_v15 = vmul.f32 %v967_v17, %v967_v17  ;;  %v970_v54 = vsub.f32 %v2608_v33, %v2710_v36  ;;  %v1128_v22 = vsel %vm664_vm1, %v1030_v10, 0.0 }
 0x1b7   :  { %v1115_v62 = vadd.f32 %v1114_v7, %v1113_v29  ;;  %v1032_v29 = vmul.f32 %v968_v43, %v968_v43  ;;  %v971_v7 = vsub.f32 %v2610_v39, %v2710_v36  ;;  %v1130_v30 = vsel %vm664_vm1, %v1031_v15, 0.0 }
 0x1b9   :  { %v1117_v61 = vadd.f32 %v1116_v23, %v1115_v62  ;;  %v1033_v62 = vmul.f32 %v969_v24, %v969_v24  ;;  %v972_v23 = vsub.f32 %v2618_v50, %v2710_v36  ;;  %v1132_v47 = vsel %vm664_vm1, %v1032_v29, 0.0 }
 0x1bb   :  { %v1119_v1 = vadd.f32 %v1118_v56, %v1117_v61  ;;  %v1034_v61 = vmul.f32 %v970_v54, %v970_v54  ;;  %v973_v56 = vsub.f32 %v2620_v52, %v2710_v36  ;;  %v1134_v31 = vsel %vm664_vm1, %v1033_v62, 0.0 }
 0x1bd   :  { %v1121_v42 = vadd.f32 %v1120_v53, %v1119_v1  ;;  %v1035_v1 = vmul.f32 %v971_v7, %v971_v7  ;;  %v974_v53 = vsub.f32 %v2624_v60, %v2710_v36  ;;  %v1136_v17 = vsel %vm664_vm1, %v1034_v61, 0.0 }
 0x1bf   :  { %v1123_v35 = vadd.f32 %v1122_v59, %v1121_v42  ;;  %v1036_v42 = vmul.f32 %v972_v23, %v972_v23  ;;  %v975_v59 = vsub.f32 %v2626_v4, %v2710_v36  ;;  %v1138_v43 = vsel %vm664_vm1, %v1035_v1, 0.0 }
 0x1c1   :  { %v1125_v8 = vadd.f32 %v1124_v13, %v1123_v35  ;;  %v1037_v35 = vmul.f32 %v973_v56, %v973_v56  ;;  %v976_v13 = vsub.f32 %v2634_v19, %v2710_v36  ;;  %v1140_v24 = vsel %vm664_vm1, %v1036_v42, 0.0 }
 0x1c3   :  { %v1127_v48 = vadd.f32 %v1126_v25, %v1125_v8  ;;  %v1038_v8 = vmul.f32 %v974_v53, %v974_v53  ;;  %v977_v25 = vsub.f32 %v2636_v21, %v2710_v36  ;;  %v1142_v54 = vsel %vm664_vm1, %v1037_v35, 0.0  ;;  %v4163_v53 = vld [vmem:[#allocation5_spill] sm:$0xff]  ;;  %v4164_v35 = vld [vmem:[#allocation6_spill] sm:$0xff] }
 0x1c4   :  { %v981_v42 = vsub.f32 %v4163_v53, %v2710_v36 }
 0x1c5   :  { %v1129_v41 = vadd.f32 %v1128_v22, %v1127_v48  ;;  %v1039_v48 = vmul.f32 %v975_v59, %v975_v59  ;;  %v978_v22 = vsub.f32 %v2640_v32, %v2710_v36  ;;  %v1144_v7 = vsel %vm664_vm1, %v1038_v8, 0.0 }
 0x1c6   :  { %v1041_v23 = vmul.f32 %v977_v25, %v977_v25  ;;  %v1045_v25 = vmul.f32 %v981_v42, %v981_v42 }
 0x1c7   :  { %v1131_v45 = vadd.f32 %v1130_v30, %v1129_v41  ;;  %v1040_v41 = vmul.f32 %v976_v13, %v976_v13  ;;  %v4161_v30 = vld [vmem:[#allocation3_spill] sm:$0xff]  ;;  %v1146_v61 = vsel %vm664_vm1, %v1039_v48, 0.0  ;;  %v1042_v1 = vmul.f32 %v978_v22, %v978_v22 }
 0x1c9   :  { %v1133_v0 = vadd.f32 %v1132_v47, %v1131_v45  ;;  %v979_v45 = vsub.f32 %v4161_v30, %v2710_v36  ;;  %v1152_v13 = vsel %vm664_vm1, %v1042_v1, 0.0  ;;  %v4168_v1 = vld [vmem:[#allocation10_spill] sm:$0xff] }
 0x1cb   :  { %v1135_v16 = vadd.f32 %v1134_v31, %v1133_v0  ;;  %v4162_v0 = vld [vmem:[#allocation4_spill] sm:$0xff]  ;;  %v1148_v31 = vsel %vm664_vm1, %v1040_v41, 0.0 }
 0x1cc   :  { %v980_v56 = vsub.f32 %v4162_v0, %v2710_v36 }
 0x1cd   :  { %v1137_v26 = vadd.f32 %v1136_v17, %v1135_v16  ;;  %v1043_v17 = vmul.f32 %v979_v45, %v979_v45  ;;  %v4167_v45 = vld [vmem:[#allocation9_spill] sm:$0xff] }
 0x1cf   :  { %v1139_v10 = vadd.f32 %v1138_v43, %v1137_v26  ;;  %v1150_v26 = vsel %vm664_vm1, %v1041_v23, 0.0  ;;  %v982_v43 = vsub.f32 %v4164_v35, %v2710_v36  ;;  %v1154_v48 = vsel %vm664_vm1, %v1043_v17, 0.0 }
 0x1d0   :  { %v985_v23 = vsub.f32 %v4167_v45, %v2710_v36 }
 0x1d1   :  { %v1141_v15 = vadd.f32 %v1140_v24, %v1139_v10  ;;  %v1044_v10 = vmul.f32 %v980_v56, %v980_v56  ;;  %v4165_v24 = vld [vmem:[#allocation7_spill] sm:$0xff]  ;;  %v1046_v41 = vmul.f32 %v982_v43, %v982_v43 }
 0x1d2   :  { %v1049_v43 = vmul.f32 %v985_v23, %v985_v23 }
 0x1d3   :  { %v1143_v29 = vadd.f32 %v1142_v54, %v1141_v15  ;;  %v983_v15 = vsub.f32 %v4165_v24, %v2710_v36  ;;  %v1160_v42 = vsel %vm664_vm1, %v1046_v41, 0.0 }
 0x1d4   :  { %v1166_v41 = vsel %vm664_vm1, %v1049_v43, 0.0 }
 0x1d5   :  { %v1145_v62 = vadd.f32 %v1144_v7, %v1143_v29  ;;  %v4166_v29 = vld [vmem:[#allocation8_spill] sm:$0xff]  ;;  %v1156_v7 = vsel %vm664_vm1, %v1044_v10, 0.0 }
 0x1d6   :  { %v984_v22 = vsub.f32 %v4166_v29, %v2710_v36 }
 0x1d7   :  { %v1147_v47 = vadd.f32 %v1146_v61, %v1145_v62  ;;  %v1047_v61 = vmul.f32 %v983_v15, %v983_v15 }
 0x1d9   :  { %v1149_v16 = vadd.f32 %v1148_v31, %v1147_v47  ;;  %v1158_v47 = vsel %vm664_vm1, %v1045_v25, 0.0  ;;  %v986_v31 = vsub.f32 %v4168_v1, %v2710_v36  ;;  %v1162_v10 = vsel %vm664_vm1, %v1047_v61, 0.0 }
 0x1db   :  { %v1151_v59 = vadd.f32 %v1150_v26, %v1149_v16  ;;  %v1048_v16 = vmul.f32 %v984_v22, %v984_v22  ;;  %v4169_v26 = vld [vmem:[#allocation11_spill] sm:$0xff] }
 0x1dd   :  { %v1153_v8 = vadd.f32 %v1152_v13, %v1151_v59  ;;  %v987_v59 = vsub.f32 %v4169_v26, %v2710_v36  ;;  %v1164_v25 = vsel %vm664_vm1, %v1048_v16, 0.0 }
 0x1df   :  { %v1155_v54 = vadd.f32 %v1154_v48, %v1153_v8  ;;  %v4170_v8 = vld [vmem:[#allocation12_spill] sm:$0xff]  ;;  %v1050_v48 = vmul.f32 %v986_v31, %v986_v31 }
 0x1e0   :  { %v988_v15 = vsub.f32 %v4170_v8, %v2710_v36 }
 0x1e1   :  { %v1157_v62 = vadd.f32 %v1156_v7, %v1155_v54  ;;  %v4171_v7 = vld [vmem:[#allocation13_spill] sm:$0xff]  ;;  %v1168_v61 = vsel %vm664_vm1, %v1050_v48, 0.0 }
 0x1e2   :  { %v989_v22 = vsub.f32 %v4171_v7, %v2710_v36 }
 0x1e3   :  { %v1159_v56 = vadd.f32 %v1158_v47, %v1157_v62  ;;  %v1051_v62 = vmul.f32 %v987_v59, %v987_v59 }
 0x1e4   :  { %v1053_v8 = vmul.f32 %v989_v22, %v989_v22  ;;  %v994_v22 = vsub.f32 %v2706_v57, %v2710_v36 }
 0x1e5   :  { %v1161_v17 = vadd.f32 %v1160_v42, %v1159_v56  ;;  %v4172_v56 = vld [vmem:[#allocation14_spill] sm:$0xff]  ;;  %v1052_v42 = vmul.f32 %v988_v15, %v988_v15  ;;  %v1170_v16 = vsel %vm664_vm1, %v1051_v62, 0.0  ;;  %v993_v15 = vsub.f32 %v2702_v44, %v2710_v36 }
 0x1e6   :  { %v990_v23 = vsub.f32 %v4172_v56, %v2710_v36  ;;  %v1174_v48 = vsel %vm664_vm1, %v1053_v8, 0.0 }
 0x1e7   :  { %v1163_v13 = vadd.f32 %v1162_v10, %v1161_v17  ;;  %v4173_v10 = vld [vmem:[#allocation15_spill] sm:$0xff]  ;;  %v1172_v43 = vsel %vm664_vm1, %v1052_v42, 0.0  ;;  %v1058_v42 = vmul.f32 %v994_v22, %v994_v22 }
 0x1e8   :  { %v991_v31 = vsub.f32 %v4173_v10, %v2710_v36  ;;  %v1054_v7 = vmul.f32 %v990_v23, %v990_v23 }
 0x1e9   :  { %v1165_v54 = vadd.f32 %v1164_v25, %v1163_v13  ;;  %v4174_v25 = vld [vmem:[#allocation16_spill] sm:$0xff]  ;;  %v1184_v8 = vsel %vm664_vm1, %v1058_v42, 0.0  ;;  %v2137_v42 = vld [vmem:[#allocation2] sm:$0xff] }
 0x1ea   :  { %v992_v59 = vsub.f32 %v4174_v25, %v2710_v36  ;;  %v1176_v62 = vsel %vm664_vm1, %v1054_v7, 0.0 }
 0x1eb   :  { %v1167_v47 = vadd.f32 %v1166_v41, %v1165_v54  ;;  %v1055_v41 = vmul.f32 %v991_v31, %v991_v31 }
 0x1ed   :  { %v1169_v17 = vadd.f32 %v1168_v61, %v1167_v47  ;;  %v1056_v61 = vmul.f32 %v992_v59, %v992_v59  ;;  %v1178_v23 = vsel %vm664_vm1, %v1055_v41, 0.0  ;;  %v1201_v41 = vlaneseq }
 0x1ef   :  { %v1171_v13 = vadd.f32 %v1170_v16, %v1169_v17  ;;  %v1057_v16 = vmul.f32 %v993_v15, %v993_v15  ;;  %v2904_v22 = vshrl.u32 %v1201_v41, 7 }
 0x1f1   :  { %v1173_v54 = vadd.f32 %v1172_v43, %v1171_v13  ;;  %v1180_v13 = vsel %vm664_vm1, %v1056_v61, 0.0  ;;  %v1182_v31 = vsel %vm664_vm1, %v1057_v16, 0.0  ;;  %v4102_v61 = vsub.s32 0, %v2904_v22 }
 0x1f3   :  { %v1175_v47 = vadd.f32 %v1174_v48, %v1173_v54 }
 0x1f5   :  { %v1177_v17 = vadd.f32 %v1176_v62, %v1175_v47 }
 0x1f7   :  { %v1179_v25 = vadd.f32 %v1178_v23, %v1177_v17  ;;  %v2149_v23 = vld [vmem:[#allocation2 + $0x60] sm:$0xff] }
 0x1f9   :  { %v1181_v43 = vadd.f32 %v1180_v13, %v1179_v25  ;;  %v1193_v25 = vld [vmem:[%s4069_s3] sm:$0x1] }
 0x1fb   :  { %v1183_v44 = vadd.f32 %v1182_v31, %v1181_v43  ;;  %v2138_v43 = vld [vmem:[#allocation2 + $0x8] sm:$0xff]  ;;  %v2139_v31 = vld [vmem:[#allocation2 + $0x10] sm:$0xff] }
 0x1fd   :  { %v1185_v54 = vadd.f32 %v1184_v8, %v1183_v44 }
 0x1ff   :  { %v1186_v48 = vrot.slane %v1185_v54, 4 }
 0x201   :  { %v1187_v57 = vadd.f32 %v1186_v48, %v1185_v54  ;;  %v2140_v54 = vld [vmem:[#allocation2 + $0x18] sm:$0xff] }
 0x203   :  { %v1188_v59 = vrot.slane %v1187_v57, 2 }
 0x205   :  { %v1189_v10 = vadd.f32 %v1188_v59, %v1187_v57  ;;  %v2141_v59 = vld [vmem:[#allocation2 + $0x20] sm:$0xff] }
 0x207   :  { %v1190_v7 = vrot.slane %v1189_v10, 1 }
 0x209   :  { %v1191_v47 = vadd.f32 %v1190_v7, %v1189_v10  ;;  %v2920_v10 = vld [vmem:[%s4070_s4] sm:$0x1] }
 0x20b   :  { %v1192_v15 = vmul.f32 0.001953125, %v1191_v47  ;;  %v2142_v47 = vld [vmem:[#allocation2 + $0x28] sm:$0xff] }
 0x20d   :  { %v1194_v62 = vadd.f32 1e-05, %v1192_v15 }
 0x20f   :  { %2135 = vrsqrt.f32 %v1194_v62  ;;  %v2143_v62 = vld [vmem:[#allocation2 + $0x30] sm:$0xff] }
 0x219   :  { %v2136_v17 = vpop.eup %2135 }
 0x21a   :  { %v1196_v44 = vmul.f32 %v2136_v17, %v1193_v25  ;;  %v2144_v25 = vld [vmem:[#allocation2 + $0x38] sm:$0xff] }
 0x21c   :  { %v2911_v16 = vmul.f32 %v1196_v44, %v2710_v36  ;;  %v2915_v57 = vrot.slane %v1196_v44, %v4102_v61  ;;  %v2145_v44 = vld [vmem:[#allocation2 + $0x40] sm:$0xff]  ;;  %v2150_v61 = vld [vmem:[#allocation2 + $0x68] sm:$0xff] }
 0x21e   :  { %v2925_v13 = vmul.f32 %v2137_v42, %v2915_v57  ;;  %v2928_v36 = vmul.f32 %v2138_v43, %v2915_v57  ;;  %v2931_v8 = vmul.f32 %v2139_v31, %v2915_v57  ;;  %v2934_v48 = vmul.f32 %v2140_v54, %v2915_v57  ;;  %v2146_v43 = vld [vmem:[#allocation2 + $0x48] sm:$0xff]  ;;  %v2147_v54 = vld [vmem:[#allocation2 + $0x50] sm:$0xff] }
 0x21f   :  { %v2937_v7 = vmul.f32 %v2141_v59, %v2915_v57  ;;  %v2940_v15 = vmul.f32 %v2142_v47, %v2915_v57  ;;  %v2943_v41 = vmul.f32 %v2143_v62, %v2915_v57  ;;  %v2946_v17 = vmul.f32 %v2144_v25, %v2915_v57  ;;  %v2148_v47 = vld [vmem:[#allocation2 + $0x58] sm:$0xff] }
 0x220   :  { %v2949_v42 = vmul.f32 %v2145_v44, %v2915_v57  ;;  %v2952_v31 = vmul.f32 %v2146_v43, %v2915_v57  ;;  %v2955_v59 = vmul.f32 %v2147_v54, %v2915_v57  ;;  %v2958_v62 = vmul.f32 %v2148_v47, %v2915_v57 }
 0x221   :  { %v2961_v25 = vmul.f32 %v2149_v23, %v2915_v57  ;;  %v2964_v44 = vmul.f32 %v2150_v61, %v2915_v57  ;;  %v2977_v23 = vmul.f32 %v2915_v57, %v2479_v63  ;;  %v2981_v61 = vmul.f32 %v2915_v57, %v2477_v58 }
 0x222   :  { %4175 = vst [vmem:[#allocation3_spill] sm:$0xff] %v2949_v42  ;;  %4176 = vst [vmem:[#allocation4_spill] sm:$0xff] %v2952_v31  ;;  %v2151_v42 = vld [vmem:[#allocation2 + $0x70] sm:$0xff]  ;;  %v2152_v31 = vld [vmem:[#allocation2 + $0x78] sm:$0xff]  ;;  %v2997_v63 = vmul.f32 %v2915_v57, %v2509_v34  ;;  %v3001_v58 = vmul.f32 %v2915_v57, %v2519_v40  ;;  %v3017_v34 = vmul.f32 %v2915_v57, %v2551_v18 }
 0x223   :  { %4177 = vst [vmem:[#allocation5_spill] sm:$0xff] %v2955_v59  ;;  %v2967_v43 = vmul.f32 %v2151_v42, %v2915_v57  ;;  %v2970_v54 = vmul.f32 %v2152_v31, %v2915_v57  ;;  %v2153_v59 = vld [vmem:[#allocation2 + $0x80] sm:$0xff]  ;;  %v2985_v42 = vmul.f32 %v2915_v57, %v2487_v3  ;;  %v2989_v31 = vmul.f32 %v2915_v57, %v2498_v20 }
 0x224   :  { %v2973_v47 = vmul.f32 %v2153_v59, %v2915_v57  ;;  %v2993_v59 = vmul.f32 %v2915_v57, %v2511_v37  ;;  %v3005_v3 = vmul.f32 %v2915_v57, %v2530_v2  ;;  %v3009_v20 = vmul.f32 %v2915_v57, %v2543_v14 }
 0x225   :  { %v3013_v37 = vmul.f32 %v2915_v57, %v2541_v11  ;;  %v3021_v40 = vmul.f32 %v2915_v57, %v2560_v38  ;;  %v3025_v2 = vmul.f32 %v2915_v57, %v2570_v49  ;;  %v3029_v14 = vmul.f32 %v2915_v57, %v2568_v46 }
 0x226   :  { %v3033_v11 = vmul.f32 %v2915_v57, %v2576_v51  ;;  %v3037_v18 = vmul.f32 %v2915_v57, %v2578_v55  ;;  %v3041_v38 = vmul.f32 %v2915_v57, %v2586_v5  ;;  %v3045_v49 = vmul.f32 %v2915_v57, %v2588_v6 }
 0x227   :  { %v3049_v46 = vmul.f32 %v2915_v57, %v2592_v9  ;;  %v3053_v51 = vmul.f32 %v2915_v57, %v2594_v12  ;;  %v3057_v55 = vmul.f32 %v2915_v57, %v2602_v27  ;;  %v3061_v5 = vmul.f32 %v2915_v57, %v2604_v28 }
 0x228   :  { %v3065_v6 = vmul.f32 %v2915_v57, %v2608_v33  ;;  %v3069_v9 = vmul.f32 %v2915_v57, %v2610_v39  ;;  %v3073_v12 = vmul.f32 %v2915_v57, %v2618_v50  ;;  %v3077_v27 = vmul.f32 %v2915_v57, %v2620_v52 }
 0x229   :  { %v3081_v28 = vmul.f32 %v2915_v57, %v2624_v60  ;;  %v3085_v33 = vmul.f32 %v2915_v57, %v2626_v4  ;;  %v3089_v39 = vmul.f32 %v2915_v57, %v2634_v19  ;;  %v3093_v50 = vmul.f32 %v2915_v57, %v2636_v21 }
 0x22a   :  { %v3097_v52 = vmul.f32 %v2915_v57, %v2640_v32  ;;  %v3101_v60 = vmul.f32 %v2915_v57, %v4161_v30  ;;  %v3105_v4 = vmul.f32 %v2915_v57, %v4162_v0  ;;  %v3109_v19 = vmul.f32 %v2915_v57, %v4163_v53 }
 0x22b   :  { %v3113_v21 = vmul.f32 %v2915_v57, %v4164_v35  ;;  %v3117_v32 = vmul.f32 %v2915_v57, %v4165_v24  ;;  %v3121_v30 = vmul.f32 %v2915_v57, %v4166_v29  ;;  %v3125_v0 = vmul.f32 %v2915_v57, %v4167_v45  ;;  %v4187_v45 = vld [vmem:[#allocation13_spill] sm:$0xff] }
 0x22c   :  { %v3129_v53 = vmul.f32 %v2915_v57, %v4168_v1  ;;  %v3133_v35 = vmul.f32 %v2915_v57, %v4169_v26  ;;  %v4186_v29 = vsub.f32 %v2920_v10, %v2911_v16  ;;  %v3152_v1 = vmul.f32 %v2915_v57, %v4172_v56  ;;  %v4188_v26 = vld [vmem:[#allocation15_spill] sm:$0xff]  ;;  %v4191_v10 = vld [vmem:[#allocation18_spill] sm:$0xff] }
 0x22d   :  { %4178 = vst [vmem:[#allocation6_spill] sm:$0xff] %v3113_v21  ;;  %4179 = vst [vmem:[#allocation7_spill] sm:$0xff] %v3117_v32  ;;  %v4183_v21 = vld [vmem:[#allocation12_spill] sm:$0xff]  ;;  %v4185_v32 = vsub.s32 0, %v2904_v22 }
 0x22e   :  { %4180 = vst [vmem:[#allocation8_spill] sm:$0xff] %v3121_v30  ;;  %4181 = vst [vmem:[#allocation9_spill] sm:$0xff] %v3125_v0  ;;  %v3137_v24 = vmul.f32 %v2915_v57, %v4183_v21  ;;  %v3148_v0 = vmul.f32 %v2915_v57, %v4187_v45  ;;  %v4189_v21 = vld [vmem:[#allocation16_spill] sm:$0xff] }
 0x22f   :  { %4182 = vst [vmem:[#allocation10_spill] sm:$0xff] %v3133_v35  ;;  %v3144_v30 = vrot.slane %v4186_v29, %v4185_v32  ;;  %v3156_v35 = vmul.f32 %v2915_v57, %v4188_v26  ;;  %v3160_v22 = vmul.f32 %v2915_v57, %v4189_v21  ;;  %v3168_v32 = vmul.f32 %v2915_v57, %v4191_v10  ;;  %v4192_v26 = vld [vmem:[#allocation3_spill] sm:$0xff]  ;;  %v4193_v21 = vld [vmem:[#allocation4_spill] sm:$0xff]  ;;  %v4194_v10 = vld [vmem:[#allocation5_spill] sm:$0xff] }
 0x230   :  { %4184 = vst [vmem:[#allocation11_spill] sm:$0xff] %v3137_v24  ;;  %v4190_v24 = vld [vmem:[#allocation17_spill] sm:$0xff] }
 0x231   :  { %v3164_v16 = vmul.f32 %v2915_v57, %v4190_v24  ;;  %v3172_v56 = vadd.f32 %v3144_v30, %v2925_v13  ;;  %v3176_v29 = vadd.f32 %v3144_v30, %v2928_v36  ;;  %v3180_v45 = vadd.f32 %v3144_v30, %v2931_v8 }
 0x232   :  { %v3184_v24 = vadd.f32 %v3144_v30, %v2934_v48  ;;  %v3188_v57 = vadd.f32 %v3144_v30, %v2937_v7  ;;  %v3192_v13 = vadd.f32 %v3144_v30, %v2940_v15  ;;  %v3196_v36 = vadd.f32 %v3144_v30, %v2943_v41 }
 0x233   :  { %v3200_v8 = vadd.f32 %v3144_v30, %v2946_v17  ;;  %v3204_v48 = vadd.f32 %v3144_v30, %v4192_v26  ;;  %v3208_v7 = vadd.f32 %v3144_v30, %v4193_v21  ;;  %v3212_v15 = vadd.f32 %v3144_v30, %v4194_v10 }
 0x234   :  { %v3216_v41 = vadd.f32 %v3144_v30, %v2958_v62  ;;  %v3220_v17 = vadd.f32 %v3144_v30, %v2961_v25  ;;  %v3224_v26 = vadd.f32 %v3144_v30, %v2964_v44  ;;  %v3228_v21 = vadd.f32 %v3144_v30, %v2967_v43 }
 0x235   :  { %v3232_v10 = vadd.f32 %v3144_v30, %v2970_v54  ;;  %v3236_v62 = vadd.f32 %v3144_v30, %v2973_v47  ;;  %v3240_v25 = vadd.f32 %v3144_v30, %v2977_v23  ;;  %v3244_v44 = vadd.f32 %v3144_v30, %v2981_v61 }
 0x236   :  { %4195 = vst [vmem:[#allocation14_spill] sm:$0xff] %v3228_v21  ;;  %v3248_v43 = vadd.f32 %v3144_v30, %v2985_v42  ;;  %v3252_v54 = vadd.f32 %v3144_v30, %v2989_v31  ;;  %v3256_v47 = vadd.f32 %v3144_v30, %v2993_v59  ;;  %v3260_v23 = vadd.f32 %v3144_v30, %v2997_v63 }
 0x237   :  { %4196 = vst [vmem:[#allocation12_spill] sm:$0xff] %v3240_v25  ;;  %v3264_v61 = vadd.f32 %v3144_v30, %v3001_v58  ;;  %v3268_v42 = vadd.f32 %v3144_v30, %v3005_v3  ;;  %v3272_v31 = vadd.f32 %v3144_v30, %v3009_v20  ;;  %v3276_v59 = vadd.f32 %v3144_v30, %v3013_v37 }
 0x238   :  { %4197 = vst [vmem:[#allocation13_spill] sm:$0xff] %v3252_v54  ;;  %v3280_v63 = vadd.f32 %v3144_v30, %v3017_v34  ;;  %v3284_v58 = vadd.f32 %v3144_v30, %v3021_v40  ;;  %v3288_v3 = vadd.f32 %v3144_v30, %v3025_v2  ;;  %v3292_v20 = vadd.f32 %v3144_v30, %v3029_v14 }
 0x239   :  { %4198 = vst [vmem:[#allocation15_spill] sm:$0xff] %v3264_v61  ;;  %4199 = vst [vmem:[#allocation16_spill] sm:$0xff] %v3276_v59  ;;  %v3296_v37 = vadd.f32 %v3144_v30, %v3033_v11  ;;  %v3300_v34 = vadd.f32 %v3144_v30, %v3037_v18  ;;  %v3304_v40 = vadd.f32 %v3144_v30, %v3041_v38 }
 0x23a   :  { %4200 = vst [vmem:[#allocation17_spill] sm:$0xff] %v3280_v63  ;;  %4201 = vst [vmem:[#allocation18_spill] sm:$0xff] %v3284_v58  ;;  %v3308_v2 = vadd.f32 %v3144_v30, %v3045_v49  ;;  %v3312_v14 = vadd.f32 %v3144_v30, %v3049_v46  ;;  %v3316_v11 = vadd.f32 %v3144_v30, %v3053_v51 }
 0x23b   :  { %4202 = vst [vmem:[#allocation3_spill] sm:$0xff] %v3288_v3  ;;  %4203 = vst [vmem:[#allocation4_spill] sm:$0xff] %v3292_v20  ;;  %v3320_v18 = vadd.f32 %v3144_v30, %v3057_v55  ;;  %v3324_v38 = vadd.f32 %v3144_v30, %v3061_v5  ;;  %v3328_v49 = vadd.f32 %v3144_v30, %v3065_v6 }
 0x23c   :  { %4204 = vst [vmem:[#allocation5_spill] sm:$0xff] %v3296_v37  ;;  %4205 = vst [vmem:[#allocation19_spill] sm:$0xff] %v3300_v34  ;;  %v3332_v46 = vadd.f32 %v3144_v30, %v3069_v9  ;;  %v3336_v51 = vadd.f32 %v3144_v30, %v3073_v12  ;;  %v3340_v55 = vadd.f32 %v3144_v30, %v3077_v27 }
 0x23d   :  { %4206 = vst [vmem:[#allocation20_spill] sm:$0xff] %v3304_v40  ;;  %4207 = vst [vmem:[#allocation21_spill] sm:$0xff] %v3308_v2  ;;  %v3344_v5 = vadd.f32 %v3144_v30, %v3081_v28  ;;  %v3348_v6 = vadd.f32 %v3144_v30, %v3085_v33  ;;  %v3352_v9 = vadd.f32 %v3144_v30, %v3089_v39 }
 0x23e   :  { %4208 = vst [vmem:[#allocation22_spill] sm:$0xff] %v3312_v14  ;;  %4209 = vst [vmem:[#allocation23_spill] sm:$0xff] %v3316_v11  ;;  %v3356_v12 = vadd.f32 %v3144_v30, %v3093_v50  ;;  %v3360_v27 = vadd.f32 %v3144_v30, %v3097_v52  ;;  %v3364_v28 = vadd.f32 %v3144_v30, %v3101_v60 }
 0x23f   :  { %4210 = vst [vmem:[#allocation24_spill] sm:$0xff] %v3320_v18  ;;  %4211 = vst [vmem:[#allocation25_spill] sm:$0xff] %v3324_v38  ;;  %v3368_v33 = vadd.f32 %v3144_v30, %v3105_v4  ;;  %v3372_v39 = vadd.f32 %v3144_v30, %v3109_v19  ;;  %v3392_v19 = vadd.f32 %v3144_v30, %v3129_v53 }
 0x240   :  { %4212 = vst [vmem:[#allocation26_spill] sm:$0xff] %v3328_v49  ;;  %4213 = vst [vmem:[#allocation27_spill] sm:$0xff] %v3332_v46  ;;  %v3412_v53 = vadd.f32 %v3144_v30, %v3156_v35  ;;  %v1343_v35 = vmul.f32 0.2, %v3184_v24 }
 0x241   :  { %4214 = vst [vmem:[#allocation28_spill] sm:$0xff] %v3336_v51  ;;  %4215 = vst [vmem:[#allocation29_spill] sm:$0xff] %v3340_v55 }
 0x242   :  { %4216 = vst [vmem:[#allocation30_spill] sm:$0xff] %v3344_v5  ;;  %4217 = vst [vmem:[#allocation31_spill] sm:$0xff] %v3348_v6 }
 0x243   :  { %4218 = vst [vmem:[#allocation32_spill] sm:$0xff] %v3352_v9  ;;  %4219 = vst [vmem:[#allocation33_spill] sm:$0xff] %v3356_v12  ;;  %v4224_v9 = vld [vmem:[#allocation6_spill] sm:$0xff]  ;;  %v4226_v12 = vld [vmem:[#allocation7_spill] sm:$0xff] }
 0x244   :  { %4220 = vst [vmem:[#allocation34_spill] sm:$0xff] %v3360_v27  ;;  %4221 = vst [vmem:[#allocation35_spill] sm:$0xff] %v3364_v28  ;;  %v3376_v50 = vadd.f32 %v3144_v30, %v4224_v9  ;;  %v3380_v52 = vadd.f32 %v3144_v30, %v4226_v12  ;;  %v4228_v27 = vld [vmem:[#allocation8_spill] sm:$0xff]  ;;  %v4230_v28 = vld [vmem:[#allocation9_spill] sm:$0xff] }
 0x245   :  { %4222 = vst [vmem:[#allocation36_spill] sm:$0xff] %v3368_v33  ;;  %4223 = vst [vmem:[#allocation37_spill] sm:$0xff] %v3372_v39  ;;  %v3384_v60 = vadd.f32 %v3144_v30, %v4228_v27  ;;  %v3388_v4 = vadd.f32 %v3144_v30, %v4230_v28  ;;  %v4233_v39 = vld [vmem:[#allocation10_spill] sm:$0xff]  ;;  %v3404_v27 = vadd.f32 %v3144_v30, %v3148_v0  ;;  %v1341_v0 = vmul.f32 0.2, %v3176_v29 }
 0x246   :  { %4225 = vst [vmem:[#allocation6_spill] sm:$0xff] %v3376_v50  ;;  %4227 = vst [vmem:[#allocation7_spill] sm:$0xff] %v3380_v52  ;;  %v3396_v9 = vadd.f32 %v3144_v30, %v4233_v39  ;;  %v4235_v50 = vld [vmem:[#allocation11_spill] sm:$0xff]  ;;  %v3408_v28 = vadd.f32 %v3144_v30, %v3152_v1  ;;  %v3416_v39 = vadd.f32 %v3144_v30, %v3160_v22  ;;  %v1345_v22 = vmul.f32 0.2, %v3192_v13 }
 0x247   :  { %4229 = vst [vmem:[#allocation8_spill] sm:$0xff] %v3384_v60  ;;  %4231 = vst [vmem:[#allocation9_spill] sm:$0xff] %v3388_v4  ;;  %v3400_v12 = vadd.f32 %v3144_v30, %v4235_v50  ;;  %v3420_v50 = vadd.f32 %v3144_v30, %v3164_v16  ;;  %v3427_v1 = vadd.f32 %v3144_v30, %v3168_v32  ;;  %v1347_v16 = vmul.f32 0.2, %v3200_v8 }
 0x248   :  { %4232 = vst [vmem:[#allocation38_spill] sm:$0xff] %v3392_v19  ;;  %4234 = vst [vmem:[#allocation10_spill] sm:$0xff] %v3396_v9  ;;  %v1349_v9 = vmul.f32 0.2, %v3208_v7  ;;  %v1350_v30 = vmul.f32 0.2, %v3212_v15  ;;  %v3454_v33 = vmax.f32 %v3184_v24, %v1343_v35 }
 0x249   :  { %4236 = vst [vmem:[#allocation11_spill] sm:$0xff] %v3400_v12  ;;  %4237 = vst [vmem:[#allocation39_spill] sm:$0xff] %v3404_v27  ;;  %v1340_v12 = vmul.f32 0.2, %v3172_v56  ;;  %v1342_v27 = vmul.f32 0.2, %v3180_v45 }
 0x24a   :  { %4238 = vst [vmem:[#allocation40_spill] sm:$0xff] %v3408_v28  ;;  %4239 = vst [vmem:[#allocation41_spill] sm:$0xff] %v3412_v53  ;;  %v1344_v53 = vmul.f32 0.2, %v3188_v57  ;;  %v1351_v32 = vmul.f32 0.2, %v3216_v41 }
 0x24b   :  { %4240 = vst [vmem:[#allocation42_spill] sm:$0xff] %v3416_v39  ;;  %4241 = vst [vmem:[#allocation43_spill] sm:$0xff] %v3420_v50  ;;  %v1346_v39 = vmul.f32 0.2, %v3196_v36  ;;  %v1348_v50 = vmul.f32 0.2, %v3204_v48  ;;  %v3436_v28 = vmax.f32 %v3172_v56, %v1340_v12  ;;  %v3448_v52 = vmax.f32 %v3180_v45, %v1342_v27 }
 0x24c   :  { %4242 = vst [vmem:[#allocation44_spill] sm:$0xff] %v3427_v1  ;;  %v3442_v1 = vmax.f32 %v3176_v29, %v1341_v0  ;;  %v1352_v19 = vmul.f32 0.2, %v3220_v17  ;;  %v1353_v4 = vmul.f32 0.2, %v3224_v26  ;;  %4246 = vst [vmem:[#allocation48_spill] sm:$0xff] %v3454_v33 }
 0x24d   :  { %4243 = vst [vmem:[#allocation45_spill] sm:$0xff] %v3436_v28  ;;  %v1354_v60 = vmul.f32 0.2, %v3228_v21  ;;  %4245 = vst [vmem:[#allocation47_spill] sm:$0xff] %v3448_v52  ;;  %v1355_v56 = vmul.f32 0.2, %v3232_v10  ;;  %v3460_v21 = vmax.f32 %v3188_v57, %v1344_v53 }
 0x24e   :  { %4244 = vst [vmem:[#allocation46_spill] sm:$0xff] %v3442_v1  ;;  %v1356_v12 = vmul.f32 0.2, %v3236_v62  ;;  %v1357_v28 = vmul.f32 0.2, %v3240_v25  ;;  %v3466_v25 = vmax.f32 %v3192_v13, %v1345_v22 }
 0x24f   :  { %v1358_v29 = vmul.f32 0.2, %v3244_v44  ;;  %v1359_v0 = vmul.f32 0.2, %v3248_v43  ;;  %v1360_v1 = vmul.f32 0.2, %v3252_v54  ;;  %v3472_v54 = vmax.f32 %v3196_v36, %v1346_v39 }
 0x250   :  { %4247 = vst [vmem:[#allocation49_spill] sm:$0xff] %v3460_v21  ;;  %v1361_v45 = vmul.f32 0.2, %v3256_v47  ;;  %v1362_v27 = vmul.f32 0.2, %v3260_v23  ;;  %4248 = vst [vmem:[#allocation50_spill] sm:$0xff] %v3466_v25 }
 0x251   :  { %v1363_v52 = vmul.f32 0.2, %v3264_v61  ;;  %v1364_v24 = vmul.f32 0.2, %v3268_v42  ;;  %v1365_v35 = vmul.f32 0.2, %v3272_v31  ;;  %v3478_v61 = vmax.f32 %v3200_v8, %v1347_v16 }
 0x252   :  { %v1366_v33 = vmul.f32 0.2, %v3276_v59  ;;  %4249 = vst [vmem:[#allocation51_spill] sm:$0xff] %v3472_v54  ;;  %v1367_v57 = vmul.f32 0.2, %v3280_v63  ;;  %v3484_v59 = vmax.f32 %v3204_v48, %v1348_v50  ;;  %v4280_v63 = vld [vmem:[#allocation43_spill] sm:$0xff] }
 0x253   :  { %v1368_v53 = vmul.f32 0.2, %v3284_v58  ;;  %v1369_v21 = vmul.f32 0.2, %v3288_v3  ;;  %4250 = vst [vmem:[#allocation52_spill] sm:$0xff] %v3478_v61  ;;  %v3490_v3 = vmax.f32 %v3208_v7, %v1349_v9  ;;  %v4276_v58 = vld [vmem:[#allocation12_spill] sm:$0xff] }
 0x254   :  { %v1370_v13 = vmul.f32 0.2, %v3292_v20  ;;  %v1371_v22 = vmul.f32 0.2, %v3296_v37  ;;  %v1372_v25 = vmul.f32 0.2, %v3300_v34  ;;  %v3496_v34 = vmax.f32 %v3212_v15, %v1350_v30 }
 0x255   :  { %4251 = vst [vmem:[#allocation53_spill] sm:$0xff] %v3484_v59  ;;  %v1373_v36 = vmul.f32 0.2, %v3304_v40  ;;  %v1374_v39 = vmul.f32 0.2, %v3308_v2  ;;  %4252 = vst [vmem:[#allocation54_spill] sm:$0xff] %v3490_v3 }
 0x256   :  { %v1375_v54 = vmul.f32 0.2, %v3312_v14  ;;  %v1376_v8 = vmul.f32 0.2, %v3316_v11  ;;  %v1377_v16 = vmul.f32 0.2, %v3320_v18  ;;  %v3502_v14 = vmax.f32 %v3216_v41, %v1351_v32 }
 0x257   :  { %v1378_v61 = vmul.f32 0.2, %v3324_v38  ;;  %4253 = vst [vmem:[#allocation55_spill] sm:$0xff] %v3496_v34  ;;  %v1379_v48 = vmul.f32 0.2, %v3328_v49  ;;  %v3508_v38 = vmax.f32 %v3220_v17, %v1352_v19  ;;  %v4256_v15 = vld [vmem:[#allocation32_spill] sm:$0xff] }
 0x258   :  { %v1380_v50 = vmul.f32 0.2, %v3332_v46  ;;  %v1381_v59 = vmul.f32 0.2, %v3336_v51  ;;  %4254 = vst [vmem:[#allocation56_spill] sm:$0xff] %v3502_v14  ;;  %v4257_v34 = vld [vmem:[#allocation33_spill] sm:$0xff]  ;;  %v3514_v51 = vmax.f32 %v3224_v26, %v1353_v4 }
 0x259   :  { %v1382_v7 = vmul.f32 0.2, %v3340_v55  ;;  %v1383_v9 = vmul.f32 0.2, %v3344_v5  ;;  %v1384_v3 = vmul.f32 0.2, %v3348_v6 }
 0x25a   :  { %4255 = vst [vmem:[#allocation57_spill] sm:$0xff] %v3508_v38  ;;  %v1385_v30 = vmul.f32 0.2, %v4256_v15  ;;  %v1386_v49 = vmul.f32 0.2, %v4257_v34  ;;  %v4258_v18 = vld [vmem:[#allocation34_spill] sm:$0xff] }
 0x25b   :  { %v1387_v46 = vmul.f32 0.2, %v4258_v18  ;;  %4259 = vst [vmem:[#allocation58_spill] sm:$0xff] %v3514_v51  ;;  %v4260_v41 = vld [vmem:[#allocation35_spill] sm:$0xff]  ;;  %v4261_v14 = vld [vmem:[#allocation36_spill] sm:$0xff]  ;;  %v4262_v11 = vld [vmem:[#allocation37_spill] sm:$0xff]  ;;  %v3526_v18 = vmax.f32 %v3232_v10, %v1355_v56 }
 0x25c   :  { %v1388_v32 = vmul.f32 0.2, %v4260_v41  ;;  %v1389_v55 = vmul.f32 0.2, %v4261_v14  ;;  %v1390_v5 = vmul.f32 0.2, %v4262_v11  ;;  %v3532_v11 = vmax.f32 %v3236_v62, %v1356_v12 }
 0x25d   :  { %v4263_v2 = vld [vmem:[#allocation14_spill] sm:$0xff]  ;;  %v4266_v38 = vld [vmem:[#allocation7_spill] sm:$0xff]  ;;  %v4267_v40 = vld [vmem:[#allocation8_spill] sm:$0xff]  ;;  %4268 = vst [vmem:[#allocation59_spill] sm:$0xff] %v3526_v18 }
 0x25e   :  { %v3520_v6 = vmax.f32 %v4263_v2, %v1354_v60  ;;  %v4265_v17 = vld [vmem:[#allocation6_spill] sm:$0xff]  ;;  %v1392_v15 = vmul.f32 0.2, %v4266_v38  ;;  %v1393_v34 = vmul.f32 0.2, %v4267_v40  ;;  %v4269_v26 = vld [vmem:[#allocation9_spill] sm:$0xff]  ;;  %v3538_v40 = vmax.f32 %v4276_v58, %v1357_v28 }
 0x25f   :  { %v1391_v19 = vmul.f32 0.2, %v4265_v17  ;;  %v1394_v4 = vmul.f32 0.2, %v4269_v26  ;;  %v4270_v51 = vld [vmem:[#allocation38_spill] sm:$0xff]  ;;  %4272 = vst [vmem:[#allocation60_spill] sm:$0xff] %v3532_v11  ;;  %v3548_v11 = vmax.f32 %v3248_v43, %v1359_v0  ;;  %v3554_v58 = vmax.f32 %v3256_v47, %v1361_v45 }
 0x260   :  { %4264 = vst [vmem:[#allocation14_spill] sm:$0xff] %v3520_v6  ;;  %v1395_v41 = vmul.f32 0.2, %v4270_v51  ;;  %v4271_v37 = vld [vmem:[#allocation10_spill] sm:$0xff]  ;;  %v4273_v2 = vld [vmem:[#allocation11_spill] sm:$0xff]  ;;  %v4275_v20 = vld [vmem:[#allocation40_spill] sm:$0xff]  ;;  %v3557_v28 = vmax.f32 %v3260_v23, %v1362_v27 }
 0x261   :  { %v1396_v14 = vmul.f32 0.2, %v4271_v37  ;;  %v1397_v60 = vmul.f32 0.2, %v4273_v2  ;;  %v4274_v6 = vld [vmem:[#allocation39_spill] sm:$0xff]  ;;  %4277 = vst [vmem:[#allocation40_spill] sm:$0xff] %v3538_v40  ;;  %v3544_v37 = vmax.f32 %v3244_v44, %v1358_v29  ;;  %v3563_v44 = vmax.f32 %v3268_v42, %v1364_v24 }
 0x262   :  { %v1398_v17 = vmul.f32 0.2, %v4274_v6  ;;  %v1399_v38 = vmul.f32 0.2, %v4275_v20  ;;  %v4278_v10 = vld [vmem:[#allocation41_spill] sm:$0xff]  ;;  %v4279_v18 = vld [vmem:[#allocation42_spill] sm:$0xff]  ;;  %v3566_v29 = vmax.f32 %v3272_v31, %v1365_v35 }
 0x263   :  { %v1400_v56 = vmul.f32 0.2, %v4278_v10  ;;  %v1401_v26 = vmul.f32 0.2, %v4279_v18  ;;  %v1402_v51 = vmul.f32 0.2, %v4280_v63 }
 0x264   :  { %v4281_v62 = vld [vmem:[#allocation44_spill] sm:$0xff]  ;;  %v4282_v6 = vld [vmem:[#allocation13_spill] sm:$0xff]  ;;  %v4283_v40 = vld [vmem:[#allocation15_spill] sm:$0xff] }
 0x265   :  { %v1403_v12 = vmul.f32 0.2, %v4281_v62  ;;  %v3551_v2 = vmax.f32 %v4282_v6, %v1360_v1  ;;  %v3560_v18 = vmax.f32 %v4283_v40, %v1363_v52  ;;  %v4284_v43 = vld [vmem:[#allocation16_spill] sm:$0xff]  ;;  %v4285_v6 = vld [vmem:[#allocation17_spill] sm:$0xff]  ;;  %v4286_v47 = vld [vmem:[#allocation18_spill] sm:$0xff] }
 0x266   :  { %v3569_v0 = vmax.f32 %v4284_v43, %v1366_v33  ;;  %v3572_v1 = vmax.f32 %v4285_v6, %v1367_v57  ;;  %v3575_v45 = vmax.f32 %v4286_v47, %v1368_v53  ;;  %v4287_v23 = vld [vmem:[#allocation3_spill] sm:$0xff]  ;;  %v4288_v40 = vld [vmem:[#allocation4_spill] sm:$0xff]  ;;  %v4289_v42 = vld [vmem:[#allocation5_spill] sm:$0xff] }
 0x267   :  { %v3578_v27 = vmax.f32 %v4287_v23, %v1369_v21  ;;  %v3581_v52 = vmax.f32 %v4288_v40, %v1370_v13  ;;  %v3584_v24 = vmax.f32 %v4289_v42, %v1371_v22  ;;  %v4290_v31 = vld [vmem:[#allocation19_spill] sm:$0xff]  ;;  %v4291_v33 = vld [vmem:[#allocation20_spill] sm:$0xff]  ;;  %v4292_v57 = vld [vmem:[#allocation21_spill] sm:$0xff] }
 0x268   :  { %v3587_v35 = vmax.f32 %v4290_v31, %v1372_v25  ;;  %v3590_v43 = vmax.f32 %v4291_v33, %v1373_v36  ;;  %v3593_v6 = vmax.f32 %v4292_v57, %v1374_v39  ;;  %v4293_v53 = vld [vmem:[#allocation22_spill] sm:$0xff]  ;;  %v4294_v21 = vld [vmem:[#allocation23_spill] sm:$0xff]  ;;  %v4295_v13 = vld [vmem:[#allocation24_spill] sm:$0xff] }
 0x269   :  { %v3596_v47 = vmax.f32 %v4293_v53, %v1375_v54  ;;  %v3599_v23 = vmax.f32 %v4294_v21, %v1376_v8  ;;  %v3602_v40 = vmax.f32 %v4295_v13, %v1377_v16  ;;  %v4296_v22 = vld [vmem:[#allocation25_spill] sm:$0xff]  ;;  %v4297_v25 = vld [vmem:[#allocation26_spill] sm:$0xff]  ;;  %v4298_v36 = vld [vmem:[#allocation27_spill] sm:$0xff] }
 0x26a   :  { %v3605_v42 = vmax.f32 %v4296_v22, %v1378_v61  ;;  %v3608_v31 = vmax.f32 %v4297_v25, %v1379_v48  ;;  %v3611_v33 = vmax.f32 %v4298_v36, %v1380_v50  ;;  %v4299_v39 = vld [vmem:[#allocation28_spill] sm:$0xff]  ;;  %v4300_v54 = vld [vmem:[#allocation29_spill] sm:$0xff]  ;;  %v4301_v8 = vld [vmem:[#allocation30_spill] sm:$0xff] }
 0x26b   :  { %v3614_v57 = vmax.f32 %v4299_v39, %v1381_v59  ;;  %v3617_v53 = vmax.f32 %v4300_v54, %v1382_v7  ;;  %v3620_v21 = vmax.f32 %v4301_v8, %v1383_v9  ;;  %v4302_v16 = vld [vmem:[#allocation31_spill] sm:$0xff]  ;;  %v4303_v61 = vld [vmem:[#allocation32_spill] sm:$0xff]  ;;  %v4304_v48 = vld [vmem:[#allocation33_spill] sm:$0xff] }
 0x26c   :  { %v3623_v13 = vmax.f32 %v4302_v16, %v1384_v3  ;;  %v3626_v22 = vmax.f32 %v4303_v61, %v1385_v30  ;;  %v3629_v25 = vmax.f32 %v4304_v48, %v1386_v49  ;;  %v4305_v50 = vld [vmem:[#allocation34_spill] sm:$0xff]  ;;  %v4306_v59 = vld [vmem:[#allocation35_spill] sm:$0xff]  ;;  %v4307_v7 = vld [vmem:[#allocation36_spill] sm:$0xff] }
 0x26d   :  { %v3632_v36 = vmax.f32 %v4305_v50, %v1387_v46  ;;  %v3635_v39 = vmax.f32 %v4306_v59, %v1388_v32  ;;  %v3638_v54 = vmax.f32 %v4307_v7, %v1389_v55  ;;  %v4308_v9 = vld [vmem:[#allocation37_spill] sm:$0xff]  ;;  %v4309_v3 = vld [vmem:[#allocation6_spill] sm:$0xff]  ;;  %v4310_v30 = vld [vmem:[#allocation7_spill] sm:$0xff] }
 0x26e   :  { %v3641_v8 = vmax.f32 %v4308_v9, %v1390_v5  ;;  %v3644_v16 = vmax.f32 %v4309_v3, %v1391_v19  ;;  %v3647_v61 = vmax.f32 %v4310_v30, %v1392_v15  ;;  %v4311_v49 = vld [vmem:[#allocation8_spill] sm:$0xff]  ;;  %v4312_v46 = vld [vmem:[#allocation9_spill] sm:$0xff]  ;;  %v4313_v32 = vld [vmem:[#allocation38_spill] sm:$0xff]  ;;  %v3668_v15 = vmax.f32 %v4275_v20, %v1399_v38 }
 0x26f   :  { %v3650_v48 = vmax.f32 %v4311_v49, %v1393_v34  ;;  %v3653_v50 = vmax.f32 %v4312_v46, %v1394_v4  ;;  %v3656_v59 = vmax.f32 %v4313_v32, %v1395_v41  ;;  %v4314_v55 = vld [vmem:[#allocation10_spill] sm:$0xff]  ;;  %v4315_v5 = vld [vmem:[#allocation11_spill] sm:$0xff]  ;;  %v3671_v34 = vmax.f32 %v4278_v10, %v1400_v56  ;;  %v4321_v10 = vld [vmem:[#allocation48_spill] sm:$0xff] }
 0x270   :  { %v3659_v7 = vmax.f32 %v4314_v55, %v1396_v14  ;;  %v3662_v9 = vmax.f32 %v4315_v5, %v1397_v60  ;;  %v4316_v19 = vld [vmem:[#allocation39_spill] sm:$0xff]  ;;  %v4317_v4 = vld [vmem:[#allocation42_spill] sm:$0xff]  ;;  %v3677_v41 = vmax.f32 %v4280_v63, %v1402_v51  ;;  %v3680_v14 = vmax.f32 %v4281_v62, %v1403_v12  ;;  %v4318_v60 = vld [vmem:[#allocation45_spill] sm:$0xff] }
 0x271   :  { %v3665_v3 = vmax.f32 %v4316_v19, %v1398_v17  ;;  %v3674_v30 = vmax.f32 %v4317_v4, %v1401_v26  ;;  %v1925_v49 = vpack.c.bf16 %v4318_v60, %v4318_v60  ;;  %v4319_v17 = vld [vmem:[#allocation46_spill] sm:$0xff]  ;;  %v4320_v20 = vld [vmem:[#allocation47_spill] sm:$0xff]  ;;  %v1928_v56 = vpack.c.bf16 %v4321_v10, %v4321_v10  ;;  %v4322_v26 = vld [vmem:[#allocation49_spill] sm:$0xff] }
 0x272   :  { %v1926_v46 = vpack.c.bf16 %v4319_v17, %v4319_v17  ;;  %v1927_v38 = vpack.c.bf16 %v4320_v20, %v4320_v20  ;;  %v1929_v32 = vpack.c.bf16 %v4322_v26, %v4322_v26  ;;  %v4323_v63 = vld [vmem:[#allocation50_spill] sm:$0xff]  ;;  %v4324_v62 = vld [vmem:[#allocation51_spill] sm:$0xff]  ;;  %v4325_v55 = vld [vmem:[#allocation52_spill] sm:$0xff] }
 0x273   :  { %v1930_v51 = vpack.c.bf16 %v4323_v63, %v4323_v63  ;;  %v1931_v12 = vpack.c.bf16 %v4324_v62, %v4324_v62  ;;  %v1932_v5 = vpack.c.bf16 %v4325_v55, %v4325_v55  ;;  %v4326_v19 = vld [vmem:[#allocation53_spill] sm:$0xff]  ;;  %v4327_v60 = vld [vmem:[#allocation54_spill] sm:$0xff]  ;;  %1725 = vst.msk [vmem:[%s4071_s5] sm:$0xf] %vm1724_vm2, %v1925_v49  ;;  %v4328_v20 = vld [vmem:[#allocation55_spill] sm:$0xff] }
 0x274   :  { %v1933_v4 = vpack.c.bf16 %v4326_v19, %v4326_v19  ;;  %v1934_v17 = vpack.c.bf16 %v4327_v60, %v4327_v60  ;;  %1726 = vst.msk [vmem:[%s4071_s5 + $0x4] sm:$0xf] %vm1724_vm2, %v1926_v46  ;;  %v1935_v10 = vpack.c.bf16 %v4328_v20, %v4328_v20  ;;  %v4329_v26 = vld [vmem:[#allocation56_spill] sm:$0xff]  ;;  %v4330_v62 = vld [vmem:[#allocation57_spill] sm:$0xff]  ;;  %v4331_v19 = vld [vmem:[#allocation58_spill] sm:$0xff] }
 0x275   :  { %v1936_v63 = vpack.c.bf16 %v4329_v26, %v4329_v26  ;;  %v1937_v55 = vpack.c.bf16 %v4330_v62, %v4330_v62  ;;  %v1938_v60 = vpack.c.bf16 %v4331_v19, %v4331_v19  ;;  %1727 = vst.msk [vmem:[%s4071_s5 + $0x8] sm:$0xf] %vm1724_vm2, %v1927_v38  ;;  %1728 = vst.msk [vmem:[%s4071_s5 + $0xc] sm:$0xf] %vm1724_vm2, %v1928_v56  ;;  %v4332_v49 = vld [vmem:[#allocation14_spill] sm:$0xff]  ;;  %v4333_v20 = vld [vmem:[#allocation59_spill] sm:$0xff] }
 0x276   :  { %1729 = vst.msk [vmem:[%s4071_s5 + $0x10] sm:$0xf] %vm1724_vm2, %v1929_v32  ;;  %1730 = vst.msk [vmem:[%s4071_s5 + $0x14] sm:$0xf] %vm1724_vm2, %v1930_v51  ;;  %v1939_v46 = vpack.c.bf16 %v4332_v49, %v4332_v49  ;;  %v1940_v38 = vpack.c.bf16 %v4333_v20, %v4333_v20  ;;  %v4334_v26 = vld [vmem:[#allocation60_spill] sm:$0xff]  ;;  %v1943_v32 = vpack.c.bf16 %v3544_v37, %v3544_v37 }
 0x277   :  { %v1941_v62 = vpack.c.bf16 %v4334_v26, %v4334_v26  ;;  %v4335_v56 = vld [vmem:[#allocation40_spill] sm:$0xff]  ;;  %1731 = vst.msk [vmem:[%s4071_s5 + $0x18] sm:$0xf] %vm1724_vm2, %v1931_v12  ;;  %1732 = vst.msk [vmem:[%s4071_s5 + $0x1c] sm:$0xf] %vm1724_vm2, %v1932_v5  ;;  %v1944_v51 = vpack.c.bf16 %v3548_v11, %v3548_v11  ;;  %v1945_v12 = vpack.c.bf16 %v3551_v2, %v3551_v2 }
 0x278   :  { %v1942_v19 = vpack.c.bf16 %v4335_v56, %v4335_v56  ;;  %1733 = vst.msk [vmem:[%s4071_s5 + $0x20] sm:$0xf] %vm1724_vm2, %v1933_v4  ;;  %1734 = vst.msk [vmem:[%s4071_s5 + $0x24] sm:$0xf] %vm1724_vm2, %v1934_v17  ;;  %v1946_v5 = vpack.c.bf16 %v3554_v58, %v3554_v58  ;;  %v1947_v37 = vpack.c.bf16 %v3557_v28, %v3557_v28 }
 0x279   :  { %1735 = vst.msk [vmem:[%s4071_s5 + $0x28] sm:$0xf] %vm1724_vm2, %v1935_v10  ;;  %1736 = vst.msk [vmem:[%s4071_s5 + $0x2c] sm:$0xf] %vm1724_vm2, %v1936_v63  ;;  %v1948_v11 = vpack.c.bf16 %v3560_v18, %v3560_v18  ;;  %v1949_v2 = vpack.c.bf16 %v3563_v44, %v3563_v44  ;;  %v1950_v58 = vpack.c.bf16 %v3566_v29, %v3566_v29 }
 0x27a   :  { %1737 = vst.msk [vmem:[%s4071_s5 + $0x30] sm:$0xf] %vm1724_vm2, %v1937_v55  ;;  %1738 = vst.msk [vmem:[%s4071_s5 + $0x34] sm:$0xf] %vm1724_vm2, %v1938_v60  ;;  %v1951_v18 = vpack.c.bf16 %v3569_v0, %v3569_v0  ;;  %v1952_v28 = vpack.c.bf16 %v3572_v1, %v3572_v1  ;;  %v1953_v44 = vpack.c.bf16 %v3575_v45, %v3575_v45 }
 0x27b   :  { %1739 = vst.msk [vmem:[%s4071_s5 + $0x38] sm:$0xf] %vm1724_vm2, %v1939_v46  ;;  %1740 = vst.msk [vmem:[%s4071_s5 + $0x3c] sm:$0xf] %vm1724_vm2, %v1940_v38  ;;  %v1954_v29 = vpack.c.bf16 %v3578_v27, %v3578_v27  ;;  %v1955_v0 = vpack.c.bf16 %v3581_v52, %v3581_v52  ;;  %v1956_v1 = vpack.c.bf16 %v3584_v24, %v3584_v24 }
 0x27c   :  { %1741 = vst.msk [vmem:[%s4071_s5 + $0x40] sm:$0xf] %vm1724_vm2, %v1941_v62  ;;  %1742 = vst.msk [vmem:[%s4071_s5 + $0x44] sm:$0xf] %vm1724_vm2, %v1942_v19  ;;  %v1957_v45 = vpack.c.bf16 %v3587_v35, %v3587_v35  ;;  %v1958_v27 = vpack.c.bf16 %v3590_v43, %v3590_v43  ;;  %v1959_v52 = vpack.c.bf16 %v3593_v6, %v3593_v6 }
 0x27d   :  { %1743 = vst.msk [vmem:[%s4071_s5 + $0x48] sm:$0xf] %vm1724_vm2, %v1943_v32  ;;  %1744 = vst.msk [vmem:[%s4071_s5 + $0x4c] sm:$0xf] %vm1724_vm2, %v1944_v51  ;;  %v1960_v24 = vpack.c.bf16 %v3596_v47, %v3596_v47  ;;  %v1961_v35 = vpack.c.bf16 %v3599_v23, %v3599_v23  ;;  %v1962_v43 = vpack.c.bf16 %v3602_v40, %v3602_v40 }
 0x27e   :  { %1745 = vst.msk [vmem:[%s4071_s5 + $0x50] sm:$0xf] %vm1724_vm2, %v1945_v12  ;;  %1746 = vst.msk [vmem:[%s4071_s5 + $0x54] sm:$0xf] %vm1724_vm2, %v1946_v5  ;;  %v1963_v6 = vpack.c.bf16 %v3605_v42, %v3605_v42  ;;  %v1964_v47 = vpack.c.bf16 %v3608_v31, %v3608_v31  ;;  %v1965_v23 = vpack.c.bf16 %v3611_v33, %v3611_v33 }
 0x27f   :  { %1747 = vst.msk [vmem:[%s4071_s5 + $0x58] sm:$0xf] %vm1724_vm2, %v1947_v37  ;;  %1748 = vst.msk [vmem:[%s4071_s5 + $0x5c] sm:$0xf] %vm1724_vm2, %v1948_v11  ;;  %v1966_v40 = vpack.c.bf16 %v3614_v57, %v3614_v57  ;;  %v1967_v42 = vpack.c.bf16 %v3617_v53, %v3617_v53  ;;  %v1968_v31 = vpack.c.bf16 %v3620_v21, %v3620_v21 }
 0x280   :  { %1749 = vst.msk [vmem:[%s4071_s5 + $0x60] sm:$0xf] %vm1724_vm2, %v1949_v2  ;;  %1750 = vst.msk [vmem:[%s4071_s5 + $0x64] sm:$0xf] %vm1724_vm2, %v1950_v58  ;;  %v1969_v33 = vpack.c.bf16 %v3623_v13, %v3623_v13  ;;  %v1970_v57 = vpack.c.bf16 %v3626_v22, %v3626_v22  ;;  %v1971_v53 = vpack.c.bf16 %v3629_v25, %v3629_v25 }
 0x281   :  { %1751 = vst.msk [vmem:[%s4071_s5 + $0x68] sm:$0xf] %vm1724_vm2, %v1951_v18  ;;  %1752 = vst.msk [vmem:[%s4071_s5 + $0x6c] sm:$0xf] %vm1724_vm2, %v1952_v28  ;;  %v1972_v21 = vpack.c.bf16 %v3632_v36, %v3632_v36  ;;  %v1973_v13 = vpack.c.bf16 %v3635_v39, %v3635_v39  ;;  %v1974_v22 = vpack.c.bf16 %v3638_v54, %v3638_v54 }
 0x282   :  { %1753 = vst.msk [vmem:[%s4071_s5 + $0x70] sm:$0xf] %vm1724_vm2, %v1953_v44  ;;  %1754 = vst.msk [vmem:[%s4071_s5 + $0x74] sm:$0xf] %vm1724_vm2, %v1954_v29  ;;  %v1975_v25 = vpack.c.bf16 %v3641_v8, %v3641_v8  ;;  %v1976_v36 = vpack.c.bf16 %v3644_v16, %v3644_v16  ;;  %v1977_v39 = vpack.c.bf16 %v3647_v61, %v3647_v61 }
 0x283   :  { %1755 = vst.msk [vmem:[%s4071_s5 + $0x78] sm:$0xf] %vm1724_vm2, %v1955_v0  ;;  %1756 = vst.msk [vmem:[%s4071_s5 + $0x7c] sm:$0xf] %vm1724_vm2, %v1956_v1  ;;  %v1978_v54 = vpack.c.bf16 %v3650_v48, %v3650_v48  ;;  %v1979_v8 = vpack.c.bf16 %v3653_v50, %v3653_v50  ;;  %v1980_v16 = vpack.c.bf16 %v3656_v59, %v3656_v59 }
 0x284   :  { %1757 = vst.msk [vmem:[%s4071_s5 + $0x80] sm:$0xf] %vm1724_vm2, %v1957_v45  ;;  %1758 = vst.msk [vmem:[%s4071_s5 + $0x84] sm:$0xf] %vm1724_vm2, %v1958_v27  ;;  %v1981_v61 = vpack.c.bf16 %v3659_v7, %v3659_v7  ;;  %v1982_v48 = vpack.c.bf16 %v3662_v9, %v3662_v9  ;;  %v1983_v50 = vpack.c.bf16 %v3665_v3, %v3665_v3 }
 0x285   :  { %1759 = vst.msk [vmem:[%s4071_s5 + $0x88] sm:$0xf] %vm1724_vm2, %v1959_v52  ;;  %1760 = vst.msk [vmem:[%s4071_s5 + $0x8c] sm:$0xf] %vm1724_vm2, %v1960_v24  ;;  %v1984_v59 = vpack.c.bf16 %v3668_v15, %v3668_v15  ;;  %v1985_v7 = vpack.c.bf16 %v3671_v34, %v3671_v34  ;;  %v1986_v9 = vpack.c.bf16 %v3674_v30, %v3674_v30 }
 0x286   :  { %1761 = vst.msk [vmem:[%s4071_s5 + $0x90] sm:$0xf] %vm1724_vm2, %v1961_v35  ;;  %1762 = vst.msk [vmem:[%s4071_s5 + $0x94] sm:$0xf] %vm1724_vm2, %v1962_v43  ;;  %v1987_v3 = vpack.c.bf16 %v3677_v41, %v3677_v41  ;;  %v1988_v15 = vpack.c.bf16 %v3680_v14, %v3680_v14 }
 0x287   :  { %1763 = vst.msk [vmem:[%s4071_s5 + $0x98] sm:$0xf] %vm1724_vm2, %v1963_v6  ;;  %1764 = vst.msk [vmem:[%s4071_s5 + $0x9c] sm:$0xf] %vm1724_vm2, %v1964_v47 }
 0x288   :  { %1765 = vst.msk [vmem:[%s4071_s5 + $0xa0] sm:$0xf] %vm1724_vm2, %v1965_v23  ;;  %1766 = vst.msk [vmem:[%s4071_s5 + $0xa4] sm:$0xf] %vm1724_vm2, %v1966_v40 }
 0x289   :  { %1767 = vst.msk [vmem:[%s4071_s5 + $0xa8] sm:$0xf] %vm1724_vm2, %v1967_v42  ;;  %1768 = vst.msk [vmem:[%s4071_s5 + $0xac] sm:$0xf] %vm1724_vm2, %v1968_v31 }
 0x28a   :  { %1769 = vst.msk [vmem:[%s4071_s5 + $0xb0] sm:$0xf] %vm1724_vm2, %v1969_v33  ;;  %1770 = vst.msk [vmem:[%s4071_s5 + $0xb4] sm:$0xf] %vm1724_vm2, %v1970_v57 }
 0x28b   :  { %1771 = vst.msk [vmem:[%s4071_s5 + $0xb8] sm:$0xf] %vm1724_vm2, %v1971_v53  ;;  %1772 = vst.msk [vmem:[%s4071_s5 + $0xbc] sm:$0xf] %vm1724_vm2, %v1972_v21 }
 0x28c   :  { %1773 = vst.msk [vmem:[%s4071_s5 + $0xc0] sm:$0xf] %vm1724_vm2, %v1973_v13  ;;  %1774 = vst.msk [vmem:[%s4071_s5 + $0xc4] sm:$0xf] %vm1724_vm2, %v1974_v22 }
 0x28d   :  { %1775 = vst.msk [vmem:[%s4071_s5 + $0xc8] sm:$0xf] %vm1724_vm2, %v1975_v25  ;;  %1776 = vst.msk [vmem:[%s4071_s5 + $0xcc] sm:$0xf] %vm1724_vm2, %v1976_v36 }
 0x28e   :  { %1777 = vst.msk [vmem:[%s4071_s5 + $0xd0] sm:$0xf] %vm1724_vm2, %v1977_v39  ;;  %1778 = vst.msk [vmem:[%s4071_s5 + $0xd4] sm:$0xf] %vm1724_vm2, %v1978_v54 }
 0x28f   :  { %1779 = vst.msk [vmem:[%s4071_s5 + $0xd8] sm:$0xf] %vm1724_vm2, %v1979_v8  ;;  %1780 = vst.msk [vmem:[%s4071_s5 + $0xdc] sm:$0xf] %vm1724_vm2, %v1980_v16 }
 0x290   :  { %1781 = vst.msk [vmem:[%s4071_s5 + $0xe0] sm:$0xf] %vm1724_vm2, %v1981_v61  ;;  %1782 = vst.msk [vmem:[%s4071_s5 + $0xe4] sm:$0xf] %vm1724_vm2, %v1982_v48 }
 0x291   :  { %1783 = vst.msk [vmem:[%s4071_s5 + $0xe8] sm:$0xf] %vm1724_vm2, %v1983_v50  ;;  %1784 = vst.msk [vmem:[%s4071_s5 + $0xec] sm:$0xf] %vm1724_vm2, %v1984_v59 }
 0x292   :  { %1785 = vst.msk [vmem:[%s4071_s5 + $0xf0] sm:$0xf] %vm1724_vm2, %v1985_v7  ;;  %1786 = vst.msk [vmem:[%s4071_s5 + $0xf4] sm:$0xf] %vm1724_vm2, %v1986_v9 }
 0x293   :  { %1787 = vst.msk [vmem:[%s4071_s5 + $0xf8] sm:$0xf] %vm1724_vm2, %v1987_v3  ;;  %1788 = vst.msk [vmem:[%s4071_s5 + $0xfc] sm:$0xf] %vm1724_vm2, %v1988_v15 }

// kernel: ndiscriminator_forward.5
= control target key start
LH: loop header
LB: loop body
LE: loop exit
PB: predicated region body
PF: predicated region fallthrough
CT: control target
= control target key end

     0   :  { %s2735_s1 = inlined_call_operand.vmem [shape: bf16[1024,128], index: 1, kind: input, shape index: {}]   ;;  %s2736_s0 = inlined_call_operand.vmem [shape: bf16[128,1024], index: 0, kind: input, shape index: {}]   ;;  %s2737_s2 = inlined_call_operand.vmem [shape: f32[1,128], index: 2, kind: input, shape index: {}]   ;;  %s2738_s3 = inlined_call_operand.vmem [shape: f32[1,128], index: 3, kind: input, shape index: {}]   ;;  %s2739_s4 = inlined_call_operand.vmem [shape: f32[1,128], index: 4, kind: input, shape index: {}]   ;;  %s2740_s5 = inlined_call_operand.vmem [shape: bf16[128,128], index: 5, kind: output, shape index: {}]  }
   0x1   :  { %v2057_v0 = vld [vmem:[%s2735_s1 + $0x40] sm:$0xff]   ;;  %v2061_v4 = vld [vmem:[%s2735_s1 + $0x48] sm:$0xff]   ;;  %v2065_v8 = vld [vmem:[%s2735_s1 + $0x50] sm:$0xff]  }
   0x2   :  { %v2058_v1 = vld [vmem:[%s2735_s1 + $0xc0] sm:$0xff]   ;;  %1801 = vmatprep.subr.bf16.mxu0 %v2057_v0  ;;  %v2062_v5 = vld [vmem:[%s2735_s1 + $0xc8] sm:$0xff]   ;;  %v2066_v9 = vld [vmem:[%s2735_s1 + $0xd0] sm:$0xff]  }
   0x3   :  { %v2059_v2 = vld [vmem:[%s2735_s1] sm:$0xff]   ;;  %1865 = vmatprep.subr.bf16.mxu1 %v2058_v1  ;;  %v2063_v6 = vld [vmem:[%s2735_s1 + $0x8] sm:$0xff]   ;;  %v2067_v10 = vld [vmem:[%s2735_s1 + $0x10] sm:$0xff]  }
   0x4   :  { %v2060_v3 = vld [vmem:[%s2735_s1 + $0x80] sm:$0xff]   ;;  %1802 = vmatpush3.bf16.msra.mxu0 %v2059_v2  ;;  %v2064_v7 = vld [vmem:[%s2735_s1 + $0x88] sm:$0xff]   ;;  %v2068_v11 = vld [vmem:[%s2735_s1 + $0x90] sm:$0xff]  }
   0x5   :  { %1866 = vmatpush3.bf16.msra.mxu1 %v2060_v3  ;;  %1803 = vmatprep.subr.bf16.mxu0 %v2061_v4  ;;  %v2069_v12 = vld [vmem:[%s2735_s1 + $0x58] sm:$0xff]   ;;  %v2073_v16 = vld [vmem:[%s2735_s1 + $0x60] sm:$0xff]   ;;  %v2077_v20 = vld [vmem:[%s2735_s1 + $0x68] sm:$0xff]  }
   0x6   :  { %1867 = vmatprep.subr.bf16.mxu1 %v2062_v5  ;;  %v2070_v13 = vld [vmem:[%s2735_s1 + $0xd8] sm:$0xff]   ;;  %v2074_v17 = vld [vmem:[%s2735_s1 + $0xe0] sm:$0xff]   ;;  %v2078_v21 = vld [vmem:[%s2735_s1 + $0xe8] sm:$0xff]  }
   0x7   :  { %v2071_v14 = vld [vmem:[%s2735_s1 + $0x18] sm:$0xff]   ;;  %v2075_v18 = vld [vmem:[%s2735_s1 + $0x20] sm:$0xff]   ;;  %v2079_v22 = vld [vmem:[%s2735_s1 + $0x28] sm:$0xff]  }
   0x8   :  { %1804 = vmatpush3.bf16.msra.mxu0 %v2063_v6  ;;  %v2072_v15 = vld [vmem:[%s2735_s1 + $0x98] sm:$0xff]   ;;  %v2076_v19 = vld [vmem:[%s2735_s1 + $0xa0] sm:$0xff]   ;;  %v2080_v23 = vld [vmem:[%s2735_s1 + $0xa8] sm:$0xff]  }
   0x9   :  { %1868 = vmatpush3.bf16.msra.mxu1 %v2064_v7  ;;  %1805 = vmatprep.subr.bf16.mxu0 %v2065_v8  ;;  %v2081_v24 = vld [vmem:[%s2735_s1 + $0x70] sm:$0xff]   ;;  %v2085_v28 = vld [vmem:[%s2735_s1 + $0x78] sm:$0xff]   ;;  %v21_v32 = vld [vmem:[%s2736_s0] sm:$0xff] }
   0xa   :  { %1869 = vmatprep.subr.bf16.mxu1 %v2066_v9  ;;  %v2082_v25 = vld [vmem:[%s2735_s1 + $0xf0] sm:$0xff]   ;;  %v2086_v29 = vld [vmem:[%s2735_s1 + $0xf8] sm:$0xff]   ;;  %v25_v33 = vld [vmem:[%s2736_s0 + $0x20] sm:$0xff] }
   0xb   :  { %v2083_v26 = vld [vmem:[%s2735_s1 + $0x30] sm:$0xff]   ;;  %v2087_v30 = vld [vmem:[%s2735_s1 + $0x38] sm:$0xff]   ;;  %v22_v34 = vld [vmem:[%s2736_s0 + $0x8] sm:$0xff]  ;;  %v1594_v35 = vcombine.low %v21_v32, %v25_v33  ;;  %v1595_v36 = vcombine.high %v21_v32, %v25_v33 }
   0xc   :  { %1806 = vmatpush3.bf16.msra.mxu0 %v2067_v10  ;;  %v2084_v27 = vld [vmem:[%s2735_s1 + $0xb0] sm:$0xff]   ;;  %v2088_v31 = vld [vmem:[%s2735_s1 + $0xb8] sm:$0xff]   ;;  %v26_v37 = vld [vmem:[%s2736_s0 + $0x28] sm:$0xff] }
   0xd   :  { %1870 = vmatpush3.bf16.msra.mxu1 %v2068_v11  ;;  %1807 = vmatprep.subr.bf16.mxu0 %v2069_v12  ;;  %v1596_v38 = vcombine.low %v22_v34, %v26_v37  ;;  %v1597_v39 = vcombine.high %v22_v34, %v26_v37  ;;  %v2089_v40 = vld [vmem:[%s2735_s1 + $0x140] sm:$0xff]   ;;  %v30_v47 = vld [vmem:[%s2736_s0 + $0x48] sm:$0xff]  ;;  %v2097_v62 = vld [vmem:[%s2735_s1 + $0x150] sm:$0xff]  }
   0xe   :  { %1871 = vmatprep.subr.bf16.mxu1 %v2070_v13  ;;  %956 = vmatprep.mubr.bf16.mxu0 %v1595_v36  ;;  %v2090_v41 = vld [vmem:[%s2735_s1 + $0x100] sm:$0xff]   ;;  %v34_v48 = vld [vmem:[%s2736_s0 + $0x68] sm:$0xff]  ;;  %v2098_v63 = vld [vmem:[%s2735_s1 + $0x110] sm:$0xff]  }
   0xf   :  { %1053 = vmatprep.mubr.bf16.mxu1 %v1597_v39  ;;  %v2091_v42 = vld [vmem:[%s2735_s1 + $0x1c0] sm:$0xff]   ;;  %v1605_v49 = vcombine.high %v30_v47, %v34_v48  ;;  %v2093_v50 = vld [vmem:[%s2735_s1 + $0x148] sm:$0xff]   ;;  %v1604_v53 = vcombine.low %v30_v47, %v34_v48  ;;  %v2099_v0 = vld [vmem:[%s2735_s1 + $0x1d0] sm:$0xff]  }
  0x10   :  { %1808 = vmatpush3.bf16.msra.mxu0 %v2071_v14  ;;  %v2092_v43 = vld [vmem:[%s2735_s1 + $0x180] sm:$0xff]   ;;  %v2094_v52 = vld [vmem:[%s2735_s1 + $0x108] sm:$0xff]   ;;  %v2100_v1 = vld [vmem:[%s2735_s1 + $0x190] sm:$0xff]  }
  0x11   :  { %1872 = vmatpush3.bf16.msra.mxu1 %v2072_v15  ;;  %1809 = vmatprep.subr.bf16.mxu0 %v2073_v16  ;;  %v29_v44 = vld [vmem:[%s2736_s0 + $0x40] sm:$0xff]  ;;  %v2095_v54 = vld [vmem:[%s2735_s1 + $0x1c8] sm:$0xff]   ;;  %v2101_v10 = vld [vmem:[%s2735_s1 + $0x158] sm:$0xff]  }
  0x12   :  { %1873 = vmatprep.subr.bf16.mxu1 %v2074_v17  ;;  %v33_v45 = vld [vmem:[%s2736_s0 + $0x60] sm:$0xff]  ;;  %v2096_v55 = vld [vmem:[%s2735_s1 + $0x188] sm:$0xff]   ;;  %v2102_v11 = vld [vmem:[%s2735_s1 + $0x118] sm:$0xff]  }
  0x13   :  { %v1603_v46 = vcombine.high %v29_v44, %v33_v45  ;;  %v1602_v51 = vcombine.low %v29_v44, %v33_v45  ;;  %v37_v56 = vld [vmem:[%s2736_s0 + $0x80] sm:$0xff]  ;;  %v38_v58 = vld [vmem:[%s2736_s0 + $0x88] sm:$0xff]  ;;  %v2103_v12 = vld [vmem:[%s2735_s1 + $0x1d8] sm:$0xff]  }
  0x14   :  { %1810 = vmatpush3.bf16.msra.mxu0 %v2075_v18  ;;  %v41_v57 = vld [vmem:[%s2736_s0 + $0xa0] sm:$0xff]  ;;  %v42_v59 = vld [vmem:[%s2736_s0 + $0xa8] sm:$0xff]  ;;  %v2104_v13 = vld [vmem:[%s2735_s1 + $0x198] sm:$0xff]  }
  0x15   :  { %1874 = vmatpush3.bf16.msra.mxu1 %v2076_v19  ;;  %1811 = vmatprep.subr.bf16.mxu0 %v2077_v20  ;;  %v1611_v60 = vcombine.high %v37_v56, %v41_v57  ;;  %v1613_v61 = vcombine.high %v38_v58, %v42_v59  ;;  %v1610_v2 = vcombine.low %v37_v56, %v41_v57  ;;  %v45_v3 = vld [vmem:[%s2736_s0 + $0xc0] sm:$0xff]  ;;  %v46_v5 = vld [vmem:[%s2736_s0 + $0xc8] sm:$0xff]  ;;  %v2114_v39 = vld [vmem:[%s2735_s1 + $0x130] sm:$0xff]  }
  0x16   :  { %1875 = vmatprep.subr.bf16.mxu1 %v2078_v21  ;;  %v49_v4 = vld [vmem:[%s2736_s0 + $0xe0] sm:$0xff]  ;;  %v1612_v6 = vcombine.low %v38_v58, %v42_v59  ;;  %v50_v8 = vld [vmem:[%s2736_s0 + $0xe8] sm:$0xff]  ;;  %v2118_v48 = vld [vmem:[%s2735_s1 + $0x138] sm:$0xff]  }
  0x17   :  { %v1619_v7 = vcombine.high %v45_v3, %v49_v4  ;;  %v1621_v9 = vcombine.high %v46_v5, %v50_v8  ;;  %v53_v14 = vld [vmem:[%s2736_s0 + $0x100] sm:$0xff]  ;;  %v54_v16 = vld [vmem:[%s2736_s0 + $0x108] sm:$0xff]  ;;  %v1618_v19 = vcombine.low %v45_v3, %v49_v4  ;;  %v1620_v21 = vcombine.low %v46_v5, %v50_v8  ;;  %v32_v8 = vld [vmem:[%s2736_s0 + $0x58] sm:$0xff] }
  0x18   :  { %1812 = vmatpush3.bf16.msra.mxu0 %v2079_v22  ;;  %v57_v15 = vld [vmem:[%s2736_s0 + $0x120] sm:$0xff]  ;;  %v58_v17 = vld [vmem:[%s2736_s0 + $0x128] sm:$0xff] }
  0x19   :  { %1876 = vmatpush3.bf16.msra.mxu1 %v2080_v23  ;;  %1813 = vmatprep.subr.bf16.mxu0 %v2081_v24  ;;  %v2105_v18 = vld [vmem:[%s2735_s1 + $0x160] sm:$0xff]   ;;  %v1627_v22 = vcombine.high %v53_v14, %v57_v15  ;;  %v1629_v24 = vcombine.high %v54_v16, %v58_v17  ;;  %v2111_v32 = vld [vmem:[%s2735_s1 + $0x1e8] sm:$0xff]   ;;  %v1626_v34 = vcombine.low %v53_v14, %v57_v15  ;;  %v39_v14 = vld [vmem:[%s2736_s0 + $0x90] sm:$0xff] }
  0x1a   :  { %1877 = vmatprep.subr.bf16.mxu1 %v2082_v25  ;;  %v2106_v20 = vld [vmem:[%s2735_s1 + $0x120] sm:$0xff]   ;;  %v2112_v33 = vld [vmem:[%s2735_s1 + $0x1a8] sm:$0xff]   ;;  %v43_v15 = vld [vmem:[%s2736_s0 + $0xb0] sm:$0xff] }
  0x1b   :  { %v2107_v23 = vld [vmem:[%s2735_s1 + $0x1e0] sm:$0xff]   ;;  %v70_v44 = vld [vmem:[%s2736_s0 + $0x188] sm:$0xff] }
  0x1c   :  { %1814 = vmatpush3.bf16.msra.mxu0 %v2083_v26  ;;  %v2108_v25 = vld [vmem:[%s2735_s1 + $0x1a0] sm:$0xff]   ;;  %v74_v45 = vld [vmem:[%s2736_s0 + $0x1a8] sm:$0xff] }
  0x1d   :  { %1878 = vmatpush3.bf16.msra.mxu1 %v2084_v27  ;;  %1815 = vmatprep.subr.bf16.mxu0 %v2085_v28  ;;  %v61_v26 = vld [vmem:[%s2736_s0 + $0x140] sm:$0xff]  ;;  %v2109_v28 = vld [vmem:[%s2735_s1 + $0x168] sm:$0xff]   ;;  %v1644_v59 = vcombine.low %v70_v44, %v74_v45 }
  0x1e   :  { %1879 = vmatprep.subr.bf16.mxu1 %v2086_v29  ;;  %v65_v27 = vld [vmem:[%s2736_s0 + $0x160] sm:$0xff]  ;;  %v62_v29 = vld [vmem:[%s2736_s0 + $0x148] sm:$0xff] }
  0x1f   :  { %v1635_v36 = vcombine.high %v61_v26, %v65_v27  ;;  %v1634_v47 = vcombine.low %v61_v26, %v65_v27  ;;  %v78_v56 = vld [vmem:[%s2736_s0 + $0x1c8] sm:$0xff]  ;;  %v1614_v26 = vcombine.low %v39_v14, %v43_v15 }
  0x20   :  { %1816 = vmatpush3.bf16.msra.mxu0 %v2087_v30  ;;  %v66_v30 = vld [vmem:[%s2736_s0 + $0x168] sm:$0xff] }
  0x21   :  { %1880 = vmatpush3.bf16.msra.mxu1 %v2088_v31  ;;  %1929 = vmatprep.subr.bf16.mxu0 %v2089_v40  ;;  %v2110_v31 = vld [vmem:[%s2735_s1 + $0x128] sm:$0xff]   ;;  %v1637_v37 = vcombine.high %v62_v29, %v66_v30  ;;  %v2115_v40 = vld [vmem:[%s2735_s1 + $0x1f0] sm:$0xff]  }
  0x22   :  { %1993 = vmatprep.subr.bf16.mxu1 %v2091_v42  ;;  %v73_v42 = vld [vmem:[%s2736_s0 + $0x1a0] sm:$0xff]  ;;  %v82_v57 = vld [vmem:[%s2736_s0 + $0x1e8] sm:$0xff] }
  0x23   :  { %957 = vmatmul.mubr.bf16.vlgmr.msra.gmra.mrb[0].mxu0 %v1594_v35  ;;  %v1628_v35 = vcombine.low %v54_v16, %v58_v17  ;;  %v1652_v3 = vcombine.low %v78_v56, %v82_v57  ;;  %v40_v16 = vld [vmem:[%s2736_s0 + $0x98] sm:$0xff] }
  0x24   :  { %1054 = vmatmul.mubr.bf16.vlgmr.msra.gmra.mrb[0].mxu1 %v1596_v38  ;;  %1930 = vmatpush3.bf16.msra.mxu0 %v2090_v41  ;;  %v2113_v38 = vld [vmem:[%s2735_s1 + $0x170] sm:$0xff]   ;;  %v69_v41 = vld [vmem:[%s2736_s0 + $0x180] sm:$0xff]  ;;  %v44_v17 = vld [vmem:[%s2736_s0 + $0xb8] sm:$0xff] }
  0x25   :  { %1994 = vmatpush3.bf16.msra.mxu1 %v2092_v43  ;;  %964 = vmatprep.mubr.bf16.mxu0 %v1603_v46  ;;  %v2116_v43 = vld [vmem:[%s2735_s1 + $0x1b0] sm:$0xff]   ;;  %v2117_v46 = vld [vmem:[%s2735_s1 + $0x178] sm:$0xff]   ;;  %v1642_v58 = vcombine.low %v69_v41, %v73_v42  ;;  %v1616_v27 = vcombine.low %v40_v16, %v44_v17 }
  0x26   :  { %1061 = vmatprep.mubr.bf16.mxu1 %v1605_v49  ;;  %1931 = vmatprep.subr.bf16.mxu0 %v2093_v50  ;;  %v1636_v49 = vcombine.low %v62_v29, %v66_v30  ;;  %v1643_v50 = vcombine.high %v69_v41, %v73_v42  ;;  %v55_v30 = vld [vmem:[%s2736_s0 + $0x110] sm:$0xff]  ;;  %v68_v41 = vld [vmem:[%s2736_s0 + $0x178] sm:$0xff] }
  0x27   :  { %1995 = vmatprep.subr.bf16.mxu1 %v2095_v54  ;;  %v77_v54 = vld [vmem:[%s2736_s0 + $0x1c0] sm:$0xff] }
  0x28   :  { %1932 = vmatpush3.bf16.msra.mxu0 %v2094_v52  ;;  %v1645_v52 = vcombine.high %v70_v44, %v74_v45 }
  0x29   :  { %1996 = vmatpush3.bf16.msra.mxu1 %v2096_v55  ;;  %1933 = vmatprep.subr.bf16.mxu0 %v2097_v62  ;;  %v81_v55 = vld [vmem:[%s2736_s0 + $0x1e0] sm:$0xff]  ;;  %v23_v62 = vld [vmem:[%s2736_s0 + $0x10] sm:$0xff] }
  0x2a   :  { %1997 = vmatprep.subr.bf16.mxu1 %v2099_v0  ;;  %v24_v0 = vld [vmem:[%s2736_s0 + $0x18] sm:$0xff] }
  0x2b   :  { %965 = vmatmul.mubr.bf16.gmra.mrb[4].mxu0 %v1602_v51  ;;  %v2119_v51 = vld [vmem:[%s2735_s1 + $0x1f8] sm:$0xff]  }
  0x2c   :  { %1062 = vmatmul.mubr.bf16.gmra.mrb[4].mxu1 %v1604_v53  ;;  %972 = vmatprep.mubr.bf16.mxu0 %v1611_v60  ;;  %v2120_v53 = vld [vmem:[%s2735_s1 + $0x1b8] sm:$0xff]   ;;  %v1651_v60 = vcombine.high %v77_v54, %v81_v55 }
  0x2d   :  { %1069 = vmatprep.mubr.bf16.mxu1 %v1613_v61  ;;  %1934 = vmatpush3.bf16.msra.mxu0 %v2098_v63  ;;  %v1653_v61 = vcombine.high %v78_v56, %v82_v57  ;;  %v27_v63 = vld [vmem:[%s2736_s0 + $0x30] sm:$0xff]  ;;  %v80_v56 = vld [vmem:[%s2736_s0 + $0x1d8] sm:$0xff] }
  0x2e   :  { %1998 = vmatpush3.bf16.msra.mxu1 %v2100_v1  ;;  %1935 = vmatprep.subr.bf16.mxu0 %v2101_v10  ;;  %v28_v1 = vld [vmem:[%s2736_s0 + $0x38] sm:$0xff]  ;;  %v1599_v4 = vcombine.high %v23_v62, %v27_v63  ;;  %v1598_v10 = vcombine.low %v23_v62, %v27_v63 }
  0x2f   :  { %1999 = vmatprep.subr.bf16.mxu1 %v2103_v12  ;;  %v1601_v5 = vcombine.high %v24_v0, %v28_v1  ;;  %v84_v57 = vld [vmem:[%s2736_s0 + $0x1f8] sm:$0xff] }
  0x30   :  { %v1656_v63 = vcombine.low %v80_v56, %v84_v57 }
  0x31   :  { %1936 = vmatpush3.bf16.msra.mxu0 %v2102_v11  ;;  %v1600_v11 = vcombine.low %v24_v0, %v28_v1 }
  0x32   :  { %2000 = vmatpush3.bf16.msra.mxu1 %v2104_v13  ;;  %1937 = vmatprep.subr.bf16.mxu0 %v2105_v18 }
  0x33   :  { %973 = vmatmul.mubr.bf16.gmra.mrb[8].mxu0 %v1610_v2  ;;  %2001 = vmatprep.subr.bf16.mxu1 %v2107_v23  ;;  %v1650_v2 = vcombine.low %v77_v54, %v81_v55  ;;  %v51_v23 = vld [vmem:[%s2736_s0 + $0xf0] sm:$0xff] }
  0x34   :  { %1070 = vmatmul.mubr.bf16.gmra.mrb[8].mxu1 %v1612_v6  ;;  %980 = vmatprep.mubr.bf16.mxu0 %v1619_v7  ;;  %v31_v6 = vld [vmem:[%s2736_s0 + $0x50] sm:$0xff] }
  0x35   :  { %1077 = vmatprep.mubr.bf16.mxu1 %v1621_v9  ;;  %1938 = vmatpush3.bf16.msra.mxu0 %v2106_v20  ;;  %v35_v7 = vld [vmem:[%s2736_s0 + $0x70] sm:$0xff]  ;;  %v36_v9 = vld [vmem:[%s2736_s0 + $0x78] sm:$0xff]  ;;  %v1615_v20 = vcombine.high %v39_v14, %v43_v15 }
  0x36   :  { %2002 = vmatpush3.bf16.msra.mxu1 %v2108_v25  ;;  %1939 = vmatprep.subr.bf16.mxu0 %v2109_v28  ;;  %v1607_v12 = vcombine.high %v31_v6, %v35_v7  ;;  %v1609_v13 = vcombine.high %v32_v8, %v36_v9  ;;  %v1606_v18 = vcombine.low %v31_v6, %v35_v7  ;;  %v52_v25 = vld [vmem:[%s2736_s0 + $0xf8] sm:$0xff]  ;;  %v79_v54 = vld [vmem:[%s2736_s0 + $0x1d0] sm:$0xff] }
  0x37   :  { %2003 = vmatprep.subr.bf16.mxu1 %v2111_v32  ;;  %v56_v32 = vld [vmem:[%s2736_s0 + $0x118] sm:$0xff]  ;;  %v83_v55 = vld [vmem:[%s2736_s0 + $0x1f0] sm:$0xff] }
  0x38   :  { %v1654_v62 = vcombine.low %v79_v54, %v83_v55 }
  0x39   :  { %1940 = vmatpush3.bf16.msra.mxu0 %v2110_v31  ;;  %v59_v31 = vld [vmem:[%s2736_s0 + $0x130] sm:$0xff] }
  0x3a   :  { %2004 = vmatpush3.bf16.msra.mxu1 %v2112_v33  ;;  %1941 = vmatprep.subr.bf16.mxu0 %v2113_v38  ;;  %v60_v33 = vld [vmem:[%s2736_s0 + $0x138] sm:$0xff]  ;;  %v63_v38 = vld [vmem:[%s2736_s0 + $0x150] sm:$0xff]  ;;  %v1630_v42 = vcombine.low %v55_v30, %v59_v31 }
  0x3b   :  { %981 = vmatmul.mubr.bf16.gmra.mrb[12].mxu0 %v1618_v19  ;;  %2005 = vmatprep.subr.bf16.mxu1 %v2115_v40  ;;  %v1608_v19 = vcombine.low %v32_v8, %v36_v9  ;;  %v64_v40 = vld [vmem:[%s2736_s0 + $0x158] sm:$0xff] }
  0x3c   :  { %1078 = vmatmul.mubr.bf16.gmra.mrb[12].mxu1 %v1620_v21  ;;  %988 = vmatprep.mubr.bf16.mxu0 %v1627_v22  ;;  %v1617_v21 = vcombine.high %v40_v16, %v44_v17  ;;  %v47_v22 = vld [vmem:[%s2736_s0 + $0xd0] sm:$0xff]  ;;  %v1641_v45 = vcombine.high %v64_v40, %v68_v41 }
  0x3d   :  { %1085 = vmatprep.mubr.bf16.mxu1 %v1629_v24  ;;  %1942 = vmatpush3.bf16.msra.mxu0 %v2114_v39  ;;  %v48_v24 = vld [vmem:[%s2736_s0 + $0xd8] sm:$0xff]  ;;  %v1623_v28 = vcombine.high %v47_v22, %v51_v23  ;;  %v67_v39 = vld [vmem:[%s2736_s0 + $0x170] sm:$0xff] }
  0x3e   :  { %2006 = vmatpush3.bf16.msra.mxu1 %v2116_v43  ;;  %1943 = vmatprep.subr.bf16.mxu0 %v2117_v46  ;;  %v1625_v29 = vcombine.high %v48_v24, %v52_v25  ;;  %v1632_v43 = vcombine.low %v56_v32, %v60_v33  ;;  %v1639_v44 = vcombine.high %v63_v38, %v67_v39  ;;  %v71_v46 = vld [vmem:[%s2736_s0 + $0x190] sm:$0xff] }
  0x3f   :  { %2007 = vmatprep.subr.bf16.mxu1 %v2119_v51  ;;  %v1640_v51 = vcombine.low %v64_v40, %v68_v41 }
  0x41   :  { %1944 = vmatpush3.bf16.msra.mxu0 %v2118_v48  ;;  %v72_v48 = vld [vmem:[%s2736_s0 + $0x198] sm:$0xff] }
  0x42   :  { %2008 = vmatpush3.bf16.msra.mxu1 %v2120_v53 }
  0x43   :  { %989 = vmatmul.mubr.bf16.gmra.mrb[16].mxu0 %v1626_v34  ;;  %v1622_v34 = vcombine.low %v47_v22, %v51_v23 }
  0x44   :  { %1086 = vmatmul.mubr.bf16.gmra.mrb[16].mxu1 %v1628_v35  ;;  %996 = vmatprep.mubr.bf16.mxu0 %v1635_v36  ;;  %v1624_v35 = vcombine.low %v48_v24, %v52_v25  ;;  %v1631_v36 = vcombine.high %v55_v30, %v59_v31 }
  0x45   :  { %1093 = vmatprep.mubr.bf16.mxu1 %v1637_v37  ;;  %v1633_v37 = vcombine.high %v56_v32, %v60_v33 }
  0x4b   :  { %997 = vmatmul.mubr.bf16.gmra.mrb[20].mxu0 %v1634_v47  ;;  %v75_v47 = vld [vmem:[%s2736_s0 + $0x1b0] sm:$0xff] }
  0x4c   :  { %1094 = vmatmul.mubr.bf16.gmra.mrb[20].mxu1 %v1636_v49  ;;  %1004 = vmatprep.mubr.bf16.mxu0 %v1643_v50  ;;  %v76_v49 = vld [vmem:[%s2736_s0 + $0x1b8] sm:$0xff]  ;;  %v1638_v50 = vcombine.low %v63_v38, %v67_v39 }
  0x4d   :  { %1101 = vmatprep.mubr.bf16.mxu1 %v1645_v52  ;;  %v1647_v52 = vcombine.high %v71_v46, %v75_v47  ;;  %v1649_v53 = vcombine.high %v72_v48, %v76_v49 }
  0x53   :  { %1005 = vmatmul.mubr.bf16.gmra.mrb[24].mxu0 %v1642_v58  ;;  %v1646_v58 = vcombine.low %v71_v46, %v75_v47 }
  0x54   :  { %1102 = vmatmul.mubr.bf16.gmra.mrb[24].mxu1 %v1644_v59  ;;  %1012 = vmatprep.mubr.bf16.mxu0 %v1651_v60  ;;  %v1648_v59 = vcombine.low %v72_v48, %v76_v49  ;;  %v1655_v60 = vcombine.high %v79_v54, %v83_v55 }
  0x55   :  { %1109 = vmatprep.mubr.bf16.mxu1 %v1653_v61  ;;  %v1657_v61 = vcombine.high %v80_v56, %v84_v57 }
  0x5b   :  { %1013 = vmatmul.mubr.bf16.gmra.mrb[28].mxu0 %v1650_v2  ;;  %v2540_v2 = vld [vmem:[%s2737_s2] ss:$0 sm:$0xff] }
  0x5c   :  { %1110 = vmatmul.mubr.bf16.gmra.mrb[28].mxu1 %v1652_v3  ;;  %1150 = vmatprep.mubr.bf16.mxu0 %v1599_v4 }
  0x5d   :  { %1247 = vmatprep.mubr.bf16.mxu1 %v1601_v5 }
  0x63   :  { %1151 = vmatmul.mubr.bf16.vlgmr.msra.gmra.mrb[32].mxu0 %v1598_v10 }
  0x64   :  { %1248 = vmatmul.mubr.bf16.vlgmr.msra.gmra.mrb[32].mxu1 %v1600_v11  ;;  %1158 = vmatprep.mubr.bf16.mxu0 %v1607_v12 }
  0x65   :  { %1255 = vmatprep.mubr.bf16.mxu1 %v1609_v13 }
  0x6b   :  { %1159 = vmatmul.mubr.bf16.gmra.mrb[36].mxu0 %v1606_v18 }
  0x6c   :  { %1256 = vmatmul.mubr.bf16.gmra.mrb[36].mxu1 %v1608_v19  ;;  %1166 = vmatprep.mubr.bf16.mxu0 %v1615_v20 }
  0x6d   :  { %1263 = vmatprep.mubr.bf16.mxu1 %v1617_v21 }
  0x73   :  { %1167 = vmatmul.mubr.bf16.gmra.mrb[40].mxu0 %v1614_v26 }
  0x74   :  { %1264 = vmatmul.mubr.bf16.gmra.mrb[40].mxu1 %v1616_v27  ;;  %1174 = vmatprep.mubr.bf16.mxu0 %v1623_v28 }
  0x75   :  { %1271 = vmatprep.mubr.bf16.mxu1 %v1625_v29 }
  0x7b   :  { %1175 = vmatmul.mubr.bf16.gmra.mrb[44].mxu0 %v1622_v34 }
  0x7c   :  { %1272 = vmatmul.mubr.bf16.gmra.mrb[44].mxu1 %v1624_v35  ;;  %1182 = vmatprep.mubr.bf16.mxu0 %v1631_v36 }
  0x7d   :  { %1279 = vmatprep.mubr.bf16.mxu1 %v1633_v37 }
  0x83   :  { %1183 = vmatmul.mubr.bf16.gmra.mrb[48].mxu0 %v1630_v42 }
  0x84   :  { %1280 = vmatmul.mubr.bf16.gmra.mrb[48].mxu1 %v1632_v43  ;;  %1190 = vmatprep.mubr.bf16.mxu0 %v1639_v44 }
  0x85   :  { %1287 = vmatprep.mubr.bf16.mxu1 %v1641_v45 }
  0x8b   :  { %1191 = vmatmul.mubr.bf16.gmra.mrb[52].mxu0 %v1638_v50 }
  0x8c   :  { %1288 = vmatmul.mubr.bf16.gmra.mrb[52].mxu1 %v1640_v51  ;;  %1198 = vmatprep.mubr.bf16.mxu0 %v1647_v52 }
  0x8d   :  { %1295 = vmatprep.mubr.bf16.mxu1 %v1649_v53 }
  0x93   :  { %1199 = vmatmul.mubr.bf16.gmra.mrb[56].mxu0 %v1646_v58 }
  0x94   :  { %1296 = vmatmul.mubr.bf16.gmra.mrb[56].mxu1 %v1648_v59  ;;  %1206 = vmatprep.mubr.bf16.mxu0 %v1655_v60 }
  0x95   :  { %1303 = vmatprep.mubr.bf16.mxu1 %v1657_v61 }
  0x9b   :  { %1207 = vmatmul.mubr.bf16.gmra.mrb[60].mxu0 %v1654_v62 }
  0x9c   :  { %1304 = vmatmul.mubr.bf16.gmra.mrb[60].mxu1 %v1656_v63 }
  0xf6   :  { %v1817_v0 = vpop.f32.mrb[0].mxu0 }
  0xf7   :  { %v1881_v1 = vpop.f32.mrb[0].mxu1  ;;  %v1818_v3 = vpop.f32.mrb[1].mxu0 }
  0xf8   :  { %v1819_v4 = vadd.f32 %v1818_v3, %v1817_v0  ;;  %v1882_v5 = vpop.f32.mrb[1].mxu1  ;;  %v1820_v6 = vpop.f32.mrb[2].mxu0 }
  0xf9   :  { %v1883_v7 = vadd.f32 %v1882_v5, %v1881_v1  ;;  %v1884_v8 = vpop.f32.mrb[2].mxu1  ;;  %v1821_v9 = vpop.f32.mrb[3].mxu0 }
  0xfa   :  { %v959_v10 = vadd.f32 %v1819_v4, %v2540_v2  ;;  %v1822_v11 = vadd.f32 %v1821_v9, %v1820_v6  ;;  %v1885_v12 = vpop.f32.mrb[3].mxu1 }
  0xfb   :  { %v1886_v13 = vadd.f32 %v1885_v12, %v1884_v8 }
  0xfc   :  { %v2543_v14 = vadd.f32 %v1883_v7, %v959_v10  ;;  %v962_v15 = vadd.f32 %v1822_v11, %v2540_v2 }
  0xfe   :  { %v2546_v16 = vadd.f32 %v1886_v13, %v962_v15  ;;  %v1823_v17 = vpop.f32.mrb[4].mxu0 }
  0xff   :  { %v1887_v18 = vpop.f32.mrb[4].mxu1  ;;  %v1824_v19 = vpop.f32.mrb[5].mxu0 }
 0x100   :  { %v1825_v20 = vadd.f32 %v1824_v19, %v1823_v17  ;;  %v1888_v21 = vpop.f32.mrb[5].mxu1  ;;  %v1826_v22 = vpop.f32.mrb[6].mxu0 }
 0x101   :  { %v1889_v23 = vadd.f32 %v1888_v21, %v1887_v18  ;;  %v1890_v24 = vpop.f32.mrb[6].mxu1  ;;  %v1827_v25 = vpop.f32.mrb[7].mxu0 }
 0x102   :  { %v967_v26 = vadd.f32 %v1825_v20, %v2540_v2  ;;  %v1828_v27 = vadd.f32 %v1827_v25, %v1826_v22  ;;  %v1891_v28 = vpop.f32.mrb[7].mxu1 }
 0x103   :  { %v1892_v29 = vadd.f32 %v1891_v28, %v1890_v24 }
 0x104   :  { %v2549_v30 = vadd.f32 %v1889_v23, %v967_v26  ;;  %v970_v31 = vadd.f32 %v1828_v27, %v2540_v2 }
 0x106   :  { %v2552_v32 = vadd.f32 %v1892_v29, %v970_v31  ;;  %v1829_v33 = vpop.f32.mrb[8].mxu0 }
 0x107   :  { %v1893_v34 = vpop.f32.mrb[8].mxu1  ;;  %v1830_v35 = vpop.f32.mrb[9].mxu0 }
 0x108   :  { %v1831_v36 = vadd.f32 %v1830_v35, %v1829_v33  ;;  %v1894_v37 = vpop.f32.mrb[9].mxu1  ;;  %v1832_v38 = vpop.f32.mrb[10].mxu0 }
 0x109   :  { %v1895_v39 = vadd.f32 %v1894_v37, %v1893_v34  ;;  %v1896_v40 = vpop.f32.mrb[10].mxu1  ;;  %v1833_v41 = vpop.f32.mrb[11].mxu0 }
 0x10a   :  { %v975_v42 = vadd.f32 %v1831_v36, %v2540_v2  ;;  %v1834_v43 = vadd.f32 %v1833_v41, %v1832_v38  ;;  %v1897_v44 = vpop.f32.mrb[11].mxu1 }
 0x10b   :  { %v1898_v45 = vadd.f32 %v1897_v44, %v1896_v40 }
 0x10c   :  { %v2555_v46 = vadd.f32 %v1895_v39, %v975_v42  ;;  %v978_v47 = vadd.f32 %v1834_v43, %v2540_v2 }
 0x10e   :  { %v2558_v48 = vadd.f32 %v1898_v45, %v978_v47  ;;  %v1835_v49 = vpop.f32.mrb[12].mxu0 }
 0x10f   :  { %v1899_v50 = vpop.f32.mrb[12].mxu1  ;;  %v1836_v51 = vpop.f32.mrb[13].mxu0 }
 0x110   :  { %v1837_v52 = vadd.f32 %v1836_v51, %v1835_v49  ;;  %v1900_v53 = vpop.f32.mrb[13].mxu1  ;;  %v1838_v54 = vpop.f32.mrb[14].mxu0 }
 0x111   :  { %v1901_v55 = vadd.f32 %v1900_v53, %v1899_v50  ;;  %v1902_v56 = vpop.f32.mrb[14].mxu1  ;;  %v1839_v57 = vpop.f32.mrb[15].mxu0 }
 0x112   :  { %v983_v58 = vadd.f32 %v1837_v52, %v2540_v2  ;;  %v1840_v59 = vadd.f32 %v1839_v57, %v1838_v54  ;;  %v1903_v60 = vpop.f32.mrb[15].mxu1 }
 0x113   :  { %v1904_v61 = vadd.f32 %v1903_v60, %v1902_v56 }
 0x114   :  { %v2561_v62 = vadd.f32 %v1901_v55, %v983_v58  ;;  %v986_v63 = vadd.f32 %v1840_v59, %v2540_v2 }
 0x116   :  { %v2564_v0 = vadd.f32 %v1904_v61, %v986_v63  ;;  %v1841_v1 = vpop.f32.mrb[16].mxu0 }
 0x117   :  { %v1905_v3 = vpop.f32.mrb[16].mxu1  ;;  %v1842_v4 = vpop.f32.mrb[17].mxu0 }
 0x118   :  { %v1843_v5 = vadd.f32 %v1842_v4, %v1841_v1  ;;  %v1906_v6 = vpop.f32.mrb[17].mxu1  ;;  %v1844_v7 = vpop.f32.mrb[18].mxu0 }
 0x119   :  { %v1907_v8 = vadd.f32 %v1906_v6, %v1905_v3  ;;  %v1908_v9 = vpop.f32.mrb[18].mxu1  ;;  %v1845_v10 = vpop.f32.mrb[19].mxu0 }
 0x11a   :  { %v991_v11 = vadd.f32 %v1843_v5, %v2540_v2  ;;  %v1846_v12 = vadd.f32 %v1845_v10, %v1844_v7  ;;  %v1909_v13 = vpop.f32.mrb[19].mxu1 }
 0x11b   :  { %v1910_v15 = vadd.f32 %v1909_v13, %v1908_v9 }
 0x11c   :  { %v2567_v17 = vadd.f32 %v1907_v8, %v991_v11  ;;  %v994_v18 = vadd.f32 %v1846_v12, %v2540_v2 }
 0x11e   :  { %v2570_v19 = vadd.f32 %v1910_v15, %v994_v18  ;;  %v1847_v20 = vpop.f32.mrb[20].mxu0 }
 0x11f   :  { %v1911_v21 = vpop.f32.mrb[20].mxu1  ;;  %v1848_v22 = vpop.f32.mrb[21].mxu0 }
 0x120   :  { %v1849_v23 = vadd.f32 %v1848_v22, %v1847_v20  ;;  %v1912_v24 = vpop.f32.mrb[21].mxu1  ;;  %v1850_v25 = vpop.f32.mrb[22].mxu0 }
 0x121   :  { %v1913_v26 = vadd.f32 %v1912_v24, %v1911_v21  ;;  %v1914_v27 = vpop.f32.mrb[22].mxu1  ;;  %v1851_v28 = vpop.f32.mrb[23].mxu0 }
 0x122   :  { %v999_v29 = vadd.f32 %v1849_v23, %v2540_v2  ;;  %v1852_v31 = vadd.f32 %v1851_v28, %v1850_v25  ;;  %v1915_v33 = vpop.f32.mrb[23].mxu1 }
 0x123   :  { %v1916_v34 = vadd.f32 %v1915_v33, %v1914_v27 }
 0x124   :  { %v2573_v35 = vadd.f32 %v1913_v26, %v999_v29  ;;  %v1002_v36 = vadd.f32 %v1852_v31, %v2540_v2 }
 0x126   :  { %v2576_v37 = vadd.f32 %v1916_v34, %v1002_v36  ;;  %v1853_v38 = vpop.f32.mrb[24].mxu0 }
 0x127   :  { %v1917_v39 = vpop.f32.mrb[24].mxu1  ;;  %v1854_v40 = vpop.f32.mrb[25].mxu0 }
 0x128   :  { %v1855_v41 = vadd.f32 %v1854_v40, %v1853_v38  ;;  %v1918_v42 = vpop.f32.mrb[25].mxu1  ;;  %v1856_v43 = vpop.f32.mrb[26].mxu0 }
 0x129   :  { %v1919_v44 = vadd.f32 %v1918_v42, %v1917_v39  ;;  %v1920_v45 = vpop.f32.mrb[26].mxu1  ;;  %v1857_v47 = vpop.f32.mrb[27].mxu0 }
 0x12a   :  { %v1007_v49 = vadd.f32 %v1855_v41, %v2540_v2  ;;  %v1858_v50 = vadd.f32 %v1857_v47, %v1856_v43  ;;  %v1921_v51 = vpop.f32.mrb[27].mxu1 }
 0x12b   :  { %v1922_v52 = vadd.f32 %v1921_v51, %v1920_v45 }
 0x12c   :  { %v2579_v53 = vadd.f32 %v1919_v44, %v1007_v49  ;;  %v1010_v54 = vadd.f32 %v1858_v50, %v2540_v2 }
 0x12e   :  { %v2582_v55 = vadd.f32 %v1922_v52, %v1010_v54  ;;  %v1859_v56 = vpop.f32.mrb[28].mxu0 }
 0x12f   :  { %v1923_v57 = vpop.f32.mrb[28].mxu1  ;;  %v1860_v58 = vpop.f32.mrb[29].mxu0 }
 0x130   :  { %v1861_v59 = vadd.f32 %v1860_v58, %v1859_v56  ;;  %v1924_v60 = vpop.f32.mrb[29].mxu1  ;;  %v1862_v61 = vpop.f32.mrb[30].mxu0 }
 0x131   :  { %v1925_v63 = vadd.f32 %v1924_v60, %v1923_v57  ;;  %v1926_v1 = vpop.f32.mrb[30].mxu1  ;;  %v1863_v3 = vpop.f32.mrb[31].mxu0 }
 0x132   :  { %v1015_v4 = vadd.f32 %v1861_v59, %v2540_v2  ;;  %v1864_v5 = vadd.f32 %v1863_v3, %v1862_v61  ;;  %v1927_v6 = vpop.f32.mrb[31].mxu1 }
 0x133   :  { %v1928_v7 = vadd.f32 %v1927_v6, %v1926_v1 }
 0x134   :  { %v2585_v8 = vadd.f32 %v1925_v63, %v1015_v4  ;;  %v1018_v9 = vadd.f32 %v1864_v5, %v2540_v2 }
 0x136   :  { %v2588_v10 = vadd.f32 %v1928_v7, %v1018_v9  ;;  %v1945_v11 = vpop.f32.mrb[32].mxu0 }
 0x137   :  { %v2009_v12 = vpop.f32.mrb[32].mxu1  ;;  %v1946_v13 = vpop.f32.mrb[33].mxu0 }
 0x138   :  { %v1947_v15 = vadd.f32 %v1946_v13, %v1945_v11  ;;  %v2010_v18 = vpop.f32.mrb[33].mxu1  ;;  %v1948_v20 = vpop.f32.mrb[34].mxu0 }
 0x139   :  { %v2011_v21 = vadd.f32 %v2010_v18, %v2009_v12  ;;  %v2012_v22 = vpop.f32.mrb[34].mxu1  ;;  %v1949_v23 = vpop.f32.mrb[35].mxu0 }
 0x13a   :  { %v1153_v24 = vadd.f32 %v1947_v15, %v2543_v14  ;;  %v1950_v25 = vadd.f32 %v1949_v23, %v1948_v20  ;;  %v2013_v26 = vpop.f32.mrb[35].mxu1 }
 0x13b   :  { %v2014_v27 = vadd.f32 %v2013_v26, %v2012_v22 }
 0x13c   :  { %v2591_v28 = vadd.f32 %v2011_v21, %v1153_v24  ;;  %v1156_v2 = vadd.f32 %v1950_v25, %v2546_v16 }
 0x13e   :  { %v2594_v29 = vadd.f32 %v2014_v27, %v1156_v2  ;;  %v1951_v31 = vpop.f32.mrb[36].mxu0 }
 0x13f   :  { %v2015_v33 = vpop.f32.mrb[36].mxu1  ;;  %v1952_v34 = vpop.f32.mrb[37].mxu0 }
 0x140   :  { %v1953_v36 = vadd.f32 %v1952_v34, %v1951_v31  ;;  %v2016_v38 = vpop.f32.mrb[37].mxu1  ;;  %v1954_v39 = vpop.f32.mrb[38].mxu0  ;;  %v1350_v9 = vadd.f32 %v2594_v29, %v2591_v28 }
 0x141   :  { %v2017_v40 = vadd.f32 %v2016_v38, %v2015_v33  ;;  %v2018_v41 = vpop.f32.mrb[38].mxu1  ;;  %v1955_v42 = vpop.f32.mrb[39].mxu0 }
 0x142   :  { %v1161_v14 = vadd.f32 %v1953_v36, %v2549_v30  ;;  %v1956_v43 = vadd.f32 %v1955_v42, %v1954_v39  ;;  %v2019_v44 = vpop.f32.mrb[39].mxu1 }
 0x143   :  { %v2020_v45 = vadd.f32 %v2019_v44, %v2018_v41 }
 0x144   :  { %v2597_v47 = vadd.f32 %v2017_v40, %v1161_v14  ;;  %v1164_v16 = vadd.f32 %v1956_v43, %v2552_v32 }
 0x146   :  { %v2600_v49 = vadd.f32 %v2020_v45, %v1164_v16  ;;  %v1957_v50 = vpop.f32.mrb[40].mxu0  ;;  %v1351_v20 = vadd.f32 %v1350_v9, %v2597_v47 }
 0x147   :  { %v2021_v51 = vpop.f32.mrb[40].mxu1  ;;  %v1958_v52 = vpop.f32.mrb[41].mxu0 }
 0x148   :  { %v1959_v54 = vadd.f32 %v1958_v52, %v1957_v50  ;;  %v2022_v56 = vpop.f32.mrb[41].mxu1  ;;  %v1960_v57 = vpop.f32.mrb[42].mxu0  ;;  %v1352_v26 = vadd.f32 %v1351_v20, %v2600_v49 }
 0x149   :  { %v2023_v58 = vadd.f32 %v2022_v56, %v2021_v51  ;;  %v2024_v59 = vpop.f32.mrb[42].mxu1  ;;  %v1961_v60 = vpop.f32.mrb[43].mxu0 }
 0x14a   :  { %v1169_v30 = vadd.f32 %v1959_v54, %v2555_v46  ;;  %v1962_v61 = vadd.f32 %v1961_v60, %v1960_v57  ;;  %v2025_v63 = vpop.f32.mrb[43].mxu1 }
 0x14b   :  { %v2026_v1 = vadd.f32 %v2025_v63, %v2024_v59 }
 0x14c   :  { %v2603_v3 = vadd.f32 %v2023_v58, %v1169_v30  ;;  %v1172_v32 = vadd.f32 %v1962_v61, %v2558_v48 }
 0x14e   :  { %v2606_v4 = vadd.f32 %v2026_v1, %v1172_v32  ;;  %v1963_v5 = vpop.f32.mrb[44].mxu0  ;;  %v1353_v34 = vadd.f32 %v1352_v26, %v2603_v3 }
 0x14f   :  { %v2027_v6 = vpop.f32.mrb[44].mxu1  ;;  %v1964_v7 = vpop.f32.mrb[45].mxu0 }
 0x150   :  { %v1965_v11 = vadd.f32 %v1964_v7, %v1963_v5  ;;  %v2028_v12 = vpop.f32.mrb[45].mxu1  ;;  %v1966_v13 = vpop.f32.mrb[46].mxu0  ;;  %v1354_v44 = vadd.f32 %v1353_v34, %v2606_v4 }
 0x151   :  { %v2029_v15 = vadd.f32 %v2028_v12, %v2027_v6  ;;  %v2030_v46 = vpop.f32.mrb[46].mxu1  ;;  %v1967_v18 = vpop.f32.mrb[47].mxu0 }
 0x152   :  { %v1177_v21 = vadd.f32 %v1965_v11, %v2561_v62  ;;  %v1968_v22 = vadd.f32 %v1967_v18, %v1966_v13  ;;  %v2031_v48 = vpop.f32.mrb[47].mxu1 }
 0x153   :  { %v2032_v23 = vadd.f32 %v2031_v48, %v2030_v46 }
 0x154   :  { %v2612_v24 = vadd.f32 %v2029_v15, %v1177_v21  ;;  %v1180_v25 = vadd.f32 %v1968_v22, %v2564_v0 }
 0x156   :  { %v2616_v27 = vadd.f32 %v2032_v23, %v1180_v25  ;;  %v1969_v2 = vpop.f32.mrb[48].mxu0  ;;  %v1355_v50 = vadd.f32 %v1354_v44, %v2612_v24 }
 0x157   :  { %v2033_v31 = vpop.f32.mrb[48].mxu1  ;;  %v1970_v33 = vpop.f32.mrb[49].mxu0 }
 0x158   :  { %v1971_v36 = vadd.f32 %v1970_v33, %v1969_v2  ;;  %v2034_v38 = vpop.f32.mrb[49].mxu1  ;;  %v1972_v39 = vpop.f32.mrb[50].mxu0  ;;  %v1356_v61 = vadd.f32 %v1355_v50, %v2616_v27 }
 0x159   :  { %v2035_v62 = vadd.f32 %v2034_v38, %v2033_v31  ;;  %v2036_v40 = vpop.f32.mrb[50].mxu1  ;;  %v1973_v41 = vpop.f32.mrb[51].mxu0 }
 0x15a   :  { %v1185_v42 = vadd.f32 %v1971_v36, %v2567_v17  ;;  %v1974_v14 = vadd.f32 %v1973_v41, %v1972_v39  ;;  %v2037_v43 = vpop.f32.mrb[51].mxu1 }
 0x15b   :  { %v2038_v0 = vadd.f32 %v2037_v43, %v2036_v40 }
 0x15c   :  { %v2621_v45 = vadd.f32 %v2035_v62, %v1185_v42  ;;  %v1188_v16 = vadd.f32 %v1974_v14, %v2570_v19 }
 0x15e   :  { %v2625_v51 = vadd.f32 %v2038_v0, %v1188_v16  ;;  %v1975_v52 = vpop.f32.mrb[52].mxu0  ;;  %v1357_v5 = vadd.f32 %v1356_v61, %v2621_v45 }
 0x15f   :  { %v2039_v54 = vpop.f32.mrb[52].mxu1  ;;  %v1976_v56 = vpop.f32.mrb[53].mxu0 }
 0x160   :  { %v1977_v57 = vadd.f32 %v1976_v56, %v1975_v52  ;;  %v2040_v58 = vpop.f32.mrb[53].mxu1  ;;  %v1978_v59 = vpop.f32.mrb[54].mxu0  ;;  %v1358_v15 = vadd.f32 %v1357_v5, %v2625_v51 }
 0x161   :  { %v2041_v17 = vadd.f32 %v2040_v58, %v2039_v54  ;;  %v2042_v60 = vpop.f32.mrb[54].mxu1  ;;  %v1979_v30 = vpop.f32.mrb[55].mxu0 }
 0x162   :  { %v1193_v63 = vadd.f32 %v1977_v57, %v2573_v35  ;;  %v1980_v1 = vadd.f32 %v1979_v30, %v1978_v59  ;;  %v2043_v32 = vpop.f32.mrb[55].mxu1 }
 0x163   :  { %v2044_v19 = vadd.f32 %v2043_v32, %v2042_v60 }
 0x164   :  { %v2630_v6 = vadd.f32 %v2041_v17, %v1193_v63  ;;  %v1196_v7 = vadd.f32 %v1980_v1, %v2576_v37 }
 0x166   :  { %v2633_v9 = vadd.f32 %v2044_v19, %v1196_v7  ;;  %v1981_v11 = vpop.f32.mrb[56].mxu0  ;;  %v1359_v48 = vadd.f32 %v1358_v15, %v2630_v6 }
 0x167   :  { %v2045_v12 = vpop.f32.mrb[56].mxu1  ;;  %v1982_v13 = vpop.f32.mrb[57].mxu0 }
 0x168   :  { %v1983_v46 = vadd.f32 %v1982_v13, %v1981_v11  ;;  %v2046_v18 = vpop.f32.mrb[57].mxu1  ;;  %v1984_v20 = vpop.f32.mrb[58].mxu0  ;;  %v1360_v33 = vadd.f32 %v1359_v48, %v2633_v9 }
 0x169   :  { %v2047_v35 = vadd.f32 %v2046_v18, %v2045_v12  ;;  %v2048_v21 = vpop.f32.mrb[58].mxu1  ;;  %v1985_v22 = vpop.f32.mrb[59].mxu0 }
 0x16a   :  { %v1201_v23 = vadd.f32 %v1983_v46, %v2579_v53  ;;  %v1986_v25 = vadd.f32 %v1985_v22, %v1984_v20  ;;  %v2049_v26 = vpop.f32.mrb[59].mxu1 }
 0x16b   :  { %v2050_v37 = vadd.f32 %v2049_v26, %v2048_v21 }
 0x16c   :  { %v2638_v2 = vadd.f32 %v2047_v35, %v1201_v23  ;;  %v1204_v31 = vadd.f32 %v1986_v25, %v2582_v55 }
 0x16e   :  { %v2642_v34 = vadd.f32 %v2050_v37, %v1204_v31  ;;  %v1987_v36 = vpop.f32.mrb[60].mxu0  ;;  %v1361_v62 = vadd.f32 %v1360_v33, %v2638_v2 }
 0x16f   :  { %v2051_v38 = vpop.f32.mrb[60].mxu1  ;;  %v1988_v39 = vpop.f32.mrb[61].mxu0 }
 0x170   :  { %v1989_v40 = vadd.f32 %v1988_v39, %v1987_v36  ;;  %v2052_v41 = vpop.f32.mrb[61].mxu1  ;;  %v1990_v42 = vpop.f32.mrb[62].mxu0  ;;  %v1362_v50 = vadd.f32 %v1361_v62, %v2642_v34 }
 0x171   :  { %v2053_v53 = vadd.f32 %v2052_v41, %v2051_v38  ;;  %v2054_v14 = vpop.f32.mrb[62].mxu1  ;;  %v1991_v43 = vpop.f32.mrb[63].mxu0 }
 0x172   :  { %v1209_v0 = vadd.f32 %v1989_v40, %v2585_v8  ;;  %v1992_v44 = vadd.f32 %v1991_v43, %v1990_v42  ;;  %v2055_v16 = vpop.f32.mrb[63].mxu1 }
 0x173   :  { %v2056_v55 = vadd.f32 %v2055_v16, %v2054_v14 }
 0x174   :  { %v2647_v52 = vadd.f32 %v2053_v53, %v1209_v0  ;;  %v1212_v54 = vadd.f32 %v1992_v44, %v2588_v10 }
 0x176   :  { %v1363_v56 = vadd.f32 %v1362_v50, %v2647_v52  ;;  %v2651_v57 = vadd.f32 %v2056_v55, %v1212_v54 }
 0x178   :  { %v1364_v58 = vadd.f32 %v1363_v56, %v2651_v57 }
 0x17a   :  { %v1365_v59 = vrot.slane %v1364_v58, 4 }
 0x17c   :  { %v1366_v17 = vadd.f32 %v1365_v59, %v1364_v58 }
 0x17e   :  { %v1367_v60 = vrot.slane %v1366_v17, 2 }
 0x180   :  { %v1368_v30 = vadd.f32 %v1367_v60, %v1366_v17 }
 0x182   :  { %v1369_v8 = vrot.slane %v1368_v30, 1 }
 0x184   :  { %v1370_v61 = vadd.f32 %v1369_v8, %v1368_v30 }
 0x186   :  { %v2654_v63 = vmul.f32 0.0078125, %v1370_v61 }
 0x188   :  { %v1372_v1 = vsub.f32 %v2591_v28, %v2654_v63  ;;  %v1373_v10 = vsub.f32 %v2594_v29, %v2654_v63  ;;  %v1374_v32 = vsub.f32 %v2597_v47, %v2654_v63  ;;  %v1375_v7 = vsub.f32 %v2600_v49, %v2654_v63 }
 0x189   :  { %v1376_v11 = vsub.f32 %v2603_v3, %v2654_v63  ;;  %v1377_v15 = vsub.f32 %v2606_v4, %v2654_v63  ;;  %v1378_v20 = vsub.f32 %v2612_v24, %v2654_v63  ;;  %v1379_v22 = vsub.f32 %v2616_v27, %v2654_v63 }
 0x18a   :  { %v1388_v19 = vmul.f32 %v1372_v1, %v1372_v1  ;;  %v1389_v5 = vmul.f32 %v1373_v10, %v1373_v10  ;;  %v1390_v12 = vmul.f32 %v1374_v32, %v1374_v32  ;;  %v1391_v46 = vmul.f32 %v1375_v7, %v1375_v7 }
 0x18b   :  { %v1392_v35 = vmul.f32 %v1376_v11, %v1376_v11  ;;  %v1393_v48 = vmul.f32 %v1377_v15, %v1377_v15  ;;  %v1380_v25 = vsub.f32 %v2621_v45, %v2654_v63  ;;  %v1394_v26 = vmul.f32 %v1378_v20, %v1378_v20 }
 0x18c   :  { %v1404_v13 = vadd.f32 %v1389_v5, %v1388_v19  ;;  %v1381_v31 = vsub.f32 %v2625_v51, %v2654_v63  ;;  %v1395_v33 = vmul.f32 %v1379_v22, %v1379_v22  ;;  %v1382_v38 = vsub.f32 %v2630_v6, %v2654_v63 }
 0x18d   :  { %v1396_v39 = vmul.f32 %v1380_v25, %v1380_v25  ;;  %v1383_v40 = vsub.f32 %v2633_v9, %v2654_v63  ;;  %v1384_v53 = vsub.f32 %v2638_v2, %v2654_v63  ;;  %v1385_v0 = vsub.f32 %v2642_v34, %v2654_v63 }
 0x18e   :  { %v1405_v18 = vadd.f32 %v1404_v13, %v1390_v12  ;;  %v1397_v41 = vmul.f32 %v1381_v31, %v1381_v31  ;;  %v1398_v14 = vmul.f32 %v1382_v38, %v1382_v38  ;;  %v1386_v55 = vsub.f32 %v2647_v52, %v2654_v63 }
 0x18f   :  { %v1399_v44 = vmul.f32 %v1383_v40, %v1383_v40  ;;  %v1400_v50 = vmul.f32 %v1384_v53, %v1384_v53  ;;  %v1387_v56 = vsub.f32 %v2651_v57, %v2654_v63  ;;  %v1401_v58 = vmul.f32 %v1385_v0, %v1385_v0 }
 0x190   :  { %v1406_v21 = vadd.f32 %v1405_v18, %v1391_v46  ;;  %v1402_v17 = vmul.f32 %v1386_v55, %v1386_v55  ;;  %v1434_v13 = vlaneseq  ;;  %v1426_v46 = vld [vmem:[%s2738_s3] sm:$0x1] }
 0x191   :  { %v1403_v30 = vmul.f32 %v1387_v56, %v1387_v56 }
 0x192   :  { %v1407_v23 = vadd.f32 %v1406_v21, %v1392_v35  ;;  %v1435_v15 = vshrl.u32 %v1434_v13, 7  ;;  %v1430_v21 = vld [vmem:[%s2739_s4] sm:$0x1] }
 0x194   :  { %v1408_v37 = vadd.f32 %v1407_v23, %v1393_v48  ;;  %v1436_v18 = vsub.s32 0, %v1435_v15 }
 0x196   :  { %v1409_v36 = vadd.f32 %v1408_v37, %v1394_v26 }
 0x198   :  { %v1410_v62 = vadd.f32 %v1409_v36, %v1395_v33 }
 0x19a   :  { %v1411_v42 = vadd.f32 %v1410_v62, %v1396_v39 }
 0x19c   :  { %v1412_v43 = vadd.f32 %v1411_v42, %v1397_v41 }
 0x19e   :  { %v1413_v16 = vadd.f32 %v1412_v43, %v1398_v14 }
 0x1a0   :  { %v1414_v54 = vadd.f32 %v1413_v16, %v1399_v44 }
 0x1a2   :  { %v1415_v59 = vadd.f32 %v1414_v54, %v1400_v50 }
 0x1a4   :  { %v1416_v60 = vadd.f32 %v1415_v59, %v1401_v58 }
 0x1a6   :  { %v1417_v8 = vadd.f32 %v1416_v60, %v1402_v17 }
 0x1a8   :  { %v1418_v61 = vadd.f32 %v1417_v8, %v1403_v30 }
 0x1aa   :  { %v1419_v1 = vrot.slane %v1418_v61, 4 }
 0x1ac   :  { %v1420_v10 = vadd.f32 %v1419_v1, %v1418_v61 }
 0x1ae   :  { %v1421_v32 = vrot.slane %v1420_v10, 2 }
 0x1b0   :  { %v1422_v19 = vadd.f32 %v1421_v32, %v1420_v10 }
 0x1b2   :  { %v1423_v5 = vrot.slane %v1422_v19, 1 }
 0x1b4   :  { %v1424_v7 = vadd.f32 %v1423_v5, %v1422_v19 }
 0x1b6   :  { %v1425_v11 = vmul.f32 0.0078125, %v1424_v7 }
 0x1b8   :  { %v1427_v12 = vadd.f32 1e-05, %v1425_v11 }
 0x1ba   :  { %2121 = vrsqrt.f32 %v1427_v12 }
 0x1c4   :  { %v2122_v20 = vpop.eup %2121 }
 0x1c5   :  { %v1429_v35 = vmul.f32 %v2122_v20, %v1426_v46 }
 0x1c7   :  { %v1431_v22 = vmul.f32 %v1429_v35, %v2654_v63  ;;  %v1437_v48 = vrot.slane %v1429_v35, %v1436_v18 }
 0x1c9   :  { %v1432_v23 = vsub.f32 %v1430_v21, %v1431_v22  ;;  %v1439_v25 = vmul.f32 %v1437_v48, %v2591_v28  ;;  %v1440_v26 = vmul.f32 %v1437_v48, %v2594_v29  ;;  %v1441_v37 = vmul.f32 %v1437_v48, %v2597_v47 }
 0x1ca   :  { %v1442_v31 = vmul.f32 %v1437_v48, %v2600_v49  ;;  %v1443_v33 = vmul.f32 %v1437_v48, %v2603_v3  ;;  %v1444_v36 = vmul.f32 %v1437_v48, %v2606_v4  ;;  %v1445_v38 = vmul.f32 %v1437_v48, %v2612_v24 }
 0x1cb   :  { %v1446_v39 = vmul.f32 %v1437_v48, %v2616_v27  ;;  %v1447_v63 = vmul.f32 %v1437_v48, %v2621_v45  ;;  %v1448_v62 = vmul.f32 %v1437_v48, %v2625_v51  ;;  %v1459_v40 = vrot.slane %v1432_v23, %v1436_v18 }
 0x1cc   :  { %v1449_v28 = vmul.f32 %v1437_v48, %v2630_v6  ;;  %v1450_v29 = vmul.f32 %v1437_v48, %v2633_v9  ;;  %v1451_v47 = vmul.f32 %v1437_v48, %v2638_v2  ;;  %v1452_v49 = vmul.f32 %v1437_v48, %v2642_v34 }
 0x1cd   :  { %v1453_v3 = vmul.f32 %v1437_v48, %v2647_v52  ;;  %v1461_v4 = vadd.f32 %v1459_v40, %v1439_v25  ;;  %v1462_v41 = vadd.f32 %v1459_v40, %v1440_v26  ;;  %v1463_v24 = vadd.f32 %v1459_v40, %v1441_v37 }
 0x1ce   :  { %v1454_v27 = vmul.f32 %v1437_v48, %v2651_v57  ;;  %v1464_v42 = vadd.f32 %v1459_v40, %v1442_v31  ;;  %v1465_v45 = vadd.f32 %v1459_v40, %v1443_v33  ;;  %v1466_v53 = vadd.f32 %v1459_v40, %v1444_v36 }
 0x1cf   :  { %v1467_v51 = vadd.f32 %v1459_v40, %v1445_v38  ;;  %v1468_v14 = vadd.f32 %v1459_v40, %v1446_v39  ;;  %v1469_v43 = vadd.f32 %v1459_v40, %v1447_v63  ;;  %v1470_v6 = vadd.f32 %v1459_v40, %v1448_v62 }
 0x1d0   :  { %v1471_v0 = vadd.f32 %v1459_v40, %v1449_v28  ;;  %v1472_v9 = vadd.f32 %v1459_v40, %v1450_v29  ;;  %v1473_v44 = vadd.f32 %v1459_v40, %v1451_v47  ;;  %v1474_v2 = vadd.f32 %v1459_v40, %v1452_v49 }
 0x1d1   :  { %v1475_v16 = vadd.f32 %v1459_v40, %v1453_v3  ;;  %v1477_v34 = vmul.f32 0.2, %v1461_v4  ;;  %v1478_v55 = vmul.f32 0.2, %v1462_v41  ;;  %v1479_v52 = vmul.f32 0.2, %v1463_v24 }
 0x1d2   :  { %v1476_v50 = vadd.f32 %v1459_v40, %v1454_v27  ;;  %v1480_v54 = vmul.f32 0.2, %v1464_v42  ;;  %v1481_v56 = vmul.f32 0.2, %v1465_v45  ;;  %v1482_v58 = vmul.f32 0.2, %v1466_v53 }
 0x1d3   :  { %v1483_v57 = vmul.f32 0.2, %v1467_v51  ;;  %v1484_v59 = vmul.f32 0.2, %v1468_v14  ;;  %v1485_v17 = vmul.f32 0.2, %v1469_v43  ;;  %v1493_v60 = vmax.f32 %v1461_v4, %v1477_v34 }
 0x1d4   :  { %v1486_v30 = vmul.f32 0.2, %v1470_v6  ;;  %v1487_v8 = vmul.f32 0.2, %v1471_v0  ;;  %v1488_v61 = vmul.f32 0.2, %v1472_v9  ;;  %v1494_v1 = vmax.f32 %v1462_v41, %v1478_v55 }
 0x1d5   :  { %v1489_v10 = vmul.f32 0.2, %v1473_v44  ;;  %v1490_v32 = vmul.f32 0.2, %v1474_v2  ;;  %v1491_v19 = vmul.f32 0.2, %v1475_v16  ;;  %v1495_v5 = vmax.f32 %v1463_v24, %v1479_v52 }
 0x1d6   :  { %v1492_v7 = vmul.f32 0.2, %v1476_v50  ;;  %v1496_v11 = vmax.f32 %v1464_v42, %v1480_v54  ;;  %v1497_v12 = vmax.f32 %v1465_v45, %v1481_v56  ;;  %v1498_v13 = vmax.f32 %v1466_v53, %v1482_v58 }
 0x1d7   :  { %v1499_v15 = vmax.f32 %v1467_v51, %v1483_v57  ;;  %v1500_v46 = vmax.f32 %v1468_v14, %v1484_v59  ;;  %v1501_v18 = vmax.f32 %v1469_v43, %v1485_v17  ;;  %v1502_v20 = vmax.f32 %v1470_v6, %v1486_v30 }
 0x1d8   :  { %v1503_v35 = vmax.f32 %v1471_v0, %v1487_v8  ;;  %v1504_v21 = vmax.f32 %v1472_v9, %v1488_v61  ;;  %v1505_v22 = vmax.f32 %v1473_v44, %v1489_v10  ;;  %v1506_v48 = vmax.f32 %v1474_v2, %v1490_v32 }
 0x1d9   :  { %v1507_v23 = vmax.f32 %v1475_v16, %v1491_v19  ;;  %v1508_v25 = vmax.f32 %v1476_v50, %v1492_v7  ;;  %v1757_v26 = vpack.c.bf16 %v1494_v1, %v1493_v60  ;;  %v1762_v37 = vpack.c.bf16 %v1496_v11, %v1495_v5 }
 0x1da   :  { %v1767_v31 = vpack.c.bf16 %v1498_v13, %v1497_v12  ;;  %v1772_v33 = vpack.c.bf16 %v1500_v46, %v1499_v15  ;;  %v1777_v36 = vpack.c.bf16 %v1502_v20, %v1501_v18  ;;  %v1782_v38 = vpack.c.bf16 %v1504_v21, %v1503_v35 }
 0x1db   :  { %1758 = vst [vmem:[%s2740_s5] sm:$0xff] %v1757_v26   ;;  %1794 = vst [vmem:[%s2740_s5 + $0x8] sm:$0xff] %v1762_v37   ;;  %v1787_v39 = vpack.c.bf16 %v1506_v48, %v1505_v22  ;;  %v1792_v63 = vpack.c.bf16 %v1508_v25, %v1507_v23 }
 0x1dc   :  { %1795 = vst [vmem:[%s2740_s5 + $0x10] sm:$0xff] %v1767_v31   ;;  %1796 = vst [vmem:[%s2740_s5 + $0x18] sm:$0xff] %v1772_v33  }
 0x1dd   :  { %1797 = vst [vmem:[%s2740_s5 + $0x20] sm:$0xff] %v1777_v36   ;;  %1798 = vst [vmem:[%s2740_s5 + $0x28] sm:$0xff] %v1782_v38  }
 0x1de   :  { %1799 = vst [vmem:[%s2740_s5 + $0x30] sm:$0xff] %v1787_v39   ;;  %1800 = vst [vmem:[%s2740_s5 + $0x38] sm:$0xff] %v1792_v63  }

// kernel: ndiscriminator_forward.6
= control target key start
LH: loop header
LB: loop body
LE: loop exit
PB: predicated region body
PF: predicated region fallthrough
CT: control target
= control target key end

     0   :  { %s4168_s1 = inlined_call_operand.vmem [shape: bf16[2048,256], index: 1, kind: input, shape index: {}]   ;;  %s4169_s0 = inlined_call_operand.vmem [shape: bf16[32,2048], index: 0, kind: input, shape index: {}]   ;;  %s4170_s2 = inlined_call_operand.vmem [shape: f32[1,256], index: 2, kind: input, shape index: {}]   ;;  %s4171_s3 = inlined_call_operand.vmem [shape: f32[1,256], index: 3, kind: input, shape index: {}]   ;;  %s4172_s4 = inlined_call_operand.vmem [shape: f32[1,256], index: 4, kind: input, shape index: {}]   ;;  %s4173_s5 = inlined_call_operand.vmem [shape: bf16[32,256], index: 5, kind: output, shape index: {}]  }
   0x1   :  { %v2761_v0 = vld [vmem:[%s4168_s1 + $0x4] ss:$8 sps:$4 sm:$0xff]   ;;  %v2765_v2 = vld [vmem:[%s4168_s1] ss:$8 sps:$4 sm:$0xff]   ;;  %v2767_v4 = vld [vmem:[%s4168_s1 + $0x14] ss:$8 sps:$4 sm:$0xff]  }
   0x2   :  { %v2763_v1 = vld [vmem:[%s4168_s1 + $0x404] ss:$8 sps:$4 sm:$0xff]   ;;  %1760 = vmatprep.subr.bf16.mxu1 %v2761_v0  ;;  %v2766_v3 = vld [vmem:[%s4168_s1 + $0x400] ss:$8 sps:$4 sm:$0xff]   ;;  %v2769_v5 = vld [vmem:[%s4168_s1 + $0x414] ss:$8 sps:$4 sm:$0xff]  }
   0x3   :  { %1972 = vmatprep.subr.bf16.mxu0 %v2763_v1  ;;  %1761 = vmatpush1.bf16.msra.mxu1 %v2765_v2  ;;  %v2771_v6 = vld [vmem:[%s4168_s1 + $0x10] ss:$8 sps:$4 sm:$0xff]   ;;  %v2773_v8 = vld [vmem:[%s4168_s1 + $0x24] ss:$8 sps:$4 sm:$0xff]   ;;  %v2777_v10 = vld [vmem:[%s4168_s1 + $0x20] ss:$8 sps:$4 sm:$0xff]  }
   0x4   :  { %1973 = vmatpush1.bf16.msra.mxu0 %v2766_v3  ;;  %1762 = vmatprep.subr.bf16.mxu1 %v2767_v4  ;;  %v2772_v7 = vld [vmem:[%s4168_s1 + $0x410] ss:$8 sps:$4 sm:$0xff]   ;;  %v2775_v9 = vld [vmem:[%s4168_s1 + $0x424] ss:$8 sps:$4 sm:$0xff]   ;;  %v2778_v11 = vld [vmem:[%s4168_s1 + $0x420] ss:$8 sps:$4 sm:$0xff]  }
   0x5   :  { %1974 = vmatprep.subr.bf16.mxu0 %v2769_v5  ;;  %v2779_v12 = vld [vmem:[%s4168_s1 + $0x34] ss:$8 sps:$4 sm:$0xff]   ;;  %v2783_v14 = vld [vmem:[%s4168_s1 + $0x30] ss:$8 sps:$4 sm:$0xff]   ;;  %v2785_v16 = vld [vmem:[%s4168_s1 + $0x44] ss:$8 sps:$4 sm:$0xff]  }
   0x6   :  { %v2781_v13 = vld [vmem:[%s4168_s1 + $0x434] ss:$8 sps:$4 sm:$0xff]   ;;  %v2784_v15 = vld [vmem:[%s4168_s1 + $0x430] ss:$8 sps:$4 sm:$0xff]   ;;  %v2787_v17 = vld [vmem:[%s4168_s1 + $0x444] ss:$8 sps:$4 sm:$0xff]  }
   0x7   :  { %1763 = vmatpush1.bf16.msra.mxu1 %v2771_v6  ;;  %v2789_v18 = vld [vmem:[%s4168_s1 + $0x40] ss:$8 sps:$4 sm:$0xff]   ;;  %v2791_v20 = vld [vmem:[%s4168_s1 + $0x54] ss:$8 sps:$4 sm:$0xff]   ;;  %v2795_v22 = vld [vmem:[%s4168_s1 + $0x50] ss:$8 sps:$4 sm:$0xff]  }
   0x8   :  { %1975 = vmatpush1.bf16.msra.mxu0 %v2772_v7  ;;  %1764 = vmatprep.subr.bf16.mxu1 %v2773_v8  ;;  %v2790_v19 = vld [vmem:[%s4168_s1 + $0x440] ss:$8 sps:$4 sm:$0xff]   ;;  %v2793_v21 = vld [vmem:[%s4168_s1 + $0x454] ss:$8 sps:$4 sm:$0xff]   ;;  %v2796_v23 = vld [vmem:[%s4168_s1 + $0x450] ss:$8 sps:$4 sm:$0xff]  }
   0x9   :  { %1976 = vmatprep.subr.bf16.mxu0 %v2775_v9  ;;  %v2797_v24 = vld [vmem:[%s4168_s1 + $0x64] ss:$8 sps:$4 sm:$0xff]   ;;  %v2801_v26 = vld [vmem:[%s4168_s1 + $0x60] ss:$8 sps:$4 sm:$0xff]   ;;  %v2803_v28 = vld [vmem:[%s4168_s1 + $0x74] ss:$8 sps:$4 sm:$0xff]  }
   0xa   :  { %v2799_v25 = vld [vmem:[%s4168_s1 + $0x464] ss:$8 sps:$4 sm:$0xff]   ;;  %v2802_v27 = vld [vmem:[%s4168_s1 + $0x460] ss:$8 sps:$4 sm:$0xff]   ;;  %v2805_v29 = vld [vmem:[%s4168_s1 + $0x474] ss:$8 sps:$4 sm:$0xff]  }
   0xb   :  { %1765 = vmatpush1.bf16.msra.mxu1 %v2777_v10  ;;  %v2807_v30 = vld [vmem:[%s4168_s1 + $0x70] ss:$8 sps:$4 sm:$0xff]   ;;  %v2809_v32 = vld [vmem:[%s4168_s1 + $0x84] ss:$8 sps:$4 sm:$0xff]   ;;  %v2813_v34 = vld [vmem:[%s4168_s1 + $0x80] ss:$8 sps:$4 sm:$0xff]  }
   0xc   :  { %1977 = vmatpush1.bf16.msra.mxu0 %v2778_v11  ;;  %1766 = vmatprep.subr.bf16.mxu1 %v2779_v12  ;;  %v2808_v31 = vld [vmem:[%s4168_s1 + $0x470] ss:$8 sps:$4 sm:$0xff]   ;;  %v2811_v33 = vld [vmem:[%s4168_s1 + $0x484] ss:$8 sps:$4 sm:$0xff]   ;;  %v2814_v35 = vld [vmem:[%s4168_s1 + $0x480] ss:$8 sps:$4 sm:$0xff]  }
   0xd   :  { %1978 = vmatprep.subr.bf16.mxu0 %v2781_v13  ;;  %v2815_v36 = vld [vmem:[%s4168_s1 + $0x94] ss:$8 sps:$4 sm:$0xff]   ;;  %v2819_v38 = vld [vmem:[%s4168_s1 + $0x90] ss:$8 sps:$4 sm:$0xff]   ;;  %v2821_v40 = vld [vmem:[%s4168_s1 + $0xa4] ss:$8 sps:$4 sm:$0xff]  }
   0xe   :  { %v2817_v37 = vld [vmem:[%s4168_s1 + $0x494] ss:$8 sps:$4 sm:$0xff]   ;;  %v2820_v39 = vld [vmem:[%s4168_s1 + $0x490] ss:$8 sps:$4 sm:$0xff]   ;;  %v2823_v41 = vld [vmem:[%s4168_s1 + $0x4a4] ss:$8 sps:$4 sm:$0xff]  }
   0xf   :  { %1767 = vmatpush1.bf16.msra.mxu1 %v2783_v14  ;;  %v2825_v42 = vld [vmem:[%s4168_s1 + $0xa0] ss:$8 sps:$4 sm:$0xff]   ;;  %v2827_v44 = vld [vmem:[%s4168_s1 + $0xb4] ss:$8 sps:$4 sm:$0xff]   ;;  %v2831_v46 = vld [vmem:[%s4168_s1 + $0xb0] ss:$8 sps:$4 sm:$0xff]  }
  0x10   :  { %1979 = vmatpush1.bf16.msra.mxu0 %v2784_v15  ;;  %1768 = vmatprep.subr.bf16.mxu1 %v2785_v16  ;;  %v2826_v43 = vld [vmem:[%s4168_s1 + $0x4a0] ss:$8 sps:$4 sm:$0xff]   ;;  %v2829_v45 = vld [vmem:[%s4168_s1 + $0x4b4] ss:$8 sps:$4 sm:$0xff]   ;;  %v2832_v47 = vld [vmem:[%s4168_s1 + $0x4b0] ss:$8 sps:$4 sm:$0xff]  }
  0x11   :  { %1980 = vmatprep.subr.bf16.mxu0 %v2787_v17  ;;  %v20_v48 = vld [vmem:[%s4169_s0] sm:$0xff]  ;;  %v2839_v58 = vld [vmem:[%s4168_s1 + $0xd4] ss:$8 sps:$4 sm:$0xff]   ;;  %v2843_v60 = vld [vmem:[%s4168_s1 + $0xd0] ss:$8 sps:$4 sm:$0xff]  }
  0x12   :  { %v28_v49 = vld [vmem:[%s4169_s0 + $0x40] sm:$0xff]  ;;  %v2841_v59 = vld [vmem:[%s4168_s1 + $0x4d4] ss:$8 sps:$4 sm:$0xff]   ;;  %v2844_v61 = vld [vmem:[%s4168_s1 + $0x4d0] ss:$8 sps:$4 sm:$0xff]  }
  0x13   :  { %1769 = vmatpush1.bf16.msra.mxu1 %v2789_v18  ;;  %v2833_v50 = vld [vmem:[%s4168_s1 + $0xc4] ss:$8 sps:$4 sm:$0xff]   ;;  %v2401_v52 = vcombine.high %v20_v48, %v28_v49  ;;  %v2837_v56 = vld [vmem:[%s4168_s1 + $0xc0] ss:$8 sps:$4 sm:$0xff]   ;;  %v2851_v2 = vld [vmem:[%s4168_s1 + $0xf4] ss:$8 sps:$4 sm:$0xff]   ;;  %v2400_v8 = vcombine.low %v20_v48, %v28_v49 }
  0x14   :  { %1981 = vmatpush1.bf16.msra.mxu0 %v2790_v19  ;;  %1770 = vmatprep.subr.bf16.mxu1 %v2791_v20  ;;  %v2835_v51 = vld [vmem:[%s4168_s1 + $0x4c4] ss:$8 sps:$4 sm:$0xff]   ;;  %v2838_v57 = vld [vmem:[%s4168_s1 + $0x4c0] ss:$8 sps:$4 sm:$0xff]   ;;  %v2853_v3 = vld [vmem:[%s4168_s1 + $0x4f4] ss:$8 sps:$4 sm:$0xff]  }
  0x15   :  { %1982 = vmatprep.subr.bf16.mxu0 %v2793_v21  ;;  %v24_v53 = vld [vmem:[%s4169_s0 + $0x20] sm:$0xff]  ;;  %1792 = vmatprep.mubr.bf16.mxu1 %v2401_v52  ;;  %v2855_v4 = vld [vmem:[%s4168_s1 + $0xf0] ss:$8 sps:$4 sm:$0xff]   ;;  %v2865_v12 = vld [vmem:[%s4168_s1 + $0x114] ss:$8 sps:$4 sm:$0xff]  }
  0x16   :  { %v32_v54 = vld [vmem:[%s4169_s0 + $0x60] sm:$0xff]  ;;  %v2856_v5 = vld [vmem:[%s4168_s1 + $0x4f0] ss:$8 sps:$4 sm:$0xff]   ;;  %v2868_v13 = vld [vmem:[%s4168_s1 + $0x514] ss:$8 sps:$4 sm:$0xff]  }
  0x17   :  { %1771 = vmatpush1.bf16.msra.mxu1 %v2795_v22  ;;  %v2409_v55 = vcombine.high %v24_v53, %v32_v54  ;;  %v2845_v62 = vld [vmem:[%s4168_s1 + $0xe4] ss:$8 sps:$4 sm:$0xff]   ;;  %v2849_v0 = vld [vmem:[%s4168_s1 + $0xe0] ss:$8 sps:$4 sm:$0xff]   ;;  %v2408_v10 = vcombine.low %v24_v53, %v32_v54  ;;  %v2863_v14 = vld [vmem:[%s4168_s1 + $0x110] ss:$8 sps:$4 sm:$0xff]  }
  0x18   :  { %1983 = vmatpush1.bf16.msra.mxu0 %v2796_v23  ;;  %1772 = vmatprep.subr.bf16.mxu1 %v2797_v24  ;;  %v2847_v63 = vld [vmem:[%s4168_s1 + $0x4e4] ss:$8 sps:$4 sm:$0xff]   ;;  %v2850_v1 = vld [vmem:[%s4168_s1 + $0x4e0] ss:$8 sps:$4 sm:$0xff]   ;;  %v2866_v15 = vld [vmem:[%s4168_s1 + $0x510] ss:$8 sps:$4 sm:$0xff]  }
  0x19   :  { %1984 = vmatprep.subr.bf16.mxu0 %v2799_v25  ;;  %2004 = vmatprep.mubr.bf16.mxu0 %v2409_v55  ;;  %v2859_v6 = vld [vmem:[%s4168_s1 + $0x104] ss:$8 sps:$4 sm:$0xff]   ;;  %v2857_v9 = vld [vmem:[%s4168_s1 + $0x100] ss:$8 sps:$4 sm:$0xff]   ;;  %v2877_v20 = vld [vmem:[%s4168_s1 + $0x134] ss:$8 sps:$4 sm:$0xff]  }
  0x1a   :  { %v2862_v7 = vld [vmem:[%s4168_s1 + $0x504] ss:$8 sps:$4 sm:$0xff]   ;;  %v2860_v11 = vld [vmem:[%s4168_s1 + $0x500] ss:$8 sps:$4 sm:$0xff]   ;;  %v2880_v21 = vld [vmem:[%s4168_s1 + $0x534] ss:$8 sps:$4 sm:$0xff]  }
  0x1b   :  { %1773 = vmatpush1.bf16.msra.mxu1 %v2801_v26  ;;  %v2871_v16 = vld [vmem:[%s4168_s1 + $0x124] ss:$8 sps:$4 sm:$0xff]   ;;  %v2869_v18 = vld [vmem:[%s4168_s1 + $0x120] ss:$8 sps:$4 sm:$0xff]   ;;  %v2875_v22 = vld [vmem:[%s4168_s1 + $0x130] ss:$8 sps:$4 sm:$0xff]  }
  0x1c   :  { %1985 = vmatpush1.bf16.msra.mxu0 %v2802_v27  ;;  %1774 = vmatprep.subr.bf16.mxu1 %v2803_v28  ;;  %v2874_v17 = vld [vmem:[%s4168_s1 + $0x524] ss:$8 sps:$4 sm:$0xff]   ;;  %v2872_v19 = vld [vmem:[%s4168_s1 + $0x520] ss:$8 sps:$4 sm:$0xff]   ;;  %v2878_v23 = vld [vmem:[%s4168_s1 + $0x530] ss:$8 sps:$4 sm:$0xff]  }
  0x1d   :  { %1986 = vmatprep.subr.bf16.mxu0 %v2805_v29  ;;  %v2883_v24 = vld [vmem:[%s4168_s1 + $0x144] ss:$8 sps:$4 sm:$0xff]   ;;  %v2881_v26 = vld [vmem:[%s4168_s1 + $0x140] ss:$8 sps:$4 sm:$0xff]   ;;  %v2889_v28 = vld [vmem:[%s4168_s1 + $0x154] ss:$8 sps:$4 sm:$0xff]  }
  0x1e   :  { %v2886_v25 = vld [vmem:[%s4168_s1 + $0x544] ss:$8 sps:$4 sm:$0xff]   ;;  %v2884_v27 = vld [vmem:[%s4168_s1 + $0x540] ss:$8 sps:$4 sm:$0xff]   ;;  %v2892_v29 = vld [vmem:[%s4168_s1 + $0x554] ss:$8 sps:$4 sm:$0xff]  }
  0x1f   :  { %1775 = vmatpush1.bf16.msra.mxu1 %v2807_v30  ;;  %v36_v30 = vld [vmem:[%s4169_s0 + $0x80] sm:$0xff]  ;;  %v3501_v49 = vld [vmem:[%s4169_s0 + $0x28] sm:$0xff]  ;;  %v2902_v52 = vld [vmem:[%s4168_s1 + $0x570] ss:$8 sps:$4 sm:$0xff]  }
  0x20   :  { %1987 = vmatpush1.bf16.msra.mxu0 %v2808_v31  ;;  %1776 = vmatprep.subr.bf16.mxu1 %v2809_v32  ;;  %v44_v31 = vld [vmem:[%s4169_s0 + $0xc0] sm:$0xff]  ;;  %v2887_v32 = vld [vmem:[%s4168_s1 + $0x150] ss:$8 sps:$4 sm:$0xff]  }
  0x21   :  { %1988 = vmatprep.subr.bf16.mxu0 %v2811_v33  ;;  %v2417_v33 = vcombine.high %v36_v30, %v44_v31  ;;  %v2907_v54 = vld [vmem:[%s4168_s1 + $0x184] ss:$8 sps:$4 sm:$0xff]  }
  0x22   :  { %v2910_v55 = vld [vmem:[%s4168_s1 + $0x584] ss:$8 sps:$4 sm:$0xff]  }
  0x23   :  { %1777 = vmatpush1.bf16.msra.mxu1 %v2813_v34  ;;  %v2890_v34 = vld [vmem:[%s4168_s1 + $0x550] ss:$8 sps:$4 sm:$0xff]  }
  0x24   :  { %1989 = vmatpush1.bf16.msra.mxu0 %v2814_v35  ;;  %1778 = vmatprep.subr.bf16.mxu1 %v2815_v36  ;;  %v40_v35 = vld [vmem:[%s4169_s0 + $0xa0] sm:$0xff] }
  0x25   :  { %1990 = vmatprep.subr.bf16.mxu0 %v2817_v37  ;;  %v48_v36 = vld [vmem:[%s4169_s0 + $0xe0] sm:$0xff]  ;;  %v2416_v37 = vcombine.low %v36_v30, %v44_v31  ;;  %v2961_v30 = vld [vmem:[%s4168_s1 + $0x214] ss:$8 sps:$4 sm:$0xff]  }
  0x26   :  { %v2964_v31 = vld [vmem:[%s4168_s1 + $0x614] ss:$8 sps:$4 sm:$0xff]  }
  0x27   :  { %1779 = vmatpush1.bf16.msra.mxu1 %v2819_v38  ;;  %v2895_v38 = vld [vmem:[%s4168_s1 + $0x164] ss:$8 sps:$4 sm:$0xff]  }
  0x28   :  { %1991 = vmatpush1.bf16.msra.mxu0 %v2820_v39  ;;  %1780 = vmatprep.subr.bf16.mxu1 %v2821_v40  ;;  %v2425_v39 = vcombine.high %v40_v35, %v48_v36  ;;  %v2424_v40 = vcombine.low %v40_v35, %v48_v36  ;;  %v2959_v36 = vld [vmem:[%s4168_s1 + $0x210] ss:$8 sps:$4 sm:$0xff]  }
  0x29   :  { %1992 = vmatprep.subr.bf16.mxu0 %v2823_v41  ;;  %v2898_v41 = vld [vmem:[%s4168_s1 + $0x564] ss:$8 sps:$4 sm:$0xff]  }
  0x2b   :  { %1781 = vmatpush1.bf16.msra.mxu1 %v2825_v42  ;;  %v2893_v42 = vld [vmem:[%s4168_s1 + $0x160] ss:$8 sps:$4 sm:$0xff]  }
  0x2c   :  { %1993 = vmatpush1.bf16.msra.mxu0 %v2826_v43  ;;  %1782 = vmatprep.subr.bf16.mxu1 %v2827_v44  ;;  %v2896_v43 = vld [vmem:[%s4168_s1 + $0x560] ss:$8 sps:$4 sm:$0xff]  }
  0x2d   :  { %1994 = vmatprep.subr.bf16.mxu0 %v2829_v45  ;;  %v3483_v44 = vld [vmem:[%s4169_s0 + $0x8] sm:$0xff] }
  0x2e   :  { %v3488_v45 = vld [vmem:[%s4169_s0 + $0x48] sm:$0xff] }
  0x2f   :  { %1783 = vmatpush1.bf16.msra.mxu1 %v2831_v46  ;;  %v2901_v46 = vld [vmem:[%s4168_s1 + $0x174] ss:$8 sps:$4 sm:$0xff]   ;;  %v2403_v48 = vcombine.high %v3483_v44, %v3488_v45 }
  0x30   :  { %1995 = vmatpush1.bf16.msra.mxu0 %v2832_v47  ;;  %1784 = vmatprep.subr.bf16.mxu1 %v2833_v50  ;;  %v2904_v47 = vld [vmem:[%s4168_s1 + $0x574] ss:$8 sps:$4 sm:$0xff]   ;;  %v3506_v50 = vld [vmem:[%s4169_s0 + $0x68] sm:$0xff] }
  0x31   :  { %1996 = vmatprep.subr.bf16.mxu0 %v2835_v51  ;;  %v2899_v51 = vld [vmem:[%s4168_s1 + $0x170] ss:$8 sps:$4 sm:$0xff]   ;;  %v2411_v53 = vcombine.high %v3501_v49, %v3506_v50 }
  0x33   :  { %1785 = vmatpush1.bf16.msra.mxu1 %v2837_v56  ;;  %v2905_v56 = vld [vmem:[%s4168_s1 + $0x180] ss:$8 sps:$4 sm:$0xff]  }
  0x34   :  { %1997 = vmatpush1.bf16.msra.mxu0 %v2838_v57  ;;  %1786 = vmatprep.subr.bf16.mxu1 %v2839_v58  ;;  %v2908_v57 = vld [vmem:[%s4168_s1 + $0x580] ss:$8 sps:$4 sm:$0xff]   ;;  %v2913_v58 = vld [vmem:[%s4168_s1 + $0x194] ss:$8 sps:$4 sm:$0xff]  }
  0x35   :  { %1998 = vmatprep.subr.bf16.mxu0 %v2841_v59  ;;  %v2916_v59 = vld [vmem:[%s4168_s1 + $0x594] ss:$8 sps:$4 sm:$0xff]  }
  0x37   :  { %1787 = vmatpush1.bf16.msra.mxu1 %v2843_v60  ;;  %v2911_v60 = vld [vmem:[%s4168_s1 + $0x190] ss:$8 sps:$4 sm:$0xff]  }
  0x38   :  { %1999 = vmatpush1.bf16.msra.mxu0 %v2844_v61  ;;  %1788 = vmatprep.subr.bf16.mxu1 %v2845_v62  ;;  %v2914_v61 = vld [vmem:[%s4168_s1 + $0x590] ss:$8 sps:$4 sm:$0xff]   ;;  %v2919_v62 = vld [vmem:[%s4168_s1 + $0x1a4] ss:$8 sps:$4 sm:$0xff]  }
  0x39   :  { %2000 = vmatprep.subr.bf16.mxu0 %v2847_v63  ;;  %v2922_v63 = vld [vmem:[%s4168_s1 + $0x5a4] ss:$8 sps:$4 sm:$0xff]  }
  0x3b   :  { %1789 = vmatpush1.bf16.msra.mxu1 %v2849_v0  ;;  %v2917_v0 = vld [vmem:[%s4168_s1 + $0x1a0] ss:$8 sps:$4 sm:$0xff]  }
  0x3c   :  { %2001 = vmatpush1.bf16.msra.mxu0 %v2850_v1  ;;  %1790 = vmatprep.subr.bf16.mxu1 %v2851_v2  ;;  %v2920_v1 = vld [vmem:[%s4168_s1 + $0x5a0] ss:$8 sps:$4 sm:$0xff]   ;;  %v2925_v2 = vld [vmem:[%s4168_s1 + $0x1b4] ss:$8 sps:$4 sm:$0xff]  }
  0x3d   :  { %2002 = vmatprep.subr.bf16.mxu0 %v2853_v3  ;;  %v2928_v3 = vld [vmem:[%s4168_s1 + $0x5b4] ss:$8 sps:$4 sm:$0xff]  }
  0x3f   :  { %1791 = vmatpush1.bf16.msra.mxu1 %v2855_v4  ;;  %v2923_v4 = vld [vmem:[%s4168_s1 + $0x1b0] ss:$8 sps:$4 sm:$0xff]  }
  0x40   :  { %2003 = vmatpush1.bf16.msra.mxu0 %v2856_v5  ;;  %1813 = vmatprep.subr.bf16.mxu1 %v2859_v6  ;;  %v2926_v5 = vld [vmem:[%s4168_s1 + $0x5b0] ss:$8 sps:$4 sm:$0xff]   ;;  %v2931_v6 = vld [vmem:[%s4168_s1 + $0x1c4] ss:$8 sps:$4 sm:$0xff]  }
  0x41   :  { %2025 = vmatprep.subr.bf16.mxu0 %v2862_v7  ;;  %v2934_v7 = vld [vmem:[%s4168_s1 + $0x5c4] ss:$8 sps:$4 sm:$0xff]  }
  0x42   :  { %1793 = vmatmul.mubr.bf16.vlgmr.msra.gmra.mrb[0].mxu1 %v2400_v8  ;;  %v2929_v8 = vld [vmem:[%s4168_s1 + $0x1c0] ss:$8 sps:$4 sm:$0xff]  }
  0x43   :  { %2005 = vmatmul.mubr.bf16.vlgmr.msra.gmra.mrb[0].mxu0 %v2408_v10  ;;  %1814 = vmatpush1.bf16.msra.mxu1 %v2857_v9  ;;  %v2932_v9 = vld [vmem:[%s4168_s1 + $0x5c0] ss:$8 sps:$4 sm:$0xff]   ;;  %v2937_v10 = vld [vmem:[%s4168_s1 + $0x1d4] ss:$8 sps:$4 sm:$0xff]  }
  0x44   :  { %2026 = vmatpush1.bf16.msra.mxu0 %v2860_v11  ;;  %1815 = vmatprep.subr.bf16.mxu1 %v2865_v12  ;;  %v2940_v11 = vld [vmem:[%s4168_s1 + $0x5d4] ss:$8 sps:$4 sm:$0xff]   ;;  %v2935_v12 = vld [vmem:[%s4168_s1 + $0x1d0] ss:$8 sps:$4 sm:$0xff]  }
  0x45   :  { %2027 = vmatprep.subr.bf16.mxu0 %v2868_v13  ;;  %1802 = vmatprep.mubr.bf16.mxu1 %v2417_v33  ;;  %v2938_v13 = vld [vmem:[%s4168_s1 + $0x5d0] ss:$8 sps:$4 sm:$0xff]   ;;  %v49_v33 = vld [vmem:[%s4169_s0 + $0xe8] sm:$0xff] }
  0x46   :  { %2014 = vmatprep.mubr.bf16.mxu0 %v2425_v39  ;;  %v2970_v39 = vld [vmem:[%s4168_s1 + $0x624] ss:$8 sps:$4 sm:$0xff]  }
  0x47   :  { %1816 = vmatpush1.bf16.msra.mxu1 %v2863_v14  ;;  %v2943_v14 = vld [vmem:[%s4168_s1 + $0x1e4] ss:$8 sps:$4 sm:$0xff]  }
  0x48   :  { %2028 = vmatpush1.bf16.msra.mxu0 %v2866_v15  ;;  %1817 = vmatprep.subr.bf16.mxu1 %v2871_v16  ;;  %v2946_v15 = vld [vmem:[%s4168_s1 + $0x5e4] ss:$8 sps:$4 sm:$0xff]   ;;  %v2941_v16 = vld [vmem:[%s4168_s1 + $0x1e0] ss:$8 sps:$4 sm:$0xff]  }
  0x49   :  { %2029 = vmatprep.subr.bf16.mxu0 %v2874_v17  ;;  %v2944_v17 = vld [vmem:[%s4168_s1 + $0x5e0] ss:$8 sps:$4 sm:$0xff]  }
  0x4a   :  { %1803 = vmatmul.mubr.bf16.gmra.mrb[4].mxu1 %v2416_v37  ;;  %v2962_v37 = vld [vmem:[%s4168_s1 + $0x610] ss:$8 sps:$4 sm:$0xff]  }
  0x4b   :  { %1818 = vmatpush1.bf16.msra.mxu1 %v2869_v18  ;;  %2015 = vmatmul.mubr.bf16.gmra.mrb[4].mxu0 %v2424_v40  ;;  %v2949_v18 = vld [vmem:[%s4168_s1 + $0x1f4] ss:$8 sps:$4 sm:$0xff]   ;;  %v2965_v40 = vld [vmem:[%s4168_s1 + $0x220] ss:$8 sps:$4 sm:$0xff]  }
  0x4c   :  { %2030 = vmatpush1.bf16.msra.mxu0 %v2872_v19  ;;  %1819 = vmatprep.subr.bf16.mxu1 %v2877_v20  ;;  %v2952_v19 = vld [vmem:[%s4168_s1 + $0x5f4] ss:$8 sps:$4 sm:$0xff]   ;;  %v2947_v20 = vld [vmem:[%s4168_s1 + $0x1f0] ss:$8 sps:$4 sm:$0xff]  }
  0x4d   :  { %2031 = vmatprep.subr.bf16.mxu0 %v2880_v21  ;;  %1845 = vmatprep.mubr.bf16.mxu1 %v2403_v48  ;;  %v2950_v21 = vld [vmem:[%s4168_s1 + $0x5f0] ss:$8 sps:$4 sm:$0xff]   ;;  %v2973_v48 = vld [vmem:[%s4168_s1 + $0x234] ss:$8 sps:$4 sm:$0xff]  }
  0x4e   :  { %2057 = vmatprep.mubr.bf16.mxu0 %v2411_v53  ;;  %v2974_v53 = vld [vmem:[%s4168_s1 + $0x630] ss:$8 sps:$4 sm:$0xff]  }
  0x4f   :  { %1820 = vmatpush1.bf16.msra.mxu1 %v2875_v22  ;;  %v2955_v22 = vld [vmem:[%s4168_s1 + $0x204] ss:$8 sps:$4 sm:$0xff]  }
  0x50   :  { %2032 = vmatpush1.bf16.msra.mxu0 %v2878_v23  ;;  %1821 = vmatprep.subr.bf16.mxu1 %v2883_v24  ;;  %v2958_v23 = vld [vmem:[%s4168_s1 + $0x604] ss:$8 sps:$4 sm:$0xff]   ;;  %v2953_v24 = vld [vmem:[%s4168_s1 + $0x200] ss:$8 sps:$4 sm:$0xff]  }
  0x51   :  { %2033 = vmatprep.subr.bf16.mxu0 %v2886_v25  ;;  %v2956_v25 = vld [vmem:[%s4168_s1 + $0x600] ss:$8 sps:$4 sm:$0xff]  }
  0x53   :  { %1822 = vmatpush1.bf16.msra.mxu1 %v2881_v26  ;;  %v37_v26 = vld [vmem:[%s4169_s0 + $0x88] sm:$0xff] }
  0x54   :  { %2034 = vmatpush1.bf16.msra.mxu0 %v2884_v27  ;;  %1823 = vmatprep.subr.bf16.mxu1 %v2889_v28  ;;  %v2402_v27 = vcombine.low %v3483_v44, %v3488_v45  ;;  %v2410_v28 = vcombine.low %v3501_v49, %v3506_v50  ;;  %v3672_v45 = vld [vmem:[%s4169_s0 + $0x50] sm:$0xff] }
  0x55   :  { %2035 = vmatprep.subr.bf16.mxu0 %v2892_v29  ;;  %v45_v29 = vld [vmem:[%s4169_s0 + $0xc8] sm:$0xff]  ;;  %v2976_v49 = vld [vmem:[%s4168_s1 + $0x634] ss:$8 sps:$4 sm:$0xff]  }
  0x57   :  { %1824 = vmatpush1.bf16.msra.mxu1 %v2887_v32  ;;  %v41_v32 = vld [vmem:[%s4169_s0 + $0xa8] sm:$0xff] }
  0x58   :  { %2036 = vmatpush1.bf16.msra.mxu0 %v2890_v34  ;;  %1825 = vmatprep.subr.bf16.mxu1 %v2895_v38  ;;  %v2419_v34 = vcombine.high %v37_v26, %v45_v29  ;;  %v2427_v35 = vcombine.high %v41_v32, %v49_v33  ;;  %v2967_v38 = vld [vmem:[%s4168_s1 + $0x224] ss:$8 sps:$4 sm:$0xff]   ;;  %v2426_v44 = vcombine.low %v41_v32, %v49_v33  ;;  %v3037_v32 = vld [vmem:[%s4168_s1 + $0x2e0] ss:$8 sps:$4 sm:$0xff]  }
  0x59   :  { %2037 = vmatprep.subr.bf16.mxu0 %v2898_v41  ;;  %v2968_v41 = vld [vmem:[%s4168_s1 + $0x620] ss:$8 sps:$4 sm:$0xff]  }
  0x5a   :  { %v3040_v33 = vld [vmem:[%s4168_s1 + $0x6e0] ss:$8 sps:$4 sm:$0xff]  }
  0x5b   :  { %1826 = vmatpush1.bf16.msra.mxu1 %v2893_v42  ;;  %v3667_v42 = vld [vmem:[%s4169_s0 + $0x10] sm:$0xff] }
  0x5c   :  { %2038 = vmatpush1.bf16.msra.mxu0 %v2896_v43  ;;  %1827 = vmatprep.subr.bf16.mxu1 %v2901_v46  ;;  %v2418_v43 = vcombine.low %v37_v26, %v45_v29  ;;  %v3677_v46 = vld [vmem:[%s4169_s0 + $0x30] sm:$0xff]  ;;  %v2405_v50 = vcombine.high %v3667_v42, %v3672_v45 }
  0x5d   :  { %2039 = vmatprep.subr.bf16.mxu0 %v2904_v47  ;;  %v3682_v47 = vld [vmem:[%s4169_s0 + $0x70] sm:$0xff] }
  0x5e   :  { %v3033_v26 = vld [vmem:[%s4168_s1 + $0x2d4] ss:$8 sps:$4 sm:$0xff]   ;;  %v3034_v29 = vld [vmem:[%s4168_s1 + $0x6d0] ss:$8 sps:$4 sm:$0xff]  }
  0x5f   :  { %1828 = vmatpush1.bf16.msra.mxu1 %v2899_v51  ;;  %v2413_v51 = vcombine.high %v3677_v46, %v3682_v47 }
  0x60   :  { %2040 = vmatpush1.bf16.msra.mxu0 %v2902_v52  ;;  %1829 = vmatprep.subr.bf16.mxu1 %v2907_v54  ;;  %v2971_v52 = vld [vmem:[%s4168_s1 + $0x230] ss:$8 sps:$4 sm:$0xff]   ;;  %v2979_v54 = vld [vmem:[%s4168_s1 + $0x244] ss:$8 sps:$4 sm:$0xff]  }
  0x61   :  { %2041 = vmatprep.subr.bf16.mxu0 %v2910_v55  ;;  %v2982_v55 = vld [vmem:[%s4168_s1 + $0x644] ss:$8 sps:$4 sm:$0xff]  }
  0x63   :  { %1830 = vmatpush1.bf16.msra.mxu1 %v2905_v56  ;;  %v2977_v56 = vld [vmem:[%s4168_s1 + $0x240] ss:$8 sps:$4 sm:$0xff]  }
  0x64   :  { %2042 = vmatpush1.bf16.msra.mxu0 %v2908_v57  ;;  %1831 = vmatprep.subr.bf16.mxu1 %v2913_v58  ;;  %v2980_v57 = vld [vmem:[%s4168_s1 + $0x640] ss:$8 sps:$4 sm:$0xff]   ;;  %v2985_v58 = vld [vmem:[%s4168_s1 + $0x254] ss:$8 sps:$4 sm:$0xff]  }
  0x65   :  { %2043 = vmatprep.subr.bf16.mxu0 %v2916_v59  ;;  %v2988_v59 = vld [vmem:[%s4168_s1 + $0x654] ss:$8 sps:$4 sm:$0xff]  }
  0x67   :  { %1832 = vmatpush1.bf16.msra.mxu1 %v2911_v60  ;;  %v2983_v60 = vld [vmem:[%s4168_s1 + $0x250] ss:$8 sps:$4 sm:$0xff]  }
  0x68   :  { %2044 = vmatpush1.bf16.msra.mxu0 %v2914_v61  ;;  %1833 = vmatprep.subr.bf16.mxu1 %v2919_v62  ;;  %v2986_v61 = vld [vmem:[%s4168_s1 + $0x650] ss:$8 sps:$4 sm:$0xff]   ;;  %v2991_v62 = vld [vmem:[%s4168_s1 + $0x264] ss:$8 sps:$4 sm:$0xff]  }
  0x69   :  { %2045 = vmatprep.subr.bf16.mxu0 %v2922_v63  ;;  %v2994_v63 = vld [vmem:[%s4168_s1 + $0x664] ss:$8 sps:$4 sm:$0xff]  }
  0x6b   :  { %1834 = vmatpush1.bf16.msra.mxu1 %v2917_v0  ;;  %v2989_v0 = vld [vmem:[%s4168_s1 + $0x260] ss:$8 sps:$4 sm:$0xff]  }
  0x6c   :  { %2046 = vmatpush1.bf16.msra.mxu0 %v2920_v1  ;;  %1835 = vmatprep.subr.bf16.mxu1 %v2925_v2  ;;  %v2992_v1 = vld [vmem:[%s4168_s1 + $0x660] ss:$8 sps:$4 sm:$0xff]   ;;  %v2997_v2 = vld [vmem:[%s4168_s1 + $0x274] ss:$8 sps:$4 sm:$0xff]  }
  0x6d   :  { %2047 = vmatprep.subr.bf16.mxu0 %v2928_v3  ;;  %v3000_v3 = vld [vmem:[%s4168_s1 + $0x674] ss:$8 sps:$4 sm:$0xff]  }
  0x6f   :  { %1836 = vmatpush1.bf16.msra.mxu1 %v2923_v4  ;;  %v2995_v4 = vld [vmem:[%s4168_s1 + $0x270] ss:$8 sps:$4 sm:$0xff]  }
  0x70   :  { %2048 = vmatpush1.bf16.msra.mxu0 %v2926_v5  ;;  %1837 = vmatprep.subr.bf16.mxu1 %v2931_v6  ;;  %v2998_v5 = vld [vmem:[%s4168_s1 + $0x670] ss:$8 sps:$4 sm:$0xff]   ;;  %v3003_v6 = vld [vmem:[%s4168_s1 + $0x284] ss:$8 sps:$4 sm:$0xff]  }
  0x71   :  { %2049 = vmatprep.subr.bf16.mxu0 %v2934_v7  ;;  %v3006_v7 = vld [vmem:[%s4168_s1 + $0x684] ss:$8 sps:$4 sm:$0xff]  }
  0x73   :  { %1838 = vmatpush1.bf16.msra.mxu1 %v2929_v8  ;;  %v3001_v8 = vld [vmem:[%s4168_s1 + $0x280] ss:$8 sps:$4 sm:$0xff]  }
  0x74   :  { %2050 = vmatpush1.bf16.msra.mxu0 %v2932_v9  ;;  %1839 = vmatprep.subr.bf16.mxu1 %v2937_v10  ;;  %v3004_v9 = vld [vmem:[%s4168_s1 + $0x680] ss:$8 sps:$4 sm:$0xff]   ;;  %v3009_v10 = vld [vmem:[%s4168_s1 + $0x294] ss:$8 sps:$4 sm:$0xff]  }
  0x75   :  { %2051 = vmatprep.subr.bf16.mxu0 %v2940_v11  ;;  %v3012_v11 = vld [vmem:[%s4168_s1 + $0x694] ss:$8 sps:$4 sm:$0xff]  }
  0x77   :  { %1840 = vmatpush1.bf16.msra.mxu1 %v2935_v12  ;;  %v3007_v12 = vld [vmem:[%s4168_s1 + $0x290] ss:$8 sps:$4 sm:$0xff]  }
  0x78   :  { %2052 = vmatpush1.bf16.msra.mxu0 %v2938_v13  ;;  %1841 = vmatprep.subr.bf16.mxu1 %v2943_v14  ;;  %v3010_v13 = vld [vmem:[%s4168_s1 + $0x690] ss:$8 sps:$4 sm:$0xff]   ;;  %v3015_v14 = vld [vmem:[%s4168_s1 + $0x2a4] ss:$8 sps:$4 sm:$0xff]  }
  0x79   :  { %2053 = vmatprep.subr.bf16.mxu0 %v2946_v15  ;;  %v3018_v15 = vld [vmem:[%s4168_s1 + $0x6a4] ss:$8 sps:$4 sm:$0xff]  }
  0x7b   :  { %1842 = vmatpush1.bf16.msra.mxu1 %v2941_v16  ;;  %v3013_v16 = vld [vmem:[%s4168_s1 + $0x2a0] ss:$8 sps:$4 sm:$0xff]  }
  0x7c   :  { %2054 = vmatpush1.bf16.msra.mxu0 %v2944_v17  ;;  %1843 = vmatprep.subr.bf16.mxu1 %v2949_v18  ;;  %v3016_v17 = vld [vmem:[%s4168_s1 + $0x6a0] ss:$8 sps:$4 sm:$0xff]   ;;  %v3021_v18 = vld [vmem:[%s4168_s1 + $0x2b4] ss:$8 sps:$4 sm:$0xff]  }
  0x7d   :  { %2055 = vmatprep.subr.bf16.mxu0 %v2952_v19  ;;  %v3024_v19 = vld [vmem:[%s4168_s1 + $0x6b4] ss:$8 sps:$4 sm:$0xff]  }
  0x7f   :  { %1844 = vmatpush1.bf16.msra.mxu1 %v2947_v20  ;;  %v3019_v20 = vld [vmem:[%s4168_s1 + $0x2b0] ss:$8 sps:$4 sm:$0xff]  }
  0x80   :  { %2056 = vmatpush1.bf16.msra.mxu0 %v2950_v21  ;;  %1866 = vmatprep.subr.bf16.mxu1 %v2955_v22  ;;  %v3022_v21 = vld [vmem:[%s4168_s1 + $0x6b0] ss:$8 sps:$4 sm:$0xff]   ;;  %v3027_v22 = vld [vmem:[%s4168_s1 + $0x2c4] ss:$8 sps:$4 sm:$0xff]  }
  0x81   :  { %2078 = vmatprep.subr.bf16.mxu0 %v2958_v23  ;;  %v3030_v23 = vld [vmem:[%s4168_s1 + $0x6c4] ss:$8 sps:$4 sm:$0xff]  }
  0x82   :  { %1846 = vmatmul.mubr.bf16.vlgmr.msra.gmra.mrb[0].mxu1 %v2402_v27  ;;  %v3036_v27 = vld [vmem:[%s4168_s1 + $0x6d4] ss:$8 sps:$4 sm:$0xff]  }
  0x83   :  { %2058 = vmatmul.mubr.bf16.vlgmr.msra.gmra.mrb[0].mxu0 %v2410_v28  ;;  %1867 = vmatpush1.bf16.msra.mxu1 %v2953_v24  ;;  %v3025_v24 = vld [vmem:[%s4168_s1 + $0x2c0] ss:$8 sps:$4 sm:$0xff]   ;;  %v3031_v28 = vld [vmem:[%s4168_s1 + $0x2d0] ss:$8 sps:$4 sm:$0xff]  }
  0x84   :  { %2079 = vmatpush1.bf16.msra.mxu0 %v2956_v25  ;;  %1868 = vmatprep.subr.bf16.mxu1 %v2961_v30  ;;  %v3028_v25 = vld [vmem:[%s4168_s1 + $0x6c0] ss:$8 sps:$4 sm:$0xff]   ;;  %v3039_v30 = vld [vmem:[%s4168_s1 + $0x2e4] ss:$8 sps:$4 sm:$0xff]  }
  0x85   :  { %2080 = vmatprep.subr.bf16.mxu0 %v2964_v31  ;;  %1855 = vmatprep.mubr.bf16.mxu1 %v2419_v34  ;;  %v3042_v31 = vld [vmem:[%s4168_s1 + $0x6e4] ss:$8 sps:$4 sm:$0xff]   ;;  %v3045_v34 = vld [vmem:[%s4168_s1 + $0x2f4] ss:$8 sps:$4 sm:$0xff]  }
  0x86   :  { %2067 = vmatprep.mubr.bf16.mxu0 %v2427_v35  ;;  %v3048_v35 = vld [vmem:[%s4168_s1 + $0x6f4] ss:$8 sps:$4 sm:$0xff]  }
  0x87   :  { %1869 = vmatpush1.bf16.msra.mxu1 %v2959_v36  ;;  %v3043_v36 = vld [vmem:[%s4168_s1 + $0x2f0] ss:$8 sps:$4 sm:$0xff]  }
  0x88   :  { %2081 = vmatpush1.bf16.msra.mxu0 %v2962_v37  ;;  %1870 = vmatprep.subr.bf16.mxu1 %v2967_v38  ;;  %v3046_v37 = vld [vmem:[%s4168_s1 + $0x6f0] ss:$8 sps:$4 sm:$0xff]   ;;  %v3051_v38 = vld [vmem:[%s4168_s1 + $0x304] ss:$8 sps:$4 sm:$0xff]  }
  0x89   :  { %2082 = vmatprep.subr.bf16.mxu0 %v2970_v39  ;;  %v3054_v39 = vld [vmem:[%s4168_s1 + $0x704] ss:$8 sps:$4 sm:$0xff]  }
  0x8a   :  { %1856 = vmatmul.mubr.bf16.gmra.mrb[4].mxu1 %v2418_v43  ;;  %v2412_v43 = vcombine.low %v3677_v46, %v3682_v47  ;;  %v3057_v46 = vld [vmem:[%s4168_s1 + $0x314] ss:$8 sps:$4 sm:$0xff]  }
  0x8b   :  { %2068 = vmatmul.mubr.bf16.gmra.mrb[4].mxu0 %v2426_v44  ;;  %1871 = vmatpush1.bf16.msra.mxu1 %v2965_v40  ;;  %v38_v40 = vld [vmem:[%s4169_s0 + $0x90] sm:$0xff] }
  0x8c   :  { %2083 = vmatpush1.bf16.msra.mxu0 %v2968_v41  ;;  %1872 = vmatprep.subr.bf16.mxu1 %v2973_v48  ;;  %v2404_v41 = vcombine.low %v3667_v42, %v3672_v45  ;;  %v46_v44 = vld [vmem:[%s4169_s0 + $0xd0] sm:$0xff]  ;;  %v3049_v42 = vld [vmem:[%s4168_s1 + $0x300] ss:$8 sps:$4 sm:$0xff]  }
  0x8d   :  { %2084 = vmatprep.subr.bf16.mxu0 %v2976_v49  ;;  %1898 = vmatprep.mubr.bf16.mxu1 %v2405_v50  ;;  %v42_v48 = vld [vmem:[%s4169_s0 + $0xb0] sm:$0xff]  ;;  %v3052_v45 = vld [vmem:[%s4168_s1 + $0x700] ss:$8 sps:$4 sm:$0xff]   ;;  %v2421_v50 = vcombine.high %v38_v40, %v46_v44 }
  0x8e   :  { %2110 = vmatprep.mubr.bf16.mxu0 %v2413_v51  ;;  %v50_v49 = vld [vmem:[%s4169_s0 + $0xf0] sm:$0xff] }
  0x8f   :  { %1873 = vmatpush1.bf16.msra.mxu1 %v2971_v52  ;;  %v3060_v47 = vld [vmem:[%s4168_s1 + $0x714] ss:$8 sps:$4 sm:$0xff]   ;;  %v2429_v51 = vcombine.high %v42_v48, %v50_v49  ;;  %v3055_v52 = vld [vmem:[%s4168_s1 + $0x310] ss:$8 sps:$4 sm:$0xff]  }
  0x90   :  { %2085 = vmatpush1.bf16.msra.mxu0 %v2974_v53  ;;  %1874 = vmatprep.subr.bf16.mxu1 %v2979_v54  ;;  %v3058_v53 = vld [vmem:[%s4168_s1 + $0x710] ss:$8 sps:$4 sm:$0xff]   ;;  %v3063_v54 = vld [vmem:[%s4168_s1 + $0x324] ss:$8 sps:$4 sm:$0xff]  }
  0x91   :  { %2086 = vmatprep.subr.bf16.mxu0 %v2982_v55  ;;  %v3066_v55 = vld [vmem:[%s4168_s1 + $0x724] ss:$8 sps:$4 sm:$0xff]  }
  0x93   :  { %1875 = vmatpush1.bf16.msra.mxu1 %v2977_v56  ;;  %v3893_v56 = vld [vmem:[%s4169_s0 + $0x18] sm:$0xff] }
  0x94   :  { %2087 = vmatpush1.bf16.msra.mxu0 %v2980_v57  ;;  %1876 = vmatprep.subr.bf16.mxu1 %v2985_v58  ;;  %v2420_v57 = vcombine.low %v38_v40, %v46_v44  ;;  %v2428_v58 = vcombine.low %v42_v48, %v50_v49  ;;  %v3121_v40 = vld [vmem:[%s4168_s1 + $0x3c0] ss:$8 sps:$4 sm:$0xff]   ;;  %v3132_v44 = vld [vmem:[%s4168_s1 + $0x7d4] ss:$8 sps:$4 sm:$0xff]   ;;  %v3127_v48 = vld [vmem:[%s4168_s1 + $0x3d0] ss:$8 sps:$4 sm:$0xff]  }
  0x95   :  { %2088 = vmatprep.subr.bf16.mxu0 %v2988_v59  ;;  %v3898_v59 = vld [vmem:[%s4169_s0 + $0x58] sm:$0xff] }
  0x96   :  { %v3130_v49 = vld [vmem:[%s4168_s1 + $0x7d0] ss:$8 sps:$4 sm:$0xff]  }
  0x97   :  { %1877 = vmatpush1.bf16.msra.mxu1 %v2983_v60  ;;  %v3903_v60 = vld [vmem:[%s4169_s0 + $0x38] sm:$0xff] }
  0x98   :  { %2089 = vmatpush1.bf16.msra.mxu0 %v2986_v61  ;;  %1878 = vmatprep.subr.bf16.mxu1 %v2991_v62  ;;  %v3908_v61 = vld [vmem:[%s4169_s0 + $0x78] sm:$0xff]  ;;  %v3061_v62 = vld [vmem:[%s4168_s1 + $0x320] ss:$8 sps:$4 sm:$0xff]  }
  0x99   :  { %2090 = vmatprep.subr.bf16.mxu0 %v2994_v63  ;;  %v3064_v63 = vld [vmem:[%s4168_s1 + $0x720] ss:$8 sps:$4 sm:$0xff]  }
  0x9b   :  { %1879 = vmatpush1.bf16.msra.mxu1 %v2989_v0  ;;  %v3069_v0 = vld [vmem:[%s4168_s1 + $0x334] ss:$8 sps:$4 sm:$0xff]  }
  0x9c   :  { %2091 = vmatpush1.bf16.msra.mxu0 %v2992_v1  ;;  %1880 = vmatprep.subr.bf16.mxu1 %v2997_v2  ;;  %v3072_v1 = vld [vmem:[%s4168_s1 + $0x734] ss:$8 sps:$4 sm:$0xff]   ;;  %v2407_v2 = vcombine.high %v3893_v56, %v3898_v59 }
  0x9d   :  { %2092 = vmatprep.subr.bf16.mxu0 %v3000_v3  ;;  %v2415_v3 = vcombine.high %v3903_v60, %v3908_v61 }
  0x9f   :  { %1881 = vmatpush1.bf16.msra.mxu1 %v2995_v4  ;;  %v3067_v4 = vld [vmem:[%s4168_s1 + $0x330] ss:$8 sps:$4 sm:$0xff]  }
  0xa0   :  { %2093 = vmatpush1.bf16.msra.mxu0 %v2998_v5  ;;  %1882 = vmatprep.subr.bf16.mxu1 %v3003_v6  ;;  %v3070_v5 = vld [vmem:[%s4168_s1 + $0x730] ss:$8 sps:$4 sm:$0xff]   ;;  %v3075_v6 = vld [vmem:[%s4168_s1 + $0x344] ss:$8 sps:$4 sm:$0xff]  }
  0xa1   :  { %2094 = vmatprep.subr.bf16.mxu0 %v3006_v7  ;;  %v3078_v7 = vld [vmem:[%s4168_s1 + $0x744] ss:$8 sps:$4 sm:$0xff]  }
  0xa3   :  { %1883 = vmatpush1.bf16.msra.mxu1 %v3001_v8  ;;  %v3073_v8 = vld [vmem:[%s4168_s1 + $0x340] ss:$8 sps:$4 sm:$0xff]  }
  0xa4   :  { %2095 = vmatpush1.bf16.msra.mxu0 %v3004_v9  ;;  %1884 = vmatprep.subr.bf16.mxu1 %v3009_v10  ;;  %v3076_v9 = vld [vmem:[%s4168_s1 + $0x740] ss:$8 sps:$4 sm:$0xff]   ;;  %v3081_v10 = vld [vmem:[%s4168_s1 + $0x354] ss:$8 sps:$4 sm:$0xff]  }
  0xa5   :  { %2096 = vmatprep.subr.bf16.mxu0 %v3012_v11  ;;  %v3084_v11 = vld [vmem:[%s4168_s1 + $0x754] ss:$8 sps:$4 sm:$0xff]  }
  0xa7   :  { %1885 = vmatpush1.bf16.msra.mxu1 %v3007_v12  ;;  %v3079_v12 = vld [vmem:[%s4168_s1 + $0x350] ss:$8 sps:$4 sm:$0xff]  }
  0xa8   :  { %2097 = vmatpush1.bf16.msra.mxu0 %v3010_v13  ;;  %1886 = vmatprep.subr.bf16.mxu1 %v3015_v14  ;;  %v3082_v13 = vld [vmem:[%s4168_s1 + $0x750] ss:$8 sps:$4 sm:$0xff]   ;;  %v3087_v14 = vld [vmem:[%s4168_s1 + $0x364] ss:$8 sps:$4 sm:$0xff]  }
  0xa9   :  { %2098 = vmatprep.subr.bf16.mxu0 %v3018_v15  ;;  %v3090_v15 = vld [vmem:[%s4168_s1 + $0x764] ss:$8 sps:$4 sm:$0xff]  }
  0xab   :  { %1887 = vmatpush1.bf16.msra.mxu1 %v3013_v16  ;;  %v3085_v16 = vld [vmem:[%s4168_s1 + $0x360] ss:$8 sps:$4 sm:$0xff]  }
  0xac   :  { %2099 = vmatpush1.bf16.msra.mxu0 %v3016_v17  ;;  %1888 = vmatprep.subr.bf16.mxu1 %v3021_v18  ;;  %v3088_v17 = vld [vmem:[%s4168_s1 + $0x760] ss:$8 sps:$4 sm:$0xff]   ;;  %v3093_v18 = vld [vmem:[%s4168_s1 + $0x374] ss:$8 sps:$4 sm:$0xff]  }
  0xad   :  { %2100 = vmatprep.subr.bf16.mxu0 %v3024_v19  ;;  %v3096_v19 = vld [vmem:[%s4168_s1 + $0x774] ss:$8 sps:$4 sm:$0xff]  }
  0xaf   :  { %1889 = vmatpush1.bf16.msra.mxu1 %v3019_v20  ;;  %v3091_v20 = vld [vmem:[%s4168_s1 + $0x370] ss:$8 sps:$4 sm:$0xff]  }
  0xb0   :  { %2101 = vmatpush1.bf16.msra.mxu0 %v3022_v21  ;;  %1890 = vmatprep.subr.bf16.mxu1 %v3027_v22  ;;  %v3094_v21 = vld [vmem:[%s4168_s1 + $0x770] ss:$8 sps:$4 sm:$0xff]   ;;  %v3099_v22 = vld [vmem:[%s4168_s1 + $0x384] ss:$8 sps:$4 sm:$0xff]  }
  0xb1   :  { %2102 = vmatprep.subr.bf16.mxu0 %v3030_v23  ;;  %v3102_v23 = vld [vmem:[%s4168_s1 + $0x784] ss:$8 sps:$4 sm:$0xff]  }
  0xb3   :  { %1891 = vmatpush1.bf16.msra.mxu1 %v3025_v24  ;;  %v3097_v24 = vld [vmem:[%s4168_s1 + $0x380] ss:$8 sps:$4 sm:$0xff]  }
  0xb4   :  { %2103 = vmatpush1.bf16.msra.mxu0 %v3028_v25  ;;  %1892 = vmatprep.subr.bf16.mxu1 %v3033_v26  ;;  %v3100_v25 = vld [vmem:[%s4168_s1 + $0x780] ss:$8 sps:$4 sm:$0xff]   ;;  %v3105_v26 = vld [vmem:[%s4168_s1 + $0x394] ss:$8 sps:$4 sm:$0xff]  }
  0xb5   :  { %2104 = vmatprep.subr.bf16.mxu0 %v3036_v27  ;;  %v3108_v27 = vld [vmem:[%s4168_s1 + $0x794] ss:$8 sps:$4 sm:$0xff]  }
  0xb7   :  { %1893 = vmatpush1.bf16.msra.mxu1 %v3031_v28  ;;  %v3103_v28 = vld [vmem:[%s4168_s1 + $0x390] ss:$8 sps:$4 sm:$0xff]  }
  0xb8   :  { %2105 = vmatpush1.bf16.msra.mxu0 %v3034_v29  ;;  %1894 = vmatprep.subr.bf16.mxu1 %v3039_v30  ;;  %v3106_v29 = vld [vmem:[%s4168_s1 + $0x790] ss:$8 sps:$4 sm:$0xff]   ;;  %v3111_v30 = vld [vmem:[%s4168_s1 + $0x3a4] ss:$8 sps:$4 sm:$0xff]  }
  0xb9   :  { %2106 = vmatprep.subr.bf16.mxu0 %v3042_v31  ;;  %v3114_v31 = vld [vmem:[%s4168_s1 + $0x7a4] ss:$8 sps:$4 sm:$0xff]  }
  0xbb   :  { %1895 = vmatpush1.bf16.msra.mxu1 %v3037_v32  ;;  %v3109_v32 = vld [vmem:[%s4168_s1 + $0x3a0] ss:$8 sps:$4 sm:$0xff]  }
  0xbc   :  { %2107 = vmatpush1.bf16.msra.mxu0 %v3040_v33  ;;  %1896 = vmatprep.subr.bf16.mxu1 %v3045_v34  ;;  %v3112_v33 = vld [vmem:[%s4168_s1 + $0x7a0] ss:$8 sps:$4 sm:$0xff]   ;;  %v3117_v34 = vld [vmem:[%s4168_s1 + $0x3b4] ss:$8 sps:$4 sm:$0xff]  }
  0xbd   :  { %2108 = vmatprep.subr.bf16.mxu0 %v3048_v35  ;;  %v3120_v35 = vld [vmem:[%s4168_s1 + $0x7b4] ss:$8 sps:$4 sm:$0xff]  }
  0xbf   :  { %1897 = vmatpush1.bf16.msra.mxu1 %v3043_v36  ;;  %v3115_v36 = vld [vmem:[%s4168_s1 + $0x3b0] ss:$8 sps:$4 sm:$0xff]  }
  0xc0   :  { %2109 = vmatpush1.bf16.msra.mxu0 %v3046_v37  ;;  %1919 = vmatprep.subr.bf16.mxu1 %v3051_v38  ;;  %v3118_v37 = vld [vmem:[%s4168_s1 + $0x7b0] ss:$8 sps:$4 sm:$0xff]   ;;  %v3123_v38 = vld [vmem:[%s4168_s1 + $0x3c4] ss:$8 sps:$4 sm:$0xff]  }
  0xc1   :  { %2131 = vmatprep.subr.bf16.mxu0 %v3054_v39  ;;  %v3126_v39 = vld [vmem:[%s4168_s1 + $0x7c4] ss:$8 sps:$4 sm:$0xff]  }
  0xc2   :  { %1899 = vmatmul.mubr.bf16.vlgmr.msra.gmra.mrb[0].mxu1 %v2404_v41  ;;  %v3124_v41 = vld [vmem:[%s4168_s1 + $0x7c0] ss:$8 sps:$4 sm:$0xff]  }
  0xc3   :  { %2111 = vmatmul.mubr.bf16.vlgmr.msra.gmra.mrb[0].mxu0 %v2412_v43  ;;  %1920 = vmatpush1.bf16.msra.mxu1 %v3049_v42  ;;  %v3129_v43 = vld [vmem:[%s4168_s1 + $0x3d4] ss:$8 sps:$4 sm:$0xff]   ;;  %v3135_v42 = vld [vmem:[%s4168_s1 + $0x3e4] ss:$8 sps:$4 sm:$0xff]  }
  0xc4   :  { %2132 = vmatpush1.bf16.msra.mxu0 %v3052_v45  ;;  %1921 = vmatprep.subr.bf16.mxu1 %v3057_v46  ;;  %v3138_v45 = vld [vmem:[%s4168_s1 + $0x7e4] ss:$8 sps:$4 sm:$0xff]   ;;  %v3133_v46 = vld [vmem:[%s4168_s1 + $0x3e0] ss:$8 sps:$4 sm:$0xff]  }
  0xc5   :  { %2133 = vmatprep.subr.bf16.mxu0 %v3060_v47  ;;  %1908 = vmatprep.mubr.bf16.mxu1 %v2421_v50  ;;  %v3136_v47 = vld [vmem:[%s4168_s1 + $0x7e0] ss:$8 sps:$4 sm:$0xff]   ;;  %v3141_v50 = vld [vmem:[%s4168_s1 + $0x3f4] ss:$8 sps:$4 sm:$0xff]  }
  0xc6   :  { %2120 = vmatprep.mubr.bf16.mxu0 %v2429_v51  ;;  %v3144_v51 = vld [vmem:[%s4168_s1 + $0x7f4] ss:$8 sps:$4 sm:$0xff]  }
  0xc7   :  { %1922 = vmatpush1.bf16.msra.mxu1 %v3055_v52  ;;  %v3139_v52 = vld [vmem:[%s4168_s1 + $0x3f0] ss:$8 sps:$4 sm:$0xff]  }
  0xc8   :  { %2134 = vmatpush1.bf16.msra.mxu0 %v3058_v53  ;;  %1923 = vmatprep.subr.bf16.mxu1 %v3063_v54  ;;  %v3142_v53 = vld [vmem:[%s4168_s1 + $0x7f0] ss:$8 sps:$4 sm:$0xff]  }
  0xc9   :  { %2135 = vmatprep.subr.bf16.mxu0 %v3066_v55  ;;  %v39_v54 = vld [vmem:[%s4169_s0 + $0x98] sm:$0xff] }
  0xca   :  { %1909 = vmatmul.mubr.bf16.gmra.mrb[4].mxu1 %v2420_v57  ;;  %v47_v55 = vld [vmem:[%s4169_s0 + $0xd8] sm:$0xff] }
  0xcb   :  { %2121 = vmatmul.mubr.bf16.gmra.mrb[4].mxu0 %v2428_v58  ;;  %1924 = vmatpush1.bf16.msra.mxu1 %v3061_v62  ;;  %v43_v57 = vld [vmem:[%s4169_s0 + $0xb8] sm:$0xff]  ;;  %v2406_v62 = vcombine.low %v3893_v56, %v3898_v59  ;;  %v308_v59 = vld [vmem:[%s4170_s2] sm:$0x3] }
  0xcc   :  { %2136 = vmatpush1.bf16.msra.mxu0 %v3064_v63  ;;  %1925 = vmatprep.subr.bf16.mxu1 %v3069_v0  ;;  %v51_v58 = vld [vmem:[%s4169_s0 + $0xf8] sm:$0xff]  ;;  %v2414_v63 = vcombine.low %v3903_v60, %v3908_v61  ;;  %v2423_v0 = vcombine.high %v39_v54, %v47_v55 }
  0xcd   :  { %2137 = vmatprep.subr.bf16.mxu0 %v3072_v1  ;;  %1951 = vmatprep.mubr.bf16.mxu1 %v2407_v2  ;;  %v2431_v1 = vcombine.high %v43_v57, %v51_v58  ;;  %v2422_v2 = vcombine.low %v39_v54, %v47_v55 }
  0xce   :  { %2163 = vmatprep.mubr.bf16.mxu0 %v2415_v3  ;;  %v2430_v3 = vcombine.low %v43_v57, %v51_v58 }
  0xcf   :  { %1926 = vmatpush1.bf16.msra.mxu1 %v3067_v4  ;;  %v310_v4 = vlaneseq }
  0xd0   :  { %2138 = vmatpush1.bf16.msra.mxu0 %v3070_v5  ;;  %1927 = vmatprep.subr.bf16.mxu1 %v3075_v6 }
  0xd1   :  { %2139 = vmatprep.subr.bf16.mxu0 %v3078_v7  ;;  %v4092_v5 = vshrl.u32 %v310_v4, 7 }
  0xd3   :  { %1928 = vmatpush1.bf16.msra.mxu1 %v3073_v8  ;;  %v4095_v56 = vsub.s32 0, %v4092_v5  ;;  %v4101_v60 = vsub.s32 1, %v4092_v5 }
  0xd4   :  { %2140 = vmatpush1.bf16.msra.mxu0 %v3076_v9  ;;  %1929 = vmatprep.subr.bf16.mxu1 %v3081_v10 }
  0xd5   :  { %2141 = vmatprep.subr.bf16.mxu0 %v3084_v11  ;;  %v313_v61 = vrot.slane %v308_v59, %v4095_v56  ;;  %v317_v6 = vrot.slane %v308_v59, %v4101_v60 }
  0xd7   :  { %1930 = vmatpush1.bf16.msra.mxu1 %v3079_v12 }
  0xd8   :  { %2142 = vmatpush1.bf16.msra.mxu0 %v3082_v13  ;;  %1931 = vmatprep.subr.bf16.mxu1 %v3087_v14 }
  0xd9   :  { %2143 = vmatprep.subr.bf16.mxu0 %v3090_v15 }
  0xdb   :  { %1932 = vmatpush1.bf16.msra.mxu1 %v3085_v16 }
  0xdc   :  { %2144 = vmatpush1.bf16.msra.mxu0 %v3088_v17  ;;  %1933 = vmatprep.subr.bf16.mxu1 %v3093_v18 }
  0xdd   :  { %2145 = vmatprep.subr.bf16.mxu0 %v3096_v19 }
  0xdf   :  { %1934 = vmatpush1.bf16.msra.mxu1 %v3091_v20 }
  0xe0   :  { %2146 = vmatpush1.bf16.msra.mxu0 %v3094_v21  ;;  %1935 = vmatprep.subr.bf16.mxu1 %v3099_v22 }
  0xe1   :  { %2147 = vmatprep.subr.bf16.mxu0 %v3102_v23 }
  0xe3   :  { %1936 = vmatpush1.bf16.msra.mxu1 %v3097_v24 }
  0xe4   :  { %2148 = vmatpush1.bf16.msra.mxu0 %v3100_v25  ;;  %1937 = vmatprep.subr.bf16.mxu1 %v3105_v26 }
  0xe5   :  { %2149 = vmatprep.subr.bf16.mxu0 %v3108_v27 }
  0xe7   :  { %1938 = vmatpush1.bf16.msra.mxu1 %v3103_v28 }
  0xe8   :  { %2150 = vmatpush1.bf16.msra.mxu0 %v3106_v29  ;;  %1939 = vmatprep.subr.bf16.mxu1 %v3111_v30 }
  0xe9   :  { %2151 = vmatprep.subr.bf16.mxu0 %v3114_v31 }
  0xeb   :  { %1940 = vmatpush1.bf16.msra.mxu1 %v3109_v32 }
  0xec   :  { %2152 = vmatpush1.bf16.msra.mxu0 %v3112_v33  ;;  %1941 = vmatprep.subr.bf16.mxu1 %v3117_v34 }
  0xed   :  { %2153 = vmatprep.subr.bf16.mxu0 %v3120_v35 }
  0xef   :  { %1942 = vmatpush1.bf16.msra.mxu1 %v3115_v36 }
  0xf0   :  { %2154 = vmatpush1.bf16.msra.mxu0 %v3118_v37  ;;  %1943 = vmatprep.subr.bf16.mxu1 %v3123_v38 }
  0xf1   :  { %2155 = vmatprep.subr.bf16.mxu0 %v3126_v39 }
  0xf3   :  { %1944 = vmatpush1.bf16.msra.mxu1 %v3121_v40 }
  0xf4   :  { %2156 = vmatpush1.bf16.msra.mxu0 %v3124_v41  ;;  %1945 = vmatprep.subr.bf16.mxu1 %v3129_v43 }
  0xf5   :  { %2157 = vmatprep.subr.bf16.mxu0 %v3132_v44 }
  0xf7   :  { %1946 = vmatpush1.bf16.msra.mxu1 %v3127_v48 }
  0xf8   :  { %2158 = vmatpush1.bf16.msra.mxu0 %v3130_v49  ;;  %1947 = vmatprep.subr.bf16.mxu1 %v3135_v42 }
  0xf9   :  { %2159 = vmatprep.subr.bf16.mxu0 %v3138_v45 }
  0xfb   :  { %1948 = vmatpush1.bf16.msra.mxu1 %v3133_v46 }
  0xfc   :  { %2160 = vmatpush1.bf16.msra.mxu0 %v3136_v47  ;;  %1949 = vmatprep.subr.bf16.mxu1 %v3141_v50 }
  0xfd   :  { %2161 = vmatprep.subr.bf16.mxu0 %v3144_v51 }
  0xff   :  { %1950 = vmatpush1.bf16.msra.mxu1 %v3139_v52 }
 0x100   :  { %2162 = vmatpush1.bf16.msra.mxu0 %v3142_v53 }
 0x102   :  { %1952 = vmatmul.mubr.bf16.vlgmr.msra.gmra.mrb[0].mxu1 %v2406_v62 }
 0x103   :  { %2164 = vmatmul.mubr.bf16.vlgmr.msra.gmra.mrb[0].mxu0 %v2414_v63  ;;  %1961 = vmatprep.mubr.bf16.mxu1 %v2423_v0 }
 0x104   :  { %2173 = vmatprep.mubr.bf16.mxu0 %v2431_v1 }
 0x10a   :  { %1962 = vmatmul.mubr.bf16.gmra.mrb[4].mxu1 %v2422_v2 }
 0x10b   :  { %2174 = vmatmul.mubr.bf16.gmra.mrb[4].mxu0 %v2430_v3 }
 0x1d5   :  { %v1953_v7 = vpop.f32.mrb[0].mxu1 }
 0x1d6   :  { %v2165_v8 = vpop.f32.mrb[0].mxu0  ;;  %v2696_v9 = vadd.f32 %v1953_v7, %v313_v61  ;;  %v1955_v10 = vpop.f32.mrb[1].mxu1 }
 0x1d7   :  { %v2167_v11 = vpop.f32.mrb[1].mxu0  ;;  %v2698_v12 = vadd.f32 %v1955_v10, %v317_v6  ;;  %v1957_v13 = vpop.f32.mrb[2].mxu1 }
 0x1d8   :  { %v2169_v14 = vpop.f32.mrb[2].mxu0  ;;  %v4105_v15 = vadd.f32 %v2696_v9, %v2165_v8  ;;  %v2700_v16 = vadd.f32 %v1957_v13, %v313_v61  ;;  %v1959_v17 = vpop.f32.mrb[3].mxu1 }
 0x1d9   :  { %v2171_v18 = vpop.f32.mrb[3].mxu0  ;;  %v4107_v19 = vadd.f32 %v2698_v12, %v2167_v11  ;;  %v2702_v20 = vadd.f32 %v1959_v17, %v317_v6 }
 0x1da   :  { %v4109_v21 = vadd.f32 %v2700_v16, %v2169_v14 }
 0x1db   :  { %v4111_v22 = vadd.f32 %v2702_v20, %v2171_v18 }
 0x1dc   :  { %v2210_v31 = vadd.f32 %v4109_v21, %v4105_v15 }
 0x1dd   :  { %v1963_v23 = vpop.f32.mrb[4].mxu1  ;;  %v2219_v36 = vadd.f32 %v4111_v22, %v4107_v19 }
 0x1de   :  { %v2175_v24 = vpop.f32.mrb[4].mxu0  ;;  %v2704_v25 = vadd.f32 %v1963_v23, %v313_v61  ;;  %v1965_v26 = vpop.f32.mrb[5].mxu1 }
 0x1df   :  { %v2177_v27 = vpop.f32.mrb[5].mxu0  ;;  %v2706_v28 = vadd.f32 %v1965_v26, %v317_v6  ;;  %v1967_v29 = vpop.f32.mrb[6].mxu1 }
 0x1e0   :  { %v2179_v30 = vpop.f32.mrb[6].mxu0  ;;  %v4115_v32 = vadd.f32 %v2704_v25, %v2175_v24  ;;  %v2708_v33 = vadd.f32 %v1967_v29, %v313_v61  ;;  %v1969_v34 = vpop.f32.mrb[7].mxu1 }
 0x1e1   :  { %v2181_v35 = vpop.f32.mrb[7].mxu0  ;;  %v4119_v37 = vadd.f32 %v2706_v28, %v2177_v27  ;;  %v2710_v38 = vadd.f32 %v1969_v34, %v317_v6 }
 0x1e2   :  { %v2211_v39 = vadd.f32 %v4115_v32, %v2210_v31  ;;  %v4122_v40 = vadd.f32 %v2708_v33, %v2179_v30 }
 0x1e3   :  { %v2220_v41 = vadd.f32 %v4119_v37, %v2219_v36  ;;  %v4125_v43 = vadd.f32 %v2710_v38, %v2181_v35 }
 0x1e4   :  { %v2212_v44 = vadd.f32 %v4122_v40, %v2211_v39 }
 0x1e5   :  { %v2221_v48 = vadd.f32 %v4125_v43, %v2220_v41 }
 0x1e6   :  { %v2213_v49 = vrot.slane %v2212_v44, 4 }
 0x1e7   :  { %v2222_v42 = vrot.slane %v2221_v48, 4 }
 0x1e8   :  { %v2214_v45 = vadd.f32 %v2213_v49, %v2212_v44 }
 0x1e9   :  { %v2223_v46 = vadd.f32 %v2222_v42, %v2221_v48  ;;  %v3149_v48 = vmov 1966171168  }
 0x1ea   :  { %v2215_v47 = vrot.slane %v2214_v45, 2  ;;  %v2275_v49 = vunpack.c.l.s4 %v3149_v48 }
 0x1eb   :  { %v2224_v50 = vrot.slane %v2223_v46, 2 }
 0x1ec   :  { %v2216_v51 = vadd.f32 %v2215_v47, %v2214_v45  ;;  %v2276_v42 = vunpack.c.0.s8 %v2275_v49 }
 0x1ed   :  { %v2225_v52 = vadd.f32 %v2224_v50, %v2223_v46 }
 0x1ee   :  { %v2217_v53 = vrot.slane %v2216_v51, 1  ;;  %v2279_v46 = vsub.s32 %v2276_v42, %v4092_v5  ;;  %v2290_v5 = vld [vmem:[%s4172_s4] sm:$0x3] }
 0x1ef   :  { %v2226_v54 = vrot.slane %v2225_v52, 1 }
 0x1f0   :  { %v2218_v55 = vadd.f32 %v2217_v53, %v2216_v51 }
 0x1f1   :  { %v2227_v57 = vadd.f32 %v2226_v54, %v2225_v52  ;;  %v2266_v52 = vld [vmem:[%s4171_s3] sm:$0x3] }
 0x1f2   :  { %v2228_v58 = vmul.f32 0.03125, %v2218_v55 }
 0x1f3   :  { %v2229_v62 = vmul.f32 0.03125, %v2227_v57 }
 0x1f4   :  { %v2230_v63 = vsub.f32 %v4105_v15, %v2228_v58  ;;  %v2232_v0 = vsub.f32 %v4109_v21, %v2228_v58  ;;  %v2234_v1 = vsub.f32 %v4115_v32, %v2228_v58  ;;  %v2236_v59 = vsub.f32 %v4122_v40, %v2228_v58 }
 0x1f5   :  { %v2231_v2 = vsub.f32 %v4107_v19, %v2229_v62  ;;  %v2233_v3 = vsub.f32 %v4111_v22, %v2229_v62  ;;  %v2235_v4 = vsub.f32 %v4119_v37, %v2229_v62  ;;  %v2237_v7 = vsub.f32 %v4125_v43, %v2229_v62 }
 0x1f6   :  { %v2238_v61 = vmul.f32 %v2230_v63, %v2230_v63  ;;  %v2240_v6 = vmul.f32 %v2232_v0, %v2232_v0  ;;  %v2242_v10 = vmul.f32 %v2234_v1, %v2234_v1  ;;  %v2244_v14 = vmul.f32 %v2236_v59, %v2236_v59 }
 0x1f7   :  { %v2239_v8 = vmul.f32 %v2231_v2, %v2231_v2  ;;  %v2241_v9 = vmul.f32 %v2233_v3, %v2233_v3  ;;  %v2243_v12 = vmul.f32 %v2235_v4, %v2235_v4  ;;  %v2245_v17 = vmul.f32 %v2237_v7, %v2237_v7 }
 0x1f8   :  { %v2246_v11 = vadd.f32 %v2240_v6, %v2238_v61 }
 0x1f9   :  { %v2255_v13 = vadd.f32 %v2241_v9, %v2239_v8 }
 0x1fa   :  { %v2247_v16 = vadd.f32 %v2246_v11, %v2242_v10 }
 0x1fb   :  { %v2256_v18 = vadd.f32 %v2255_v13, %v2243_v12 }
 0x1fc   :  { %v2248_v20 = vadd.f32 %v2247_v16, %v2244_v14 }
 0x1fd   :  { %v2257_v23 = vadd.f32 %v2256_v18, %v2245_v17 }
 0x1fe   :  { %v2249_v24 = vrot.slane %v2248_v20, 4 }
 0x1ff   :  { %v2258_v25 = vrot.slane %v2257_v23, 4 }
 0x200   :  { %v2250_v26 = vadd.f32 %v2249_v24, %v2248_v20 }
 0x201   :  { %v2259_v27 = vadd.f32 %v2258_v25, %v2257_v23 }
 0x202   :  { %v2251_v28 = vrot.slane %v2250_v26, 2 }
 0x203   :  { %v2260_v29 = vrot.slane %v2259_v27, 2 }
 0x204   :  { %v2252_v30 = vadd.f32 %v2251_v28, %v2250_v26 }
 0x205   :  { %v2261_v31 = vadd.f32 %v2260_v29, %v2259_v27 }
 0x206   :  { %v2253_v33 = vrot.slane %v2252_v30, 1 }
 0x207   :  { %v2262_v34 = vrot.slane %v2261_v31, 1 }
 0x208   :  { %v2254_v35 = vadd.f32 %v2253_v33, %v2252_v30 }
 0x209   :  { %v2263_v36 = vadd.f32 %v2262_v34, %v2261_v31 }
 0x20a   :  { %v2264_v38 = vmul.f32 0.03125, %v2254_v35 }
 0x20b   :  { %v2265_v39 = vmul.f32 0.03125, %v2263_v36 }
 0x20c   :  { %v2267_v41 = vadd.f32 1e-05, %v2264_v38 }
 0x20d   :  { %v2268_v44 = vadd.f32 1e-05, %v2265_v39 }
 0x20e   :  { %3145 = vrsqrt.f32 %v2267_v41 }
 0x20f   :  { %3147 = vrsqrt.f32 %v2268_v44 }
 0x218   :  { %v3146_v45 = vpop.eup %3145 }
 0x219   :  { %v3148_v47 = vpop.eup %3147 }
 0x21a   :  { %v2273_v50 = vcombine.low %v3146_v45, %v3148_v47 }
 0x21c   :  { %v2280_v51 = vrot.slane %v2273_v50, %v2279_v46 }
 0x21e   :  { %v2287_v53 = vrot.slane %v2280_v51, %v2279_v46 }
 0x220   :  { %v2289_v54 = vmul.f32 %v2287_v53, %v2266_v52 }
 0x222   :  { %v2295_v55 = vrot.slane %v2289_v54, %v4095_v56  ;;  %v2299_v57 = vrot.slane %v2289_v54, %v4101_v60 }
 0x224   :  { %v2302_v63 = vmul.f32 %v2295_v55, %v2228_v58  ;;  %v2303_v0 = vmul.f32 %v2299_v57, %v2229_v62  ;;  %v2323_v59 = vmul.f32 %v4105_v15, %v2295_v55  ;;  %v2324_v61 = vmul.f32 %v4107_v19, %v2299_v57 }
 0x225   :  { %v2325_v6 = vmul.f32 %v4109_v21, %v2295_v55  ;;  %v2326_v7 = vmul.f32 %v4111_v22, %v2299_v57  ;;  %v2327_v62 = vmul.f32 %v4115_v32, %v2295_v55  ;;  %v2328_v9 = vmul.f32 %v4119_v37, %v2299_v57 }
 0x226   :  { %v2306_v1 = vcombine.low %v2302_v63, %v2303_v0  ;;  %v2329_v10 = vmul.f32 %v4122_v40, %v2295_v55  ;;  %v2330_v11 = vmul.f32 %v4125_v43, %v2299_v57 }
 0x228   :  { %v2313_v2 = vrot.slane %v2306_v1, %v2279_v46 }
 0x22a   :  { %v2320_v3 = vrot.slane %v2313_v2, %v2279_v46 }
 0x22c   :  { %v2322_v4 = vsub.f32 %v2290_v5, %v2320_v3 }
 0x22e   :  { %v2335_v8 = vrot.slane %v2322_v4, %v4095_v56  ;;  %v2339_v58 = vrot.slane %v2322_v4, %v4101_v60 }
 0x230   :  { %v2342_v12 = vadd.f32 %v2335_v8, %v2323_v59  ;;  %v2343_v15 = vadd.f32 %v2339_v58, %v2324_v61  ;;  %v2344_v13 = vadd.f32 %v2335_v8, %v2325_v6  ;;  %v2345_v19 = vadd.f32 %v2339_v58, %v2326_v7 }
 0x231   :  { %v2346_v14 = vadd.f32 %v2335_v8, %v2327_v62  ;;  %v2347_v21 = vadd.f32 %v2339_v58, %v2328_v9  ;;  %v2348_v16 = vadd.f32 %v2335_v8, %v2329_v10  ;;  %v2349_v22 = vadd.f32 %v2339_v58, %v2330_v11 }
 0x232   :  { %v2350_v17 = vmul.f32 0.2, %v2342_v12  ;;  %v2351_v56 = vmul.f32 0.2, %v2343_v15  ;;  %v2352_v18 = vmul.f32 0.2, %v2344_v13 }
 0x233   :  { %v2353_v60 = vmul.f32 0.2, %v2345_v19  ;;  %v2354_v20 = vmul.f32 0.2, %v2346_v14  ;;  %v2355_v32 = vmul.f32 0.2, %v2347_v21 }
 0x234   :  { %v2356_v23 = vmul.f32 0.2, %v2348_v16  ;;  %v2357_v37 = vmul.f32 0.2, %v2349_v22  ;;  %v2358_v24 = vmax.f32 %v2342_v12, %v2350_v17  ;;  %v2359_v40 = vmax.f32 %v2343_v15, %v2351_v56 }
 0x235   :  { %v2360_v25 = vmax.f32 %v2344_v13, %v2352_v18  ;;  %v2361_v43 = vmax.f32 %v2345_v19, %v2353_v60  ;;  %v2362_v26 = vmax.f32 %v2346_v14, %v2354_v20  ;;  %v2363_v27 = vmax.f32 %v2347_v21, %v2355_v32 }
 0x236   :  { %v2364_v28 = vmax.f32 %v2348_v16, %v2356_v23  ;;  %v2365_v29 = vmax.f32 %v2349_v22, %v2357_v37  ;;  %v2692_v30 = vpack.c.bf16 %v2359_v40, %v2358_v24 }
 0x237   :  { %v2693_v31 = vpack.c.bf16 %v2361_v43, %v2360_v25  ;;  %v2694_v33 = vpack.c.bf16 %v2363_v27, %v2362_v26 }
 0x238   :  { %v2695_v34 = vpack.c.bf16 %v2365_v29, %v2364_v28  ;;  %2390 = vst [vmem:[%s4173_s5] sm:$0xff] %v2692_v30 }
 0x239   :  { %2391 = vst [vmem:[%s4173_s5 + $0x8] sm:$0xff] %v2693_v31  ;;  %2392 = vst [vmem:[%s4173_s5 + $0x10] sm:$0xff] %v2694_v33 }
 0x23a   :  { %2393 = vst [vmem:[%s4173_s5 + $0x18] sm:$0xff] %v2695_v34 }

// kernel: ndiscriminator_forward.7
= control target key start
LH: loop header
LB: loop body
LE: loop exit
PB: predicated region body
PF: predicated region fallthrough
CT: control target
= control target key end

     0   :  { %s4614_s1 = inlined_call_operand.vmem [shape: bf16[4096,128], index: 1, kind: input, shape index: {}]   ;;  %s4615_s0 = inlined_call_operand.vmem [shape: bf16[8,4096], index: 0, kind: input, shape index: {}]   ;;  %s4616_s2 = inlined_call_operand.vmem [shape: f32[1,128], index: 2, kind: input, shape index: {}]   ;;  %s4617_s3 = inlined_call_operand.vmem [shape: f32[8,128], index: 3, kind: output, shape index: {}]  }
   0x1   :  { %v3484_v0 = vld [vmem:[%s4614_s1 + $0x40] sm:$0xff]   ;;  %v3488_v4 = vld [vmem:[%s4614_s1 + $0x48] sm:$0xff]   ;;  %v3492_v8 = vld [vmem:[%s4614_s1 + $0x50] sm:$0xff]  }
   0x2   :  { %v3485_v1 = vld [vmem:[%s4614_s1 + $0xc0] sm:$0xff]   ;;  %3132 = vmatprep.subr.bf16.mxu0 %v3484_v0  ;;  %v3489_v5 = vld [vmem:[%s4614_s1 + $0xc8] sm:$0xff]   ;;  %v3493_v9 = vld [vmem:[%s4614_s1 + $0xd0] sm:$0xff]  }
   0x3   :  { %v3486_v2 = vld [vmem:[%s4614_s1] sm:$0xff]   ;;  %3154 = vmatprep.subr.bf16.mxu1 %v3485_v1  ;;  %v3490_v6 = vld [vmem:[%s4614_s1 + $0x8] sm:$0xff]   ;;  %v3494_v10 = vld [vmem:[%s4614_s1 + $0x10] sm:$0xff]  }
   0x4   :  { %v3487_v3 = vld [vmem:[%s4614_s1 + $0x80] sm:$0xff]   ;;  %3133 = vmatpush3.bf16.msra.mxu0 %v3486_v2  ;;  %v3491_v7 = vld [vmem:[%s4614_s1 + $0x88] sm:$0xff]   ;;  %v3495_v11 = vld [vmem:[%s4614_s1 + $0x90] sm:$0xff]  }
   0x5   :  { %3155 = vmatpush3.bf16.msra.mxu1 %v3487_v3  ;;  %3134 = vmatprep.subr.bf16.mxu0 %v3488_v4  ;;  %v3496_v12 = vld [vmem:[%s4614_s1 + $0x58] sm:$0xff]   ;;  %v3500_v16 = vld [vmem:[%s4614_s1 + $0x60] sm:$0xff]   ;;  %v3504_v20 = vld [vmem:[%s4614_s1 + $0x68] sm:$0xff]  }
   0x6   :  { %3156 = vmatprep.subr.bf16.mxu1 %v3489_v5  ;;  %v3497_v13 = vld [vmem:[%s4614_s1 + $0xd8] sm:$0xff]   ;;  %v3501_v17 = vld [vmem:[%s4614_s1 + $0xe0] sm:$0xff]   ;;  %v3505_v21 = vld [vmem:[%s4614_s1 + $0xe8] sm:$0xff]  }
   0x7   :  { %v3498_v14 = vld [vmem:[%s4614_s1 + $0x18] sm:$0xff]   ;;  %v3502_v18 = vld [vmem:[%s4614_s1 + $0x20] sm:$0xff]   ;;  %v3506_v22 = vld [vmem:[%s4614_s1 + $0x28] sm:$0xff]  }
   0x8   :  { %3135 = vmatpush3.bf16.msra.mxu0 %v3490_v6  ;;  %v3499_v15 = vld [vmem:[%s4614_s1 + $0x98] sm:$0xff]   ;;  %v3503_v19 = vld [vmem:[%s4614_s1 + $0xa0] sm:$0xff]   ;;  %v3507_v23 = vld [vmem:[%s4614_s1 + $0xa8] sm:$0xff]  }
   0x9   :  { %3157 = vmatpush3.bf16.msra.mxu1 %v3491_v7  ;;  %3136 = vmatprep.subr.bf16.mxu0 %v3492_v8  ;;  %v3508_v24 = vld [vmem:[%s4614_s1 + $0x70] sm:$0xff]   ;;  %v3512_v28 = vld [vmem:[%s4614_s1 + $0x78] sm:$0xff]   ;;  %v15_v32 = vld [vmem:[%s4615_s0] sm:$0xff] }
   0xa   :  { %3158 = vmatprep.subr.bf16.mxu1 %v3493_v9  ;;  %v3509_v25 = vld [vmem:[%s4614_s1 + $0xf0] sm:$0xff]   ;;  %v3513_v29 = vld [vmem:[%s4614_s1 + $0xf8] sm:$0xff]   ;;  %v16_v33 = vld [vmem:[%s4615_s0 + $0x8] sm:$0xff]  ;;  %v2844_v34 = vcombine.low %v15_v32, %v15_v32  ;;  %v2845_v35 = vcombine.high %v15_v32, %v15_v32 }
   0xb   :  { %v3510_v26 = vld [vmem:[%s4614_s1 + $0x30] sm:$0xff]   ;;  %v3514_v30 = vld [vmem:[%s4614_s1 + $0x38] sm:$0xff]   ;;  %v2846_v36 = vcombine.low %v16_v33, %v16_v33  ;;  %v2847_v37 = vcombine.high %v16_v33, %v16_v33  ;;  %v3520_v38 = vld [vmem:[%s4614_s1 + $0x140] sm:$0xff]  }
   0xc   :  { %3137 = vmatpush3.bf16.msra.mxu0 %v3494_v10  ;;  %v3511_v27 = vld [vmem:[%s4614_s1 + $0xb0] sm:$0xff]   ;;  %v3515_v31 = vld [vmem:[%s4614_s1 + $0xb8] sm:$0xff]   ;;  %v3521_v39 = vld [vmem:[%s4614_s1 + $0x1c0] sm:$0xff]   ;;  %2230 = vmatprep.mubr.bf16.mxu0 %v2845_v35 }
   0xd   :  { %3159 = vmatpush3.bf16.msra.mxu1 %v3495_v11  ;;  %3138 = vmatprep.subr.bf16.mxu0 %v3496_v12  ;;  %v3522_v40 = vld [vmem:[%s4614_s1 + $0x100] sm:$0xff]   ;;  %v3524_v42 = vld [vmem:[%s4614_s1 + $0x148] sm:$0xff]   ;;  %v3528_v46 = vld [vmem:[%s4614_s1 + $0x150] sm:$0xff]  }
   0xe   :  { %3160 = vmatprep.subr.bf16.mxu1 %v3497_v13  ;;  %2270 = vmatprep.mubr.bf16.mxu1 %v2847_v37  ;;  %v3523_v41 = vld [vmem:[%s4614_s1 + $0x180] sm:$0xff]   ;;  %v3525_v43 = vld [vmem:[%s4614_s1 + $0x1c8] sm:$0xff]   ;;  %v3529_v47 = vld [vmem:[%s4614_s1 + $0x1d0] sm:$0xff]  }
   0xf   :  { %v3526_v44 = vld [vmem:[%s4614_s1 + $0x108] sm:$0xff]   ;;  %v3530_v48 = vld [vmem:[%s4614_s1 + $0x110] sm:$0xff]   ;;  %v3532_v50 = vld [vmem:[%s4614_s1 + $0x158] sm:$0xff]  }
  0x10   :  { %3139 = vmatpush3.bf16.msra.mxu0 %v3498_v14  ;;  %v3527_v45 = vld [vmem:[%s4614_s1 + $0x188] sm:$0xff]   ;;  %v3531_v49 = vld [vmem:[%s4614_s1 + $0x190] sm:$0xff]   ;;  %v3533_v51 = vld [vmem:[%s4614_s1 + $0x1d8] sm:$0xff]  }
  0x11   :  { %3161 = vmatpush3.bf16.msra.mxu1 %v3499_v15  ;;  %3140 = vmatprep.subr.bf16.mxu0 %v3500_v16  ;;  %v3534_v52 = vld [vmem:[%s4614_s1 + $0x118] sm:$0xff]   ;;  %v3536_v54 = vld [vmem:[%s4614_s1 + $0x160] sm:$0xff]   ;;  %v3540_v58 = vld [vmem:[%s4614_s1 + $0x168] sm:$0xff]  }
  0x12   :  { %3162 = vmatprep.subr.bf16.mxu1 %v3501_v17  ;;  %v3535_v53 = vld [vmem:[%s4614_s1 + $0x198] sm:$0xff]   ;;  %v3537_v55 = vld [vmem:[%s4614_s1 + $0x1e0] sm:$0xff]   ;;  %v3541_v59 = vld [vmem:[%s4614_s1 + $0x1e8] sm:$0xff]  }
  0x13   :  { %v3538_v56 = vld [vmem:[%s4614_s1 + $0x120] sm:$0xff]   ;;  %v3542_v60 = vld [vmem:[%s4614_s1 + $0x128] sm:$0xff]   ;;  %v3544_v62 = vld [vmem:[%s4614_s1 + $0x170] sm:$0xff]  }
  0x14   :  { %3141 = vmatpush3.bf16.msra.mxu0 %v3502_v18  ;;  %v3539_v57 = vld [vmem:[%s4614_s1 + $0x1a0] sm:$0xff]   ;;  %v3543_v61 = vld [vmem:[%s4614_s1 + $0x1a8] sm:$0xff]   ;;  %v3545_v63 = vld [vmem:[%s4614_s1 + $0x1f0] sm:$0xff]  }
  0x15   :  { %3163 = vmatpush3.bf16.msra.mxu1 %v3503_v19  ;;  %3142 = vmatprep.subr.bf16.mxu0 %v3504_v20  ;;  %v3546_v0 = vld [vmem:[%s4614_s1 + $0x130] sm:$0xff]   ;;  %v3548_v2 = vld [vmem:[%s4614_s1 + $0x178] sm:$0xff]   ;;  %v3556_v12 = vld [vmem:[%s4614_s1 + $0x240] sm:$0xff]  }
  0x16   :  { %3164 = vmatprep.subr.bf16.mxu1 %v3505_v21  ;;  %v3547_v1 = vld [vmem:[%s4614_s1 + $0x1b0] sm:$0xff]   ;;  %v3549_v3 = vld [vmem:[%s4614_s1 + $0x1f8] sm:$0xff]   ;;  %v3557_v13 = vld [vmem:[%s4614_s1 + $0x2c0] sm:$0xff]  }
  0x17   :  { %v3550_v4 = vld [vmem:[%s4614_s1 + $0x138] sm:$0xff]   ;;  %v17_v6 = vld [vmem:[%s4615_s0 + $0x10] sm:$0xff]  ;;  %v3558_v14 = vld [vmem:[%s4614_s1 + $0x200] sm:$0xff]  }
  0x18   :  { %3143 = vmatpush3.bf16.msra.mxu0 %v3506_v22  ;;  %v3551_v5 = vld [vmem:[%s4614_s1 + $0x1b8] sm:$0xff]   ;;  %v2848_v7 = vcombine.low %v17_v6, %v17_v6  ;;  %v2849_v8 = vcombine.high %v17_v6, %v17_v6  ;;  %v3559_v15 = vld [vmem:[%s4614_s1 + $0x280] sm:$0xff]   ;;  %v3560_v16 = vld [vmem:[%s4614_s1 + $0x248] sm:$0xff]  }
  0x19   :  { %3165 = vmatpush3.bf16.msra.mxu1 %v3507_v23  ;;  %3144 = vmatprep.subr.bf16.mxu0 %v3508_v24  ;;  %v18_v9 = vld [vmem:[%s4615_s0 + $0x18] sm:$0xff]  ;;  %v3561_v17 = vld [vmem:[%s4614_s1 + $0x2c8] sm:$0xff]   ;;  %v3564_v20 = vld [vmem:[%s4614_s1 + $0x250] sm:$0xff]  }
  0x1a   :  { %3166 = vmatprep.subr.bf16.mxu1 %v3509_v25  ;;  %v2850_v10 = vcombine.low %v18_v9, %v18_v9  ;;  %v2851_v11 = vcombine.high %v18_v9, %v18_v9  ;;  %v3562_v18 = vld [vmem:[%s4614_s1 + $0x208] sm:$0xff]   ;;  %v3565_v21 = vld [vmem:[%s4614_s1 + $0x2d0] sm:$0xff]   ;;  %v3568_v24 = vld [vmem:[%s4614_s1 + $0x258] sm:$0xff]  }
  0x1b   :  { %v3563_v19 = vld [vmem:[%s4614_s1 + $0x288] sm:$0xff]   ;;  %v3566_v22 = vld [vmem:[%s4614_s1 + $0x210] sm:$0xff]   ;;  %v3569_v25 = vld [vmem:[%s4614_s1 + $0x2d8] sm:$0xff]  }
  0x1c   :  { %3145 = vmatpush3.bf16.msra.mxu0 %v3510_v26  ;;  %v3567_v23 = vld [vmem:[%s4614_s1 + $0x290] sm:$0xff]   ;;  %v3570_v26 = vld [vmem:[%s4614_s1 + $0x218] sm:$0xff]   ;;  %v3576_v32 = vld [vmem:[%s4614_s1 + $0x268] sm:$0xff]  }
  0x1d   :  { %3167 = vmatpush3.bf16.msra.mxu1 %v3511_v27  ;;  %3146 = vmatprep.subr.bf16.mxu0 %v3512_v28  ;;  %v3571_v27 = vld [vmem:[%s4614_s1 + $0x298] sm:$0xff]   ;;  %v3572_v28 = vld [vmem:[%s4614_s1 + $0x260] sm:$0xff]   ;;  %v3577_v33 = vld [vmem:[%s4614_s1 + $0x2e8] sm:$0xff]  }
  0x1e   :  { %3168 = vmatprep.subr.bf16.mxu1 %v3513_v29  ;;  %v3573_v29 = vld [vmem:[%s4614_s1 + $0x2e0] sm:$0xff]   ;;  %v3579_v35 = vld [vmem:[%s4614_s1 + $0x2a8] sm:$0xff]   ;;  %v3581_v37 = vld [vmem:[%s4614_s1 + $0x2f0] sm:$0xff]  }
  0x1f   :  { %v3612_v6 = vld [vmem:[%s4614_s1 + $0x368] sm:$0xff]  }
  0x20   :  { %3147 = vmatpush3.bf16.msra.mxu0 %v3514_v30  ;;  %v3574_v30 = vld [vmem:[%s4614_s1 + $0x220] sm:$0xff]   ;;  %v3615_v9 = vld [vmem:[%s4614_s1 + $0x3a8] sm:$0xff]  }
  0x21   :  { %3169 = vmatpush3.bf16.msra.mxu1 %v3515_v31  ;;  %3176 = vmatprep.subr.bf16.mxu0 %v3520_v38  ;;  %v3575_v31 = vld [vmem:[%s4614_s1 + $0x2a0] sm:$0xff]   ;;  %v3582_v38 = vld [vmem:[%s4614_s1 + $0x230] sm:$0xff]  }
  0x22   :  { %3198 = vmatprep.subr.bf16.mxu1 %v3521_v39  ;;  %v3583_v39 = vld [vmem:[%s4614_s1 + $0x2b0] sm:$0xff]  }
  0x23   :  { %2231 = vmatmul.mubr.bf16.vlgmr.msra.gmra.mrb[0].mxu0 %v2844_v34  ;;  %v3578_v34 = vld [vmem:[%s4614_s1 + $0x228] sm:$0xff]  }
  0x24   :  { %2271 = vmatmul.mubr.bf16.vlgmr.msra.gmra.mrb[0].mxu1 %v2846_v36  ;;  %3177 = vmatpush3.bf16.msra.mxu0 %v3522_v40  ;;  %v3580_v36 = vld [vmem:[%s4614_s1 + $0x270] sm:$0xff]   ;;  %v3584_v40 = vld [vmem:[%s4614_s1 + $0x278] sm:$0xff]  }
  0x25   :  { %3199 = vmatpush3.bf16.msra.mxu1 %v3523_v41  ;;  %3178 = vmatprep.subr.bf16.mxu0 %v3524_v42  ;;  %v3585_v41 = vld [vmem:[%s4614_s1 + $0x2f8] sm:$0xff]  }
  0x26   :  { %3200 = vmatprep.subr.bf16.mxu1 %v3525_v43  ;;  %2310 = vmatprep.mubr.bf16.mxu0 %v2849_v8  ;;  %v3586_v42 = vld [vmem:[%s4614_s1 + $0x238] sm:$0xff]   ;;  %v3614_v8 = vld [vmem:[%s4614_s1 + $0x328] sm:$0xff]  }
  0x27   :  { %2350 = vmatprep.mubr.bf16.mxu1 %v2851_v11  ;;  %v3587_v43 = vld [vmem:[%s4614_s1 + $0x2b8] sm:$0xff]   ;;  %v3617_v11 = vld [vmem:[%s4614_s1 + $0x3f0] sm:$0xff]  }
  0x28   :  { %3179 = vmatpush3.bf16.msra.mxu0 %v3526_v44  ;;  %v19_v44 = vld [vmem:[%s4615_s0 + $0x20] sm:$0xff] }
  0x29   :  { %3201 = vmatpush3.bf16.msra.mxu1 %v3527_v45  ;;  %3180 = vmatprep.subr.bf16.mxu0 %v3528_v46  ;;  %v20_v45 = vld [vmem:[%s4615_s0 + $0x28] sm:$0xff]  ;;  %v2852_v46 = vcombine.low %v19_v44, %v19_v44 }
  0x2a   :  { %3202 = vmatprep.subr.bf16.mxu1 %v3529_v47  ;;  %v2853_v47 = vcombine.high %v19_v44, %v19_v44  ;;  %v3648_v44 = vld [vmem:[%s4614_s1 + $0x468] sm:$0xff]  }
  0x2c   :  { %3181 = vmatpush3.bf16.msra.mxu0 %v3530_v48  ;;  %v2854_v48 = vcombine.low %v20_v45, %v20_v45 }
  0x2d   :  { %3203 = vmatpush3.bf16.msra.mxu1 %v3531_v49  ;;  %3182 = vmatprep.subr.bf16.mxu0 %v3532_v50  ;;  %v2855_v49 = vcombine.high %v20_v45, %v20_v45  ;;  %v3592_v50 = vld [vmem:[%s4614_s1 + $0x340] sm:$0xff]   ;;  %v3649_v45 = vld [vmem:[%s4614_s1 + $0x4e8] sm:$0xff]  }
  0x2e   :  { %3204 = vmatprep.subr.bf16.mxu1 %v3533_v51  ;;  %v3593_v51 = vld [vmem:[%s4614_s1 + $0x3c0] sm:$0xff]  }
  0x30   :  { %3183 = vmatpush3.bf16.msra.mxu0 %v3534_v52  ;;  %v3594_v52 = vld [vmem:[%s4614_s1 + $0x300] sm:$0xff]  }
  0x31   :  { %3205 = vmatpush3.bf16.msra.mxu1 %v3535_v53  ;;  %3184 = vmatprep.subr.bf16.mxu0 %v3536_v54  ;;  %v3595_v53 = vld [vmem:[%s4614_s1 + $0x380] sm:$0xff]   ;;  %v3596_v54 = vld [vmem:[%s4614_s1 + $0x348] sm:$0xff]  }
  0x32   :  { %3206 = vmatprep.subr.bf16.mxu1 %v3537_v55  ;;  %v3597_v55 = vld [vmem:[%s4614_s1 + $0x3c8] sm:$0xff]  }
  0x34   :  { %3185 = vmatpush3.bf16.msra.mxu0 %v3538_v56  ;;  %v3598_v56 = vld [vmem:[%s4614_s1 + $0x308] sm:$0xff]  }
  0x35   :  { %3207 = vmatpush3.bf16.msra.mxu1 %v3539_v57  ;;  %3186 = vmatprep.subr.bf16.mxu0 %v3540_v58  ;;  %v3599_v57 = vld [vmem:[%s4614_s1 + $0x388] sm:$0xff]   ;;  %v3600_v58 = vld [vmem:[%s4614_s1 + $0x350] sm:$0xff]  }
  0x36   :  { %3208 = vmatprep.subr.bf16.mxu1 %v3541_v59  ;;  %v3601_v59 = vld [vmem:[%s4614_s1 + $0x3d0] sm:$0xff]  }
  0x38   :  { %3187 = vmatpush3.bf16.msra.mxu0 %v3542_v60  ;;  %v3602_v60 = vld [vmem:[%s4614_s1 + $0x310] sm:$0xff]  }
  0x39   :  { %3209 = vmatpush3.bf16.msra.mxu1 %v3543_v61  ;;  %3188 = vmatprep.subr.bf16.mxu0 %v3544_v62  ;;  %v3603_v61 = vld [vmem:[%s4614_s1 + $0x390] sm:$0xff]   ;;  %v3604_v62 = vld [vmem:[%s4614_s1 + $0x358] sm:$0xff]  }
  0x3a   :  { %3210 = vmatprep.subr.bf16.mxu1 %v3545_v63  ;;  %v3605_v63 = vld [vmem:[%s4614_s1 + $0x3d8] sm:$0xff]  }
  0x3c   :  { %3189 = vmatpush3.bf16.msra.mxu0 %v3546_v0  ;;  %v3606_v0 = vld [vmem:[%s4614_s1 + $0x318] sm:$0xff]  }
  0x3d   :  { %3211 = vmatpush3.bf16.msra.mxu1 %v3547_v1  ;;  %3190 = vmatprep.subr.bf16.mxu0 %v3548_v2  ;;  %v3607_v1 = vld [vmem:[%s4614_s1 + $0x398] sm:$0xff]   ;;  %v3608_v2 = vld [vmem:[%s4614_s1 + $0x360] sm:$0xff]  }
  0x3e   :  { %3212 = vmatprep.subr.bf16.mxu1 %v3549_v3  ;;  %v3609_v3 = vld [vmem:[%s4614_s1 + $0x3e0] sm:$0xff]  }
  0x40   :  { %3191 = vmatpush3.bf16.msra.mxu0 %v3550_v4  ;;  %v3610_v4 = vld [vmem:[%s4614_s1 + $0x320] sm:$0xff]  }
  0x41   :  { %3213 = vmatpush3.bf16.msra.mxu1 %v3551_v5  ;;  %3220 = vmatprep.subr.bf16.mxu0 %v3556_v12  ;;  %v3611_v5 = vld [vmem:[%s4614_s1 + $0x3a0] sm:$0xff]   ;;  %v3618_v12 = vld [vmem:[%s4614_s1 + $0x330] sm:$0xff]  }
  0x42   :  { %3242 = vmatprep.subr.bf16.mxu1 %v3557_v13  ;;  %v3619_v13 = vld [vmem:[%s4614_s1 + $0x3b0] sm:$0xff]  }
  0x43   :  { %2311 = vmatmul.mubr.bf16.vlgmr.msra.gmra.mrb[4].mxu0 %v2848_v7  ;;  %v3613_v7 = vld [vmem:[%s4614_s1 + $0x3e8] sm:$0xff]  }
  0x44   :  { %2351 = vmatmul.mubr.bf16.vlgmr.msra.gmra.mrb[4].mxu1 %v2850_v10  ;;  %3221 = vmatpush3.bf16.msra.mxu0 %v3558_v14  ;;  %v3616_v10 = vld [vmem:[%s4614_s1 + $0x370] sm:$0xff]   ;;  %v3620_v14 = vld [vmem:[%s4614_s1 + $0x378] sm:$0xff]  }
  0x45   :  { %3243 = vmatpush3.bf16.msra.mxu1 %v3559_v15  ;;  %3222 = vmatprep.subr.bf16.mxu0 %v3560_v16  ;;  %v3621_v15 = vld [vmem:[%s4614_s1 + $0x3f8] sm:$0xff]  }
  0x46   :  { %3244 = vmatprep.subr.bf16.mxu1 %v3561_v17  ;;  %2390 = vmatprep.mubr.bf16.mxu0 %v2853_v47  ;;  %v3622_v16 = vld [vmem:[%s4614_s1 + $0x338] sm:$0xff]   ;;  %v3651_v47 = vld [vmem:[%s4614_s1 + $0x4a8] sm:$0xff]  }
  0x47   :  { %2430 = vmatprep.mubr.bf16.mxu1 %v2855_v49  ;;  %v3623_v17 = vld [vmem:[%s4614_s1 + $0x3b8] sm:$0xff]   ;;  %v3653_v49 = vld [vmem:[%s4614_s1 + $0x4f0] sm:$0xff]  }
  0x48   :  { %3223 = vmatpush3.bf16.msra.mxu0 %v3562_v18  ;;  %v21_v18 = vld [vmem:[%s4615_s0 + $0x30] sm:$0xff] }
  0x49   :  { %3245 = vmatpush3.bf16.msra.mxu1 %v3563_v19  ;;  %3224 = vmatprep.subr.bf16.mxu0 %v3564_v20  ;;  %v22_v19 = vld [vmem:[%s4615_s0 + $0x38] sm:$0xff]  ;;  %v2856_v20 = vcombine.low %v21_v18, %v21_v18 }
  0x4a   :  { %3246 = vmatprep.subr.bf16.mxu1 %v3565_v21  ;;  %v2857_v21 = vcombine.high %v21_v18, %v21_v18  ;;  %v3684_v18 = vld [vmem:[%s4614_s1 + $0x568] sm:$0xff]  }
  0x4c   :  { %3225 = vmatpush3.bf16.msra.mxu0 %v3566_v22  ;;  %v2858_v22 = vcombine.low %v22_v19, %v22_v19 }
  0x4d   :  { %3247 = vmatpush3.bf16.msra.mxu1 %v3567_v23  ;;  %3226 = vmatprep.subr.bf16.mxu0 %v3568_v24  ;;  %v3628_v23 = vld [vmem:[%s4614_s1 + $0x440] sm:$0xff]   ;;  %v2859_v24 = vcombine.high %v22_v19, %v22_v19  ;;  %v3685_v19 = vld [vmem:[%s4614_s1 + $0x5e8] sm:$0xff]  }
  0x4e   :  { %3248 = vmatprep.subr.bf16.mxu1 %v3569_v25  ;;  %v3629_v25 = vld [vmem:[%s4614_s1 + $0x4c0] sm:$0xff]  }
  0x50   :  { %3227 = vmatpush3.bf16.msra.mxu0 %v3570_v26  ;;  %v3630_v26 = vld [vmem:[%s4614_s1 + $0x400] sm:$0xff]  }
  0x51   :  { %3249 = vmatpush3.bf16.msra.mxu1 %v3571_v27  ;;  %3228 = vmatprep.subr.bf16.mxu0 %v3572_v28  ;;  %v3631_v27 = vld [vmem:[%s4614_s1 + $0x480] sm:$0xff]   ;;  %v3632_v28 = vld [vmem:[%s4614_s1 + $0x448] sm:$0xff]  }
  0x52   :  { %3250 = vmatprep.subr.bf16.mxu1 %v3573_v29  ;;  %v3633_v29 = vld [vmem:[%s4614_s1 + $0x4c8] sm:$0xff]  }
  0x54   :  { %3229 = vmatpush3.bf16.msra.mxu0 %v3574_v30  ;;  %v3634_v30 = vld [vmem:[%s4614_s1 + $0x408] sm:$0xff]  }
  0x55   :  { %3251 = vmatpush3.bf16.msra.mxu1 %v3575_v31  ;;  %3230 = vmatprep.subr.bf16.mxu0 %v3576_v32  ;;  %v3635_v31 = vld [vmem:[%s4614_s1 + $0x488] sm:$0xff]   ;;  %v3636_v32 = vld [vmem:[%s4614_s1 + $0x450] sm:$0xff]  }
  0x56   :  { %3252 = vmatprep.subr.bf16.mxu1 %v3577_v33  ;;  %v3637_v33 = vld [vmem:[%s4614_s1 + $0x4d0] sm:$0xff]  }
  0x58   :  { %3231 = vmatpush3.bf16.msra.mxu0 %v3578_v34  ;;  %v3638_v34 = vld [vmem:[%s4614_s1 + $0x410] sm:$0xff]  }
  0x59   :  { %3253 = vmatpush3.bf16.msra.mxu1 %v3579_v35  ;;  %3232 = vmatprep.subr.bf16.mxu0 %v3580_v36  ;;  %v3639_v35 = vld [vmem:[%s4614_s1 + $0x490] sm:$0xff]   ;;  %v3640_v36 = vld [vmem:[%s4614_s1 + $0x458] sm:$0xff]  }
  0x5a   :  { %3254 = vmatprep.subr.bf16.mxu1 %v3581_v37  ;;  %v3641_v37 = vld [vmem:[%s4614_s1 + $0x4d8] sm:$0xff]  }
  0x5c   :  { %3233 = vmatpush3.bf16.msra.mxu0 %v3582_v38  ;;  %v3642_v38 = vld [vmem:[%s4614_s1 + $0x418] sm:$0xff]  }
  0x5d   :  { %3255 = vmatpush3.bf16.msra.mxu1 %v3583_v39  ;;  %3234 = vmatprep.subr.bf16.mxu0 %v3584_v40  ;;  %v3643_v39 = vld [vmem:[%s4614_s1 + $0x498] sm:$0xff]   ;;  %v3644_v40 = vld [vmem:[%s4614_s1 + $0x460] sm:$0xff]  }
  0x5e   :  { %3256 = vmatprep.subr.bf16.mxu1 %v3585_v41  ;;  %v3645_v41 = vld [vmem:[%s4614_s1 + $0x4e0] sm:$0xff]  }
  0x60   :  { %3235 = vmatpush3.bf16.msra.mxu0 %v3586_v42  ;;  %v3646_v42 = vld [vmem:[%s4614_s1 + $0x420] sm:$0xff]  }
  0x61   :  { %3257 = vmatpush3.bf16.msra.mxu1 %v3587_v43  ;;  %3264 = vmatprep.subr.bf16.mxu0 %v3592_v50  ;;  %v3647_v43 = vld [vmem:[%s4614_s1 + $0x4a0] sm:$0xff]   ;;  %v3654_v50 = vld [vmem:[%s4614_s1 + $0x430] sm:$0xff]  }
  0x62   :  { %3286 = vmatprep.subr.bf16.mxu1 %v3593_v51  ;;  %v3655_v51 = vld [vmem:[%s4614_s1 + $0x4b0] sm:$0xff]  }
  0x63   :  { %2391 = vmatmul.mubr.bf16.vlgmr.msra.gmra.mrb[8].mxu0 %v2852_v46  ;;  %v3650_v46 = vld [vmem:[%s4614_s1 + $0x428] sm:$0xff]  }
  0x64   :  { %2431 = vmatmul.mubr.bf16.vlgmr.msra.gmra.mrb[8].mxu1 %v2854_v48  ;;  %3265 = vmatpush3.bf16.msra.mxu0 %v3594_v52  ;;  %v3652_v48 = vld [vmem:[%s4614_s1 + $0x470] sm:$0xff]   ;;  %v3656_v52 = vld [vmem:[%s4614_s1 + $0x478] sm:$0xff]  }
  0x65   :  { %3287 = vmatpush3.bf16.msra.mxu1 %v3595_v53  ;;  %3266 = vmatprep.subr.bf16.mxu0 %v3596_v54  ;;  %v3657_v53 = vld [vmem:[%s4614_s1 + $0x4f8] sm:$0xff]  }
  0x66   :  { %3288 = vmatprep.subr.bf16.mxu1 %v3597_v55  ;;  %2470 = vmatprep.mubr.bf16.mxu0 %v2857_v21  ;;  %v3658_v54 = vld [vmem:[%s4614_s1 + $0x438] sm:$0xff]   ;;  %v3687_v21 = vld [vmem:[%s4614_s1 + $0x5a8] sm:$0xff]  }
  0x67   :  { %2510 = vmatprep.mubr.bf16.mxu1 %v2859_v24  ;;  %v3659_v55 = vld [vmem:[%s4614_s1 + $0x4b8] sm:$0xff]   ;;  %v3690_v24 = vld [vmem:[%s4614_s1 + $0x530] sm:$0xff]  }
  0x68   :  { %3267 = vmatpush3.bf16.msra.mxu0 %v3598_v56  ;;  %v23_v56 = vld [vmem:[%s4615_s0 + $0x40] sm:$0xff] }
  0x69   :  { %3289 = vmatpush3.bf16.msra.mxu1 %v3599_v57  ;;  %3268 = vmatprep.subr.bf16.mxu0 %v3600_v58  ;;  %v2860_v57 = vcombine.low %v23_v56, %v23_v56  ;;  %v2861_v58 = vcombine.high %v23_v56, %v23_v56  ;;  %v3720_v56 = vld [vmem:[%s4614_s1 + $0x668] sm:$0xff]  }
  0x6a   :  { %3290 = vmatprep.subr.bf16.mxu1 %v3601_v59  ;;  %v24_v59 = vld [vmem:[%s4615_s0 + $0x48] sm:$0xff] }
  0x6c   :  { %3269 = vmatpush3.bf16.msra.mxu0 %v3602_v60  ;;  %v2862_v60 = vcombine.low %v24_v59, %v24_v59 }
  0x6d   :  { %3291 = vmatpush3.bf16.msra.mxu1 %v3603_v61  ;;  %3270 = vmatprep.subr.bf16.mxu0 %v3604_v62  ;;  %v2863_v61 = vcombine.high %v24_v59, %v24_v59  ;;  %v3664_v62 = vld [vmem:[%s4614_s1 + $0x540] sm:$0xff]   ;;  %v3723_v59 = vld [vmem:[%s4614_s1 + $0x6a8] sm:$0xff]  }
  0x6e   :  { %3292 = vmatprep.subr.bf16.mxu1 %v3605_v63  ;;  %v3665_v63 = vld [vmem:[%s4614_s1 + $0x5c0] sm:$0xff]  }
  0x70   :  { %3271 = vmatpush3.bf16.msra.mxu0 %v3606_v0  ;;  %v3666_v0 = vld [vmem:[%s4614_s1 + $0x500] sm:$0xff]  }
  0x71   :  { %3293 = vmatpush3.bf16.msra.mxu1 %v3607_v1  ;;  %3272 = vmatprep.subr.bf16.mxu0 %v3608_v2  ;;  %v3667_v1 = vld [vmem:[%s4614_s1 + $0x580] sm:$0xff]   ;;  %v3668_v2 = vld [vmem:[%s4614_s1 + $0x548] sm:$0xff]  }
  0x72   :  { %3294 = vmatprep.subr.bf16.mxu1 %v3609_v3  ;;  %v3669_v3 = vld [vmem:[%s4614_s1 + $0x5c8] sm:$0xff]  }
  0x74   :  { %3273 = vmatpush3.bf16.msra.mxu0 %v3610_v4  ;;  %v3670_v4 = vld [vmem:[%s4614_s1 + $0x508] sm:$0xff]  }
  0x75   :  { %3295 = vmatpush3.bf16.msra.mxu1 %v3611_v5  ;;  %3274 = vmatprep.subr.bf16.mxu0 %v3612_v6  ;;  %v3671_v5 = vld [vmem:[%s4614_s1 + $0x588] sm:$0xff]   ;;  %v3672_v6 = vld [vmem:[%s4614_s1 + $0x550] sm:$0xff]  }
  0x76   :  { %3296 = vmatprep.subr.bf16.mxu1 %v3613_v7  ;;  %v3673_v7 = vld [vmem:[%s4614_s1 + $0x5d0] sm:$0xff]  }
  0x78   :  { %3275 = vmatpush3.bf16.msra.mxu0 %v3614_v8  ;;  %v3674_v8 = vld [vmem:[%s4614_s1 + $0x510] sm:$0xff]  }
  0x79   :  { %3297 = vmatpush3.bf16.msra.mxu1 %v3615_v9  ;;  %3276 = vmatprep.subr.bf16.mxu0 %v3616_v10  ;;  %v3675_v9 = vld [vmem:[%s4614_s1 + $0x590] sm:$0xff]   ;;  %v3676_v10 = vld [vmem:[%s4614_s1 + $0x558] sm:$0xff]  }
  0x7a   :  { %3298 = vmatprep.subr.bf16.mxu1 %v3617_v11  ;;  %v3677_v11 = vld [vmem:[%s4614_s1 + $0x5d8] sm:$0xff]  }
  0x7c   :  { %3277 = vmatpush3.bf16.msra.mxu0 %v3618_v12  ;;  %v3678_v12 = vld [vmem:[%s4614_s1 + $0x518] sm:$0xff]  }
  0x7d   :  { %3299 = vmatpush3.bf16.msra.mxu1 %v3619_v13  ;;  %3278 = vmatprep.subr.bf16.mxu0 %v3620_v14  ;;  %v3679_v13 = vld [vmem:[%s4614_s1 + $0x598] sm:$0xff]   ;;  %v3680_v14 = vld [vmem:[%s4614_s1 + $0x560] sm:$0xff]  }
  0x7e   :  { %3300 = vmatprep.subr.bf16.mxu1 %v3621_v15  ;;  %v3681_v15 = vld [vmem:[%s4614_s1 + $0x5e0] sm:$0xff]  }
  0x80   :  { %3279 = vmatpush3.bf16.msra.mxu0 %v3622_v16  ;;  %v3682_v16 = vld [vmem:[%s4614_s1 + $0x520] sm:$0xff]  }
  0x81   :  { %3301 = vmatpush3.bf16.msra.mxu1 %v3623_v17  ;;  %3308 = vmatprep.subr.bf16.mxu0 %v3628_v23  ;;  %v3683_v17 = vld [vmem:[%s4614_s1 + $0x5a0] sm:$0xff]   ;;  %v3689_v23 = vld [vmem:[%s4614_s1 + $0x5f0] sm:$0xff]  }
  0x82   :  { %3330 = vmatprep.subr.bf16.mxu1 %v3629_v25  ;;  %v3691_v25 = vld [vmem:[%s4614_s1 + $0x5b0] sm:$0xff]  }
  0x83   :  { %2471 = vmatmul.mubr.bf16.vlgmr.msra.gmra.mrb[12].mxu0 %v2856_v20  ;;  %v3686_v20 = vld [vmem:[%s4614_s1 + $0x528] sm:$0xff]  }
  0x84   :  { %2511 = vmatmul.mubr.bf16.vlgmr.msra.gmra.mrb[12].mxu1 %v2858_v22  ;;  %3309 = vmatpush3.bf16.msra.mxu0 %v3630_v26  ;;  %v3688_v22 = vld [vmem:[%s4614_s1 + $0x570] sm:$0xff]   ;;  %v3692_v26 = vld [vmem:[%s4614_s1 + $0x578] sm:$0xff]  }
  0x85   :  { %3331 = vmatpush3.bf16.msra.mxu1 %v3631_v27  ;;  %3310 = vmatprep.subr.bf16.mxu0 %v3632_v28  ;;  %v3693_v27 = vld [vmem:[%s4614_s1 + $0x5f8] sm:$0xff]  }
  0x86   :  { %3332 = vmatprep.subr.bf16.mxu1 %v3633_v29  ;;  %2550 = vmatprep.mubr.bf16.mxu0 %v2861_v58  ;;  %v3694_v28 = vld [vmem:[%s4614_s1 + $0x538] sm:$0xff]   ;;  %v3722_v58 = vld [vmem:[%s4614_s1 + $0x628] sm:$0xff]  }
  0x87   :  { %2590 = vmatprep.mubr.bf16.mxu1 %v2863_v61  ;;  %v3695_v29 = vld [vmem:[%s4614_s1 + $0x5b8] sm:$0xff]   ;;  %v3725_v61 = vld [vmem:[%s4614_s1 + $0x6f0] sm:$0xff]  }
  0x88   :  { %3311 = vmatpush3.bf16.msra.mxu0 %v3634_v30  ;;  %v25_v30 = vld [vmem:[%s4615_s0 + $0x50] sm:$0xff] }
  0x89   :  { %3333 = vmatpush3.bf16.msra.mxu1 %v3635_v31  ;;  %3312 = vmatprep.subr.bf16.mxu0 %v3636_v32  ;;  %v26_v31 = vld [vmem:[%s4615_s0 + $0x58] sm:$0xff]  ;;  %v2864_v32 = vcombine.low %v25_v30, %v25_v30 }
  0x8a   :  { %3334 = vmatprep.subr.bf16.mxu1 %v3637_v33  ;;  %v2865_v33 = vcombine.high %v25_v30, %v25_v30  ;;  %v3755_v30 = vld [vmem:[%s4614_s1 + $0x7a0] sm:$0xff]  }
  0x8c   :  { %3313 = vmatpush3.bf16.msra.mxu0 %v3638_v34  ;;  %v2866_v34 = vcombine.low %v26_v31, %v26_v31 }
  0x8d   :  { %3335 = vmatpush3.bf16.msra.mxu1 %v3639_v35  ;;  %3314 = vmatprep.subr.bf16.mxu0 %v3640_v36  ;;  %v2867_v35 = vcombine.high %v26_v31, %v26_v31  ;;  %v3700_v36 = vld [vmem:[%s4614_s1 + $0x640] sm:$0xff]  }
  0x8e   :  { %3336 = vmatprep.subr.bf16.mxu1 %v3641_v37  ;;  %v3701_v37 = vld [vmem:[%s4614_s1 + $0x6c0] sm:$0xff]  }
  0x90   :  { %3315 = vmatpush3.bf16.msra.mxu0 %v3642_v38  ;;  %v3702_v38 = vld [vmem:[%s4614_s1 + $0x600] sm:$0xff]  }
  0x91   :  { %3337 = vmatpush3.bf16.msra.mxu1 %v3643_v39  ;;  %3316 = vmatprep.subr.bf16.mxu0 %v3644_v40  ;;  %v3703_v39 = vld [vmem:[%s4614_s1 + $0x680] sm:$0xff]   ;;  %v3704_v40 = vld [vmem:[%s4614_s1 + $0x648] sm:$0xff]  }
  0x92   :  { %3338 = vmatprep.subr.bf16.mxu1 %v3645_v41  ;;  %v3705_v41 = vld [vmem:[%s4614_s1 + $0x6c8] sm:$0xff]  }
  0x94   :  { %3317 = vmatpush3.bf16.msra.mxu0 %v3646_v42  ;;  %v3706_v42 = vld [vmem:[%s4614_s1 + $0x608] sm:$0xff]  }
  0x95   :  { %3339 = vmatpush3.bf16.msra.mxu1 %v3647_v43  ;;  %3318 = vmatprep.subr.bf16.mxu0 %v3648_v44  ;;  %v3707_v43 = vld [vmem:[%s4614_s1 + $0x688] sm:$0xff]   ;;  %v3708_v44 = vld [vmem:[%s4614_s1 + $0x650] sm:$0xff]  }
  0x96   :  { %3340 = vmatprep.subr.bf16.mxu1 %v3649_v45  ;;  %v3709_v45 = vld [vmem:[%s4614_s1 + $0x6d0] sm:$0xff]  }
  0x98   :  { %3319 = vmatpush3.bf16.msra.mxu0 %v3650_v46  ;;  %v3710_v46 = vld [vmem:[%s4614_s1 + $0x610] sm:$0xff]  }
  0x99   :  { %3341 = vmatpush3.bf16.msra.mxu1 %v3651_v47  ;;  %3320 = vmatprep.subr.bf16.mxu0 %v3652_v48  ;;  %v3711_v47 = vld [vmem:[%s4614_s1 + $0x690] sm:$0xff]   ;;  %v3712_v48 = vld [vmem:[%s4614_s1 + $0x658] sm:$0xff]  }
  0x9a   :  { %3342 = vmatprep.subr.bf16.mxu1 %v3653_v49  ;;  %v3713_v49 = vld [vmem:[%s4614_s1 + $0x6d8] sm:$0xff]  }
  0x9c   :  { %3321 = vmatpush3.bf16.msra.mxu0 %v3654_v50  ;;  %v3714_v50 = vld [vmem:[%s4614_s1 + $0x618] sm:$0xff]  }
  0x9d   :  { %3343 = vmatpush3.bf16.msra.mxu1 %v3655_v51  ;;  %3322 = vmatprep.subr.bf16.mxu0 %v3656_v52  ;;  %v3715_v51 = vld [vmem:[%s4614_s1 + $0x698] sm:$0xff]   ;;  %v3716_v52 = vld [vmem:[%s4614_s1 + $0x660] sm:$0xff]  }
  0x9e   :  { %3344 = vmatprep.subr.bf16.mxu1 %v3657_v53  ;;  %v3717_v53 = vld [vmem:[%s4614_s1 + $0x6e0] sm:$0xff]  }
  0xa0   :  { %3323 = vmatpush3.bf16.msra.mxu0 %v3658_v54  ;;  %v3718_v54 = vld [vmem:[%s4614_s1 + $0x620] sm:$0xff]  }
  0xa1   :  { %3345 = vmatpush3.bf16.msra.mxu1 %v3659_v55  ;;  %3352 = vmatprep.subr.bf16.mxu0 %v3664_v62  ;;  %v3719_v55 = vld [vmem:[%s4614_s1 + $0x6a0] sm:$0xff]   ;;  %v3726_v62 = vld [vmem:[%s4614_s1 + $0x630] sm:$0xff]  }
  0xa2   :  { %3374 = vmatprep.subr.bf16.mxu1 %v3665_v63  ;;  %v3727_v63 = vld [vmem:[%s4614_s1 + $0x6b0] sm:$0xff]  }
  0xa3   :  { %2551 = vmatmul.mubr.bf16.vlgmr.msra.gmra.mrb[16].mxu0 %v2860_v57  ;;  %v3721_v57 = vld [vmem:[%s4614_s1 + $0x6e8] sm:$0xff]  }
  0xa4   :  { %2591 = vmatmul.mubr.bf16.vlgmr.msra.gmra.mrb[16].mxu1 %v2862_v60  ;;  %3353 = vmatpush3.bf16.msra.mxu0 %v3666_v0  ;;  %v3724_v60 = vld [vmem:[%s4614_s1 + $0x670] sm:$0xff]   ;;  %v3728_v0 = vld [vmem:[%s4614_s1 + $0x678] sm:$0xff]  }
  0xa5   :  { %3375 = vmatpush3.bf16.msra.mxu1 %v3667_v1  ;;  %3354 = vmatprep.subr.bf16.mxu0 %v3668_v2  ;;  %v3729_v1 = vld [vmem:[%s4614_s1 + $0x6f8] sm:$0xff]  }
  0xa6   :  { %3376 = vmatprep.subr.bf16.mxu1 %v3669_v3  ;;  %2630 = vmatprep.mubr.bf16.mxu0 %v2865_v33  ;;  %v3730_v2 = vld [vmem:[%s4614_s1 + $0x638] sm:$0xff]  }
  0xa7   :  { %2670 = vmatprep.mubr.bf16.mxu1 %v2867_v35  ;;  %v3731_v3 = vld [vmem:[%s4614_s1 + $0x6b8] sm:$0xff]  }
  0xa8   :  { %3355 = vmatpush3.bf16.msra.mxu0 %v3670_v4  ;;  %v27_v4 = vld [vmem:[%s4615_s0 + $0x60] sm:$0xff] }
  0xa9   :  { %3377 = vmatpush3.bf16.msra.mxu1 %v3671_v5  ;;  %3356 = vmatprep.subr.bf16.mxu0 %v3672_v6  ;;  %v28_v5 = vld [vmem:[%s4615_s0 + $0x68] sm:$0xff]  ;;  %v2868_v6 = vcombine.low %v27_v4, %v27_v4 }
  0xaa   :  { %3378 = vmatprep.subr.bf16.mxu1 %v3673_v7  ;;  %v2869_v7 = vcombine.high %v27_v4, %v27_v4 }
  0xac   :  { %3357 = vmatpush3.bf16.msra.mxu0 %v3674_v8  ;;  %v2870_v8 = vcombine.low %v28_v5, %v28_v5 }
  0xad   :  { %3379 = vmatpush3.bf16.msra.mxu1 %v3675_v9  ;;  %3358 = vmatprep.subr.bf16.mxu0 %v3676_v10  ;;  %v3736_v9 = vld [vmem:[%s4614_s1 + $0x740] sm:$0xff]   ;;  %v2871_v10 = vcombine.high %v28_v5, %v28_v5 }
  0xae   :  { %3380 = vmatprep.subr.bf16.mxu1 %v3677_v11  ;;  %v3737_v11 = vld [vmem:[%s4614_s1 + $0x7c0] sm:$0xff]  }
  0xb0   :  { %3359 = vmatpush3.bf16.msra.mxu0 %v3678_v12  ;;  %v3738_v12 = vld [vmem:[%s4614_s1 + $0x700] sm:$0xff]  }
  0xb1   :  { %3381 = vmatpush3.bf16.msra.mxu1 %v3679_v13  ;;  %3360 = vmatprep.subr.bf16.mxu0 %v3680_v14  ;;  %v3739_v13 = vld [vmem:[%s4614_s1 + $0x780] sm:$0xff]   ;;  %v3740_v14 = vld [vmem:[%s4614_s1 + $0x748] sm:$0xff]  }
  0xb2   :  { %3382 = vmatprep.subr.bf16.mxu1 %v3681_v15  ;;  %v3741_v15 = vld [vmem:[%s4614_s1 + $0x7c8] sm:$0xff]  }
  0xb4   :  { %3361 = vmatpush3.bf16.msra.mxu0 %v3682_v16  ;;  %v3742_v16 = vld [vmem:[%s4614_s1 + $0x708] sm:$0xff]  }
  0xb5   :  { %3383 = vmatpush3.bf16.msra.mxu1 %v3683_v17  ;;  %3362 = vmatprep.subr.bf16.mxu0 %v3684_v18  ;;  %v3743_v17 = vld [vmem:[%s4614_s1 + $0x788] sm:$0xff]   ;;  %v3744_v18 = vld [vmem:[%s4614_s1 + $0x750] sm:$0xff]  }
  0xb6   :  { %3384 = vmatprep.subr.bf16.mxu1 %v3685_v19  ;;  %v3745_v19 = vld [vmem:[%s4614_s1 + $0x7d0] sm:$0xff]  }
  0xb8   :  { %3363 = vmatpush3.bf16.msra.mxu0 %v3686_v20  ;;  %v3746_v20 = vld [vmem:[%s4614_s1 + $0x710] sm:$0xff]  }
  0xb9   :  { %3385 = vmatpush3.bf16.msra.mxu1 %v3687_v21  ;;  %3364 = vmatprep.subr.bf16.mxu0 %v3688_v22  ;;  %v3747_v21 = vld [vmem:[%s4614_s1 + $0x790] sm:$0xff]   ;;  %v3748_v22 = vld [vmem:[%s4614_s1 + $0x758] sm:$0xff]  }
  0xba   :  { %3386 = vmatprep.subr.bf16.mxu1 %v3689_v23  ;;  %v3749_v23 = vld [vmem:[%s4614_s1 + $0x7d8] sm:$0xff]  }
  0xbc   :  { %3365 = vmatpush3.bf16.msra.mxu0 %v3690_v24  ;;  %v3750_v24 = vld [vmem:[%s4614_s1 + $0x718] sm:$0xff]  }
  0xbd   :  { %3387 = vmatpush3.bf16.msra.mxu1 %v3691_v25  ;;  %3366 = vmatprep.subr.bf16.mxu0 %v3692_v26  ;;  %v3751_v25 = vld [vmem:[%s4614_s1 + $0x798] sm:$0xff]   ;;  %v3752_v26 = vld [vmem:[%s4614_s1 + $0x760] sm:$0xff]  }
  0xbe   :  { %3388 = vmatprep.subr.bf16.mxu1 %v3693_v27  ;;  %v3753_v27 = vld [vmem:[%s4614_s1 + $0x7e0] sm:$0xff]  }
  0xc0   :  { %3367 = vmatpush3.bf16.msra.mxu0 %v3694_v28  ;;  %v3754_v28 = vld [vmem:[%s4614_s1 + $0x720] sm:$0xff]  }
  0xc1   :  { %3389 = vmatpush3.bf16.msra.mxu1 %v3695_v29  ;;  %3396 = vmatprep.subr.bf16.mxu0 %v3700_v36 }
  0xc2   :  { %3418 = vmatprep.subr.bf16.mxu1 %v3701_v37  ;;  %v3756_v37 = vld [vmem:[%s4614_s1 + $0x768] sm:$0xff]  }
  0xc3   :  { %2631 = vmatmul.mubr.bf16.vlgmr.msra.gmra.mrb[20].mxu0 %v2864_v32  ;;  %v2843_v32 = vld [vmem:[%s4616_s2] ss:$0 sm:$0xff] }
  0xc4   :  { %2671 = vmatmul.mubr.bf16.vlgmr.msra.gmra.mrb[20].mxu1 %v2866_v34  ;;  %3397 = vmatpush3.bf16.msra.mxu0 %v3702_v38 }
  0xc5   :  { %3419 = vmatpush3.bf16.msra.mxu1 %v3703_v39  ;;  %3398 = vmatprep.subr.bf16.mxu0 %v3704_v40  ;;  %v3757_v39 = vld [vmem:[%s4614_s1 + $0x7e8] sm:$0xff]  }
  0xc6   :  { %3420 = vmatprep.subr.bf16.mxu1 %v3705_v41  ;;  %2710 = vmatprep.mubr.bf16.mxu0 %v2869_v7 }
  0xc7   :  { %2750 = vmatprep.mubr.bf16.mxu1 %v2871_v10 }
  0xc8   :  { %3399 = vmatpush3.bf16.msra.mxu0 %v3706_v42  ;;  %v3758_v42 = vld [vmem:[%s4614_s1 + $0x728] sm:$0xff]  }
  0xc9   :  { %3421 = vmatpush3.bf16.msra.mxu1 %v3707_v43  ;;  %3400 = vmatprep.subr.bf16.mxu0 %v3708_v44  ;;  %v3759_v44 = vld [vmem:[%s4614_s1 + $0x7a8] sm:$0xff]  }
  0xca   :  { %3422 = vmatprep.subr.bf16.mxu1 %v3709_v45 }
  0xcc   :  { %3401 = vmatpush3.bf16.msra.mxu0 %v3710_v46 }
  0xcd   :  { %3423 = vmatpush3.bf16.msra.mxu1 %v3711_v47  ;;  %3402 = vmatprep.subr.bf16.mxu0 %v3712_v48  ;;  %v3760_v47 = vld [vmem:[%s4614_s1 + $0x770] sm:$0xff]  }
  0xce   :  { %3424 = vmatprep.subr.bf16.mxu1 %v3713_v49  ;;  %v3761_v48 = vld [vmem:[%s4614_s1 + $0x7f0] sm:$0xff]  }
  0xcf   :  { %v3762_v49 = vld [vmem:[%s4614_s1 + $0x730] sm:$0xff]  }
  0xd0   :  { %3403 = vmatpush3.bf16.msra.mxu0 %v3714_v50  ;;  %v3763_v50 = vld [vmem:[%s4614_s1 + $0x7b0] sm:$0xff]  }
  0xd1   :  { %3425 = vmatpush3.bf16.msra.mxu1 %v3715_v51  ;;  %3404 = vmatprep.subr.bf16.mxu0 %v3716_v52  ;;  %v3764_v51 = vld [vmem:[%s4614_s1 + $0x778] sm:$0xff]  }
  0xd2   :  { %3426 = vmatprep.subr.bf16.mxu1 %v3717_v53  ;;  %v3765_v52 = vld [vmem:[%s4614_s1 + $0x7f8] sm:$0xff]  }
  0xd3   :  { %v3766_v53 = vld [vmem:[%s4614_s1 + $0x738] sm:$0xff]  }
  0xd4   :  { %3405 = vmatpush3.bf16.msra.mxu0 %v3718_v54  ;;  %v3767_v54 = vld [vmem:[%s4614_s1 + $0x7b8] sm:$0xff]  }
  0xd5   :  { %3427 = vmatpush3.bf16.msra.mxu1 %v3719_v55  ;;  %3406 = vmatprep.subr.bf16.mxu0 %v3720_v56  ;;  %v29_v55 = vld [vmem:[%s4615_s0 + $0x70] sm:$0xff]  ;;  %v30_v56 = vld [vmem:[%s4615_s0 + $0x78] sm:$0xff] }
  0xd6   :  { %3428 = vmatprep.subr.bf16.mxu1 %v3721_v57  ;;  %v2872_v57 = vcombine.low %v29_v55, %v29_v55 }
  0xd8   :  { %3407 = vmatpush3.bf16.msra.mxu0 %v3722_v58  ;;  %v2873_v58 = vcombine.high %v29_v55, %v29_v55 }
  0xd9   :  { %3429 = vmatpush3.bf16.msra.mxu1 %v3723_v59  ;;  %3408 = vmatprep.subr.bf16.mxu0 %v3724_v60  ;;  %v2874_v59 = vcombine.low %v30_v56, %v30_v56  ;;  %v2875_v60 = vcombine.high %v30_v56, %v30_v56 }
  0xda   :  { %3430 = vmatprep.subr.bf16.mxu1 %v3725_v61 }
  0xdc   :  { %3409 = vmatpush3.bf16.msra.mxu0 %v3726_v62 }
  0xdd   :  { %3431 = vmatpush3.bf16.msra.mxu1 %v3727_v63  ;;  %3410 = vmatprep.subr.bf16.mxu0 %v3728_v0 }
  0xde   :  { %3432 = vmatprep.subr.bf16.mxu1 %v3729_v1 }
  0xe0   :  { %3411 = vmatpush3.bf16.msra.mxu0 %v3730_v2 }
  0xe1   :  { %3433 = vmatpush3.bf16.msra.mxu1 %v3731_v3  ;;  %3440 = vmatprep.subr.bf16.mxu0 %v3736_v9 }
  0xe2   :  { %3462 = vmatprep.subr.bf16.mxu1 %v3737_v11 }
  0xe3   :  { %2711 = vmatmul.mubr.bf16.vlgmr.msra.gmra.mrb[24].mxu0 %v2868_v6 }
  0xe4   :  { %2751 = vmatmul.mubr.bf16.vlgmr.msra.gmra.mrb[24].mxu1 %v2870_v8  ;;  %3441 = vmatpush3.bf16.msra.mxu0 %v3738_v12 }
  0xe5   :  { %3463 = vmatpush3.bf16.msra.mxu1 %v3739_v13  ;;  %3442 = vmatprep.subr.bf16.mxu0 %v3740_v14 }
  0xe6   :  { %3464 = vmatprep.subr.bf16.mxu1 %v3741_v15  ;;  %2790 = vmatprep.mubr.bf16.mxu0 %v2873_v58 }
  0xe7   :  { %2830 = vmatprep.mubr.bf16.mxu1 %v2875_v60 }
  0xe8   :  { %3443 = vmatpush3.bf16.msra.mxu0 %v3742_v16 }
  0xe9   :  { %3465 = vmatpush3.bf16.msra.mxu1 %v3743_v17  ;;  %3444 = vmatprep.subr.bf16.mxu0 %v3744_v18 }
  0xea   :  { %3466 = vmatprep.subr.bf16.mxu1 %v3745_v19 }
  0xec   :  { %3445 = vmatpush3.bf16.msra.mxu0 %v3746_v20 }
  0xed   :  { %3467 = vmatpush3.bf16.msra.mxu1 %v3747_v21  ;;  %3446 = vmatprep.subr.bf16.mxu0 %v3748_v22 }
  0xee   :  { %3468 = vmatprep.subr.bf16.mxu1 %v3749_v23 }
  0xf0   :  { %3447 = vmatpush3.bf16.msra.mxu0 %v3750_v24 }
  0xf1   :  { %3469 = vmatpush3.bf16.msra.mxu1 %v3751_v25  ;;  %3448 = vmatprep.subr.bf16.mxu0 %v3752_v26 }
  0xf2   :  { %3470 = vmatprep.subr.bf16.mxu1 %v3753_v27 }
  0xf4   :  { %3449 = vmatpush3.bf16.msra.mxu0 %v3754_v28 }
  0xf5   :  { %3471 = vmatpush3.bf16.msra.mxu1 %v3755_v30  ;;  %3450 = vmatprep.subr.bf16.mxu0 %v3756_v37 }
  0xf6   :  { %v3148_v29 = vpop.f32.mrb[0].mxu0  ;;  %3472 = vmatprep.subr.bf16.mxu1 %v3757_v39 }
  0xf7   :  { %v3170_v31 = vpop.f32.mrb[0].mxu1  ;;  %v3149_v33 = vpop.f32.mrb[1].mxu0 }
  0xf8   :  { %v3171_v34 = vpop.f32.mrb[1].mxu1  ;;  %v3150_v35 = vadd.f32 %v3149_v33, %v3148_v29  ;;  %v3151_v38 = vpop.f32.mrb[2].mxu0  ;;  %3451 = vmatpush3.bf16.msra.mxu0 %v3758_v42 }
  0xf9   :  { %v3172_v36 = vadd.f32 %v3171_v34, %v3170_v31  ;;  %v3173_v40 = vpop.f32.mrb[2].mxu1  ;;  %v3152_v43 = vpop.f32.mrb[3].mxu0  ;;  %3473 = vmatpush3.bf16.msra.mxu1 %v3759_v44  ;;  %3452 = vmatprep.subr.bf16.mxu0 %v3760_v47 }
  0xfa   :  { %v2233_v41 = vadd.f32 %v3150_v35, %v2843_v32  ;;  %v3174_v45 = vpop.f32.mrb[3].mxu1  ;;  %3474 = vmatprep.subr.bf16.mxu1 %v3761_v48 }
  0xfc   :  { %v2273_v46 = vadd.f32 %v3172_v36, %v2233_v41  ;;  %3453 = vmatpush3.bf16.msra.mxu0 %v3762_v49 }
  0xfd   :  { %3475 = vmatpush3.bf16.msra.mxu1 %v3763_v50  ;;  %3454 = vmatprep.subr.bf16.mxu0 %v3764_v51 }
  0xfe   :  { %3476 = vmatprep.subr.bf16.mxu1 %v3765_v52 }
 0x100   :  { %3455 = vmatpush3.bf16.msra.mxu0 %v3766_v53 }
 0x101   :  { %3477 = vmatpush3.bf16.msra.mxu1 %v3767_v54 }
 0x103   :  { %2791 = vmatmul.mubr.bf16.vlgmr.msra.gmra.mrb[28].mxu0 %v2872_v57 }
 0x104   :  { %2831 = vmatmul.mubr.bf16.vlgmr.msra.gmra.mrb[28].mxu1 %v2874_v59 }
 0x116   :  { %v3192_v61 = vpop.f32.mrb[4].mxu0 }
 0x117   :  { %v3214_v62 = vpop.f32.mrb[4].mxu1  ;;  %v3193_v63 = vpop.f32.mrb[5].mxu0 }
 0x118   :  { %v3215_v0 = vpop.f32.mrb[5].mxu1  ;;  %v3194_v1 = vadd.f32 %v3193_v63, %v3192_v61  ;;  %v3195_v3 = vpop.f32.mrb[6].mxu0 }
 0x119   :  { %v3216_v2 = vadd.f32 %v3215_v0, %v3214_v62  ;;  %v3217_v4 = vpop.f32.mrb[6].mxu1  ;;  %v3196_v5 = vpop.f32.mrb[7].mxu0 }
 0x11a   :  { %v3218_v6 = vpop.f32.mrb[7].mxu1  ;;  %v2313_v7 = vadd.f32 %v3194_v1, %v2273_v46 }
 0x11c   :  { %v2353_v8 = vadd.f32 %v3216_v2, %v2313_v7 }
 0x136   :  { %v3236_v9 = vpop.f32.mrb[8].mxu0 }
 0x137   :  { %v3258_v10 = vpop.f32.mrb[8].mxu1  ;;  %v3237_v11 = vpop.f32.mrb[9].mxu0 }
 0x138   :  { %v3238_v12 = vadd.f32 %v3237_v11, %v3236_v9  ;;  %v3259_v13 = vpop.f32.mrb[9].mxu1  ;;  %v3239_v14 = vpop.f32.mrb[10].mxu0 }
 0x139   :  { %v3260_v15 = vadd.f32 %v3259_v13, %v3258_v10  ;;  %v3261_v16 = vpop.f32.mrb[10].mxu1  ;;  %v3240_v17 = vpop.f32.mrb[11].mxu0 }
 0x13a   :  { %v2393_v18 = vadd.f32 %v3238_v12, %v2353_v8  ;;  %v3262_v19 = vpop.f32.mrb[11].mxu1 }
 0x13c   :  { %v2433_v20 = vadd.f32 %v3260_v15, %v2393_v18 }
 0x156   :  { %v3280_v21 = vpop.f32.mrb[12].mxu0 }
 0x157   :  { %v3302_v22 = vpop.f32.mrb[12].mxu1  ;;  %v3281_v23 = vpop.f32.mrb[13].mxu0 }
 0x158   :  { %v3282_v24 = vadd.f32 %v3281_v23, %v3280_v21  ;;  %v3303_v25 = vpop.f32.mrb[13].mxu1  ;;  %v3283_v26 = vpop.f32.mrb[14].mxu0 }
 0x159   :  { %v3304_v27 = vadd.f32 %v3303_v25, %v3302_v22  ;;  %v3305_v28 = vpop.f32.mrb[14].mxu1  ;;  %v3284_v29 = vpop.f32.mrb[15].mxu0 }
 0x15a   :  { %v2473_v30 = vadd.f32 %v3282_v24, %v2433_v20  ;;  %v3306_v31 = vpop.f32.mrb[15].mxu1 }
 0x15c   :  { %v2513_v32 = vadd.f32 %v3304_v27, %v2473_v30 }
 0x176   :  { %v3324_v33 = vpop.f32.mrb[16].mxu0 }
 0x177   :  { %v3346_v34 = vpop.f32.mrb[16].mxu1  ;;  %v3325_v35 = vpop.f32.mrb[17].mxu0 }
 0x178   :  { %v3347_v36 = vpop.f32.mrb[17].mxu1  ;;  %v3326_v37 = vadd.f32 %v3325_v35, %v3324_v33  ;;  %v3327_v39 = vpop.f32.mrb[18].mxu0 }
 0x179   :  { %v3348_v38 = vadd.f32 %v3347_v36, %v3346_v34  ;;  %v3349_v40 = vpop.f32.mrb[18].mxu1  ;;  %v3328_v41 = vpop.f32.mrb[19].mxu0 }
 0x17a   :  { %v3350_v42 = vpop.f32.mrb[19].mxu1  ;;  %v2553_v43 = vadd.f32 %v3326_v37, %v2513_v32 }
 0x17c   :  { %v2593_v44 = vadd.f32 %v3348_v38, %v2553_v43 }
 0x196   :  { %v3368_v45 = vpop.f32.mrb[20].mxu0 }
 0x197   :  { %v3390_v46 = vpop.f32.mrb[20].mxu1  ;;  %v3369_v47 = vpop.f32.mrb[21].mxu0 }
 0x198   :  { %v3370_v48 = vadd.f32 %v3369_v47, %v3368_v45  ;;  %v3391_v49 = vpop.f32.mrb[21].mxu1  ;;  %v3371_v50 = vpop.f32.mrb[22].mxu0 }
 0x199   :  { %v3392_v51 = vadd.f32 %v3391_v49, %v3390_v46  ;;  %v3393_v52 = vpop.f32.mrb[22].mxu1  ;;  %v3372_v53 = vpop.f32.mrb[23].mxu0 }
 0x19a   :  { %v2633_v54 = vadd.f32 %v3370_v48, %v2593_v44  ;;  %v3394_v55 = vpop.f32.mrb[23].mxu1 }
 0x19c   :  { %v2673_v56 = vadd.f32 %v3392_v51, %v2633_v54 }
 0x1b6   :  { %v3412_v57 = vpop.f32.mrb[24].mxu0 }
 0x1b7   :  { %v3434_v58 = vpop.f32.mrb[24].mxu1  ;;  %v3413_v59 = vpop.f32.mrb[25].mxu0 }
 0x1b8   :  { %v3414_v60 = vadd.f32 %v3413_v59, %v3412_v57  ;;  %v3435_v61 = vpop.f32.mrb[25].mxu1  ;;  %v3415_v62 = vpop.f32.mrb[26].mxu0 }
 0x1b9   :  { %v3436_v63 = vadd.f32 %v3435_v61, %v3434_v58  ;;  %v3437_v0 = vpop.f32.mrb[26].mxu1  ;;  %v3416_v1 = vpop.f32.mrb[27].mxu0 }
 0x1ba   :  { %v2713_v2 = vadd.f32 %v3414_v60, %v2673_v56  ;;  %v3438_v3 = vpop.f32.mrb[27].mxu1 }
 0x1bc   :  { %v2753_v4 = vadd.f32 %v3436_v63, %v2713_v2 }
 0x1d6   :  { %v3456_v5 = vpop.f32.mrb[28].mxu0 }
 0x1d7   :  { %v3478_v6 = vpop.f32.mrb[28].mxu1  ;;  %v3457_v7 = vpop.f32.mrb[29].mxu0 }
 0x1d8   :  { %v3458_v8 = vadd.f32 %v3457_v7, %v3456_v5  ;;  %v3479_v9 = vpop.f32.mrb[29].mxu1  ;;  %v3459_v10 = vpop.f32.mrb[30].mxu0 }
 0x1d9   :  { %v3480_v11 = vadd.f32 %v3479_v9, %v3478_v6  ;;  %v3481_v12 = vpop.f32.mrb[30].mxu1  ;;  %v3460_v13 = vpop.f32.mrb[31].mxu0 }
 0x1da   :  { %v2793_v14 = vadd.f32 %v3458_v8, %v2753_v4  ;;  %v3482_v15 = vpop.f32.mrb[31].mxu1 }
 0x1dc   :  { %v2833_v16 = vadd.f32 %v3480_v11, %v2793_v14 }
 0x1de   :  { %2838 = vst [vmem:[%s4617_s3] sm:$0xff] %v2833_v16 }

</bundles_post_ra>
